<compile_context>
chip_gen: v7x
topology: tpu7x:2x2x1
jax: 0.10.0
libtpu: 0.0.40
codegen_flags: <defaults>
</compile_context>

<pallas_src>
import numpy as np
import jax
import jax.numpy as jnp
from jax import lax
from jax.experimental import pallas as pl
from jax.experimental.pallas import tpu as pltpu

# ----------------------------- config (small, consistent with the module) -----------------------------
B = 2                      # batch
C = 4                      # n_channels
SPATIAL = 16               # spatial_dim
PATCH = 4                  # patch_size
GRID = SPATIAL // PATCH    # 4
P = GRID * GRID            # n_patches = 16
K = C * PATCH * PATCH      # flattened patch dim = 64
D = K                      # hidden_size (must equal C*p^2 for the fc head) = 64
NUM_HEADS = 4
HD = D // NUM_HEADS        # 16
MLP = 128                  # mlp_dim
NUM_LAYERS = 2             # encoder layers (kept small)
N_CLASSES = 2
FC_HIDDEN = N_CLASSES * 128  # 256
OUT_PAD = 128              # lane-dense head output width (sliced to N_CLASSES in the wrapper)
SEQ = P + 1                # 17 (patch tokens + cls)
SEQ_PAD = ((SEQ + 7) // 8) * 8  # 24: 8-aligned per-batch segment inside the folded activation
TOT = B * SEQ_PAD          # 48 rows total
LN_EPS = 1e-5
BN_EPS = 1e-5
NEG = -1e30                # additive attention mask value


# ----------------------------- fused Pallas kernel -----------------------------
def _layer_norm(x, g, b):
    mu = jnp.mean(x, axis=-1, keepdims=True)
    var = jnp.mean((x - mu) ** 2, axis=-1, keepdims=True)
    return (x - mu) * lax.rsqrt(var + LN_EPS) * g + b


def fused_mae_probe_kernel(
        patches_ref, bias_ref, pe_w_ref, pe_b_ref, cls_ref, pos_patch_ref,
        ln1g_ref, ln1b_ref, wqkv_ref, bqkv_ref, wo_ref, bo_ref,
        ln2g_ref, ln2b_ref, w1_ref, b1_ref, w2_ref, b2_ref,
        encg_ref, encb_ref, bng_ref, bnb_ref,
        fc1w_ref, fc1b_ref, fc2w_ref, fc2b_ref,
        o_ref):
    f32 = jnp.float32
    bf16 = jnp.bfloat16

    # ---- patch embedding + positional embedding + cls token (batch folded into M) ----
    pe = jnp.dot(patches_ref[...].astype(bf16), pe_w_ref[...],
                 preferred_element_type=f32) + pe_b_ref[...]          # (B*P, D)
    cls_row = cls_ref[...]                                            # (1, D) = cls_token + pos[cls]
    pos_patch = pos_patch_ref[...]                                    # (P, D)
    pad_rows = jnp.zeros((SEQ_PAD - SEQ, D), f32)
    segs = []
    for b in range(B):
        # Segment layout per batch b: [patch tokens 0..P) | cls at row P | zero pad] — attention /
        # LN / MLP are permutation-equivariant so placing cls after the patches is identical to
        # prepending it, while keeping every slice 8-aligned.
        segs.append(jnp.concatenate(
            [pe[b * P:(b + 1) * P, :] + pos_patch, cls_row, pad_rows], axis=0))
    x = jnp.concatenate(segs, axis=0)                                 # (TOT, D), lives in vregs

    bias = bias_ref[...]                                              # (TOT, TOT) block-diag mask
    scale = 1.0 / float(np.sqrt(HD))

    # ---- transformer encoder blocks (static loop over stacked per-layer weights) ----
    for l in range(NUM_LAYERS):
        # --- pre-norm multi-head self-attention, single fused lane-dense QKV matmul ---
        hn = _layer_norm(x, ln1g_ref[l], ln1b_ref[l])
        qkv = jnp.dot(hn.astype(bf16), wqkv_ref[l],
                      preferred_element_type=f32) + bqkv_ref[l]       # (TOT, 3*D)
        ctx_heads = []
        for h in range(NUM_HEADS):
            q = qkv[:, h * HD:(h + 1) * HD] * scale                   # static 16-wide lane slices
            k = qkv[:, D + h * HD:D + (h + 1) * HD]
            v = qkv[:, 2 * D + h * HD:2 * D + (h + 1) * HD]
            s = lax.dot_general(q.astype(bf16), k.astype(bf16),
                                (((1,), (1,)), ((), ())),
                                preferred_element_type=f32) + bias    # (TOT, TOT)
            m = jnp.max(s, axis=-1, keepdims=True)
            e = jnp.exp(s - m)
            p = e * pl.reciprocal(jnp.sum(e, axis=-1, keepdims=True), approx=True)
            ctx_heads.append(jnp.dot(p.astype(bf16), v.astype(bf16),
                                     preferred_element_type=f32))     # (TOT, HD)
        ctx = jnp.concatenate(ctx_heads, axis=-1)                     # (TOT, D), heads in order
        attn_out = jnp.dot(ctx.astype(bf16), wo_ref[l],
                           preferred_element_type=f32) + bo_ref[l]
        x = x + attn_out                                              # residual

        # --- pre-norm MLP (pad rows are harmless, never read for the result) ---
        hn2 = _layer_norm(x, ln2g_ref[l], ln2b_ref[l])
        m1 = jnp.dot(hn2.astype(bf16), w1_ref[l], preferred_element_type=f32) + b1_ref[l]
        # TODO(synk): PyTorch nn.GELU default is exact erf; tanh approximation used for TPU lowering safety.
        m1 = jax.nn.gelu(m1, approximate=True)
        m2 = jnp.dot(m1.astype(bf16), w2_ref[l], preferred_element_type=f32) + b2_ref[l]
        x = x + m2

    # ---- head: encoder final LayerNorm (cls dropped), BatchNorm1d(P), mean pool, fc ----
    encg = encg_ref[...]
    encb = encb_ref[...]
    xn = []
    for b in range(B):
        seg = b * SEQ_PAD
        xn.append(_layer_norm(x[seg:seg + P, :], encg, encb))         # (P, D) patch tokens only
    # BatchNorm1d(n_patches): training-mode batch statistics over (batch, hidden) per patch channel.
    inv_n = 1.0 / float(B * D)
    mu = sum(jnp.sum(t, axis=-1, keepdims=True) for t in xn) * inv_n                # (P, 1)
    var = sum(jnp.sum((t - mu) ** 2, axis=-1, keepdims=True) for t in xn) * inv_n   # (P, 1)
    inv = lax.rsqrt(var + BN_EPS)
    bng = bng_ref[...]
    bnb = bnb_ref[...]
    pooled = []
    for b in range(B):
        xb = (xn[b] - mu) * inv * bng + bnb                           # bn params stored as (P, 1)
        pooled.append(jnp.sum(xb, axis=0, keepdims=True) * (1.0 / P)) # mean over patches -> (1, D)
    pooled = jnp.concatenate(pooled, axis=0)                          # (B, D)
    # fc: Linear -> ReLU -> Dropout (identity, eval semantics) -> Linear (lane-dense padded output)
    h1 = jnp.dot(pooled.astype(bf16), fc1w_ref[...], preferred_element_type=f32) + fc1b_ref[...]
    h1 = jnp.maximum(h1, 0.0)
    o_ref[...] = jnp.dot(h1.astype(bf16), fc2w_ref[...],
                         preferred_element_type=f32) + fc2b_ref[...]


# ----------------------------- wrapper -----------------------------
def _cost_estimate(bytes_accessed):
    fl = 2 * B * P * K * D                                    # patch embed
    per_layer = (2 * TOT * D * (3 * D)                        # fused qkv
                 + 2 * NUM_HEADS * TOT * HD * TOT * 2         # scores + ctx
                 + 2 * TOT * D * D                            # out proj
                 + 2 * TOT * D * MLP * 2)                     # mlp
    fl += NUM_LAYERS * per_layer
    fl += 2 * B * D * FC_HIDDEN + 2 * B * FC_HIDDEN * OUT_PAD
    trans = NUM_LAYERS * (NUM_HEADS * TOT * TOT + TOT * MLP) + 8 * TOT * NUM_LAYERS
    return pl.CostEstimate(flops=fl, transcendentals=trans, bytes_accessed=bytes_accessed)


def mae_linear_probe_forward(x, params):
    # layout: x is NCHW (B, C, H, W), matching the PyTorch module.
    b = x.shape[0]
    assert b == B
    # extract_patches + view(b, n_patches, -1): channel-major within a patch; batch folded to rows.
    patches = x.reshape(b, C, GRID, PATCH, GRID, PATCH)
    patches = patches.transpose(0, 2, 4, 1, 3, 5).reshape(b * P, K)
    args = (patches, params["attn_bias"], params["pe_w"], params["pe_b"],
            params["cls_row"], params["pos_patch"],
            params["ln1_g"], params["ln1_b"], params["w_qkv"], params["b_qkv"],
            params["wo"], params["bo"], params["ln2_g"], params["ln2_b"],
            params["w1"], params["b1"], params["w2"], params["b2"],
            params["enc_ln_g"], params["enc_ln_b"], params["bn_g"], params["bn_b"],
            params["fc1_w"], params["fc1_b"], params["fc2_w"], params["fc2_b"])
    bytes_accessed = int(sum(int(np.prod(a.shape)) * a.dtype.itemsize for a in args)
                         + b * OUT_PAD * 4)
    vmem_spec = lambda: pl.BlockSpec(memory_space=pltpu.MemorySpace.VMEM)
    out = pl.pallas_call(
        fused_mae_probe_kernel,
        out_shape=jax.ShapeDtypeStruct((b, OUT_PAD), jnp.float32),
        in_specs=[vmem_spec() for _ in args],
        out_specs=vmem_spec(),
        cost_estimate=_cost_estimate(bytes_accessed),
    )(*args)
    return out[:, :N_CLASSES]


# ----------------------------- deterministic parameter construction -----------------------------
def sincos_pos_embedding(hidden, grid_size):
    def emb_1d(dim, pos):
        omega = jnp.arange(dim // 2, dtype=jnp.float32) / (dim / 2.0)
        omega = 1.0 / (10000.0 ** omega)
        out = pos[:, None] * omega[None, :]
        return jnp.concatenate([jnp.sin(out), jnp.cos(out)], axis=1)
    g = jnp.arange(grid_size, dtype=jnp.float32)
    mw, mh = jnp.meshgrid(g, g, indexing="ij")   # torch.meshgrid default ('ij')
    emb_h = emb_1d(hidden // 2, mw.reshape(-1))
    emb_w = emb_1d(hidden // 2, mh.reshape(-1))
    return jnp.concatenate([emb_h, emb_w], axis=1)   # (P, hidden); cls positional row is zeros


def make_attn_bias():
    # Block-diagonal additive mask over the folded (B*SEQ_PAD) row axis:
    # a query may only attend to keys of its own batch segment whose in-segment index is < SEQ.
    rows = np.arange(TOT)
    same_batch = (rows[:, None] // SEQ_PAD) == (rows[None, :] // SEQ_PAD)
    valid_key = (rows[None, :] % SEQ_PAD) < SEQ
    return jnp.asarray(np.where(same_batch & valid_key, 0.0, NEG).astype(np.float32))


def init_params(key):
    def linear(k, fin, fout):
        kw, kb = jax.random.split(k)
        bound = 1.0 / np.sqrt(fin)
        w = jax.random.uniform(kw, (fin, fout), jnp.float32, -bound, bound)
        bvec = jax.random.uniform(kb, (1, fout), jnp.float32, -bound, bound)
        return w, bvec

    keys = jax.random.split(key, 4 + NUM_LAYERS)
    params = {}
    pe_w, pe_b = linear(keys[0], K, D)
    params["pe_w"] = pe_w.astype(jnp.bfloat16)        # matmul weights pre-cast to bf16 on host
    params["pe_b"] = pe_b
    params["cls_row"] = jnp.zeros((1, D), jnp.float32)  # cls_token (zeros) + its zero positional row
    params["pos_patch"] = sincos_pos_embedding(D, GRID)  # (P, D)
    params["attn_bias"] = make_attn_bias()               # (TOT, TOT)

    ln1_g, ln1_b, wqkv, bqkv, wo, bo = ([] for _ in range(6))
    ln2_g, ln2_b, w1, b1, w2, b2 = ([] for _ in range(6))
    for li in range(NUM_LAYERS):
        lk = jax.random.split(keys[1 + li], 4)
        w_qkv, b_qkv = linear(lk[0], D, 3 * D)   # torch column order: [Q | K | V], head-major in each
        w_o, b_o = linear(lk[1], D, D)
        wf1, bf1 = linear(lk[2], D, MLP)
        wf2, bf2 = linear(lk[3], MLP, D)
        wqkv.append(w_qkv.astype(jnp.bfloat16)); bqkv.append(b_qkv)
        wo.append(w_o.astype(jnp.bfloat16)); bo.append(b_o)
        w1.append(wf1.astype(jnp.bfloat16)); b1.append(bf1)
        w2.append(wf2.astype(jnp.bfloat16)); b2.append(bf2)
        ln1_g.append(jnp.ones((1, D), jnp.float32)); ln1_b.append(jnp.zeros((1, D), jnp.float32))
        ln2_g.append(jnp.ones((1, D), jnp.float32)); ln2_b.append(jnp.zeros((1, D), jnp.float32))

    stack = lambda xs: jnp.stack(xs, axis=0)
    params.update(
        ln1_g=stack(ln1_g), ln1_b=stack(ln1_b),
        w_qkv=stack(wqkv), b_qkv=stack(bqkv),
        wo=stack(wo), bo=stack(bo),
        ln2_g=stack(ln2_g), ln2_b=stack(ln2_b),
        w1=stack(w1), b1=stack(b1), w2=stack(w2), b2=stack(b2))
    params["enc_ln_g"] = jnp.ones((1, D), jnp.float32)
    params["enc_ln_b"] = jnp.zeros((1, D), jnp.float32)
    params["bn_g"] = jnp.ones((P, 1), jnp.float32)       # BatchNorm1d affine, (P,1) layout
    params["bn_b"] = jnp.zeros((P, 1), jnp.float32)

    fc1_w, fc1_b = linear(keys[1 + NUM_LAYERS], D, FC_HIDDEN)
    fc2_w, fc2_b = linear(keys[2 + NUM_LAYERS], FC_HIDDEN, N_CLASSES)
    params["fc1_w"] = fc1_w.astype(jnp.bfloat16)
    params["fc1_b"] = fc1_b
    # lane-dense head: pad fc2 to 128 output lanes (extra lanes are zero, sliced off in the wrapper)
    fc2_w_pad = jnp.zeros((FC_HIDDEN, OUT_PAD), jnp.float32).at[:, :N_CLASSES].set(fc2_w)
    fc2_b_pad = jnp.zeros((1, OUT_PAD), jnp.float32).at[:, :N_CLASSES].set(fc2_b)
    params["fc2_w"] = fc2_w_pad.astype(jnp.bfloat16)
    params["fc2_b"] = fc2_b_pad
    return params


if __name__ == "__main__":
    root = jax.random.PRNGKey(0)
    pkey, xkey = jax.random.split(root)
    params = init_params(pkey)
    x = jax.random.normal(xkey, (B, C, SPATIAL, SPATIAL), jnp.float32)
    logits = jax.jit(mae_linear_probe_forward)(x, params)
    jax.block_until_ready(logits)
    assert logits.shape == (B, N_CLASSES) and logits.dtype == jnp.float32
    assert bool(jnp.all(jnp.isfinite(logits)))
    print("KERNEL_OK")
</pallas_src>

<mosaic_0001>
module attributes {stable_mosaic.version = 11 : i64} {
  func.func @fused_mae_probe_kernel(%arg0: memref<32x64xf32, #tpu.memory_space<vmem>>, %arg1: memref<48x48xf32, #tpu.memory_space<vmem>>, %arg2: memref<64x64xbf16, #tpu.memory_space<vmem>>, %arg3: memref<1x64xf32, #tpu.memory_space<vmem>>, %arg4: memref<1x64xf32, #tpu.memory_space<vmem>>, %arg5: memref<16x64xf32, #tpu.memory_space<vmem>>, %arg6: memref<2x1x64xf32, #tpu.memory_space<vmem>>, %arg7: memref<2x1x64xf32, #tpu.memory_space<vmem>>, %arg8: memref<2x64x192xbf16, #tpu.memory_space<vmem>>, %arg9: memref<2x1x192xf32, #tpu.memory_space<vmem>>, %arg10: memref<2x64x64xbf16, #tpu.memory_space<vmem>>, %arg11: memref<2x1x64xf32, #tpu.memory_space<vmem>>, %arg12: memref<2x1x64xf32, #tpu.memory_space<vmem>>, %arg13: memref<2x1x64xf32, #tpu.memory_space<vmem>>, %arg14: memref<2x64x128xbf16, #tpu.memory_space<vmem>>, %arg15: memref<2x1x128xf32, #tpu.memory_space<vmem>>, %arg16: memref<2x128x64xbf16, #tpu.memory_space<vmem>>, %arg17: memref<2x1x64xf32, #tpu.memory_space<vmem>>, %arg18: memref<1x64xf32, #tpu.memory_space<vmem>>, %arg19: memref<1x64xf32, #tpu.memory_space<vmem>>, %arg20: memref<16x1xf32, #tpu.memory_space<vmem>>, %arg21: memref<16x1xf32, #tpu.memory_space<vmem>>, %arg22: memref<64x256xbf16, #tpu.memory_space<vmem>>, %arg23: memref<1x256xf32, #tpu.memory_space<vmem>>, %arg24: memref<256x128xbf16, #tpu.memory_space<vmem>>, %arg25: memref<1x128xf32, #tpu.memory_space<vmem>>, %arg26: memref<2x128xf32, #tpu.memory_space<vmem>>) attributes {dimension_semantics = [], scalar_prefetch = 0 : i64, scratch_operands = 0 : i64, tpu.core_type = #tpu.core_type<tc>} {
    %c0 = arith.constant 0 : index
    %c0_0 = arith.constant 0 : index
    %0 = vector.load %arg0[%c0, %c0_0] : memref<32x64xf32, #tpu.memory_space<vmem>>, vector<32x64xf32>
    %1 = arith.truncf %0 : vector<32x64xf32> to vector<32x64xbf16>
    %c0_1 = arith.constant 0 : index
    %c0_2 = arith.constant 0 : index
    %2 = vector.load %arg2[%c0_1, %c0_2] : memref<64x64xbf16, #tpu.memory_space<vmem>>, vector<64x64xbf16>
    %cst = arith.constant dense<0.000000e+00> : vector<32x64xf32>
    %3 = tpu.matmul %1, %2, %cst {dimension_numbers = #tpu.dot_dimension_numbers<[1], [0], [0], [1], [0, 0, 1, 1], [], []>} : vector<32x64xbf16>, vector<64x64xbf16>, vector<32x64xf32> -> vector<32x64xf32>
    %c0_3 = arith.constant 0 : index
    %c0_4 = arith.constant 0 : index
    %4 = vector.load %arg3[%c0_3, %c0_4] : memref<1x64xf32, #tpu.memory_space<vmem>>, vector<1x64xf32>
    %5 = vector.broadcast %4 : vector<1x64xf32> to vector<32x64xf32>
    %6 = arith.addf %3, %5 : vector<32x64xf32>
    %c0_5 = arith.constant 0 : index
    %c0_6 = arith.constant 0 : index
    %7 = vector.load %arg4[%c0_5, %c0_6] : memref<1x64xf32, #tpu.memory_space<vmem>>, vector<1x64xf32>
    %c0_7 = arith.constant 0 : index
    %c0_8 = arith.constant 0 : index
    %8 = vector.load %arg5[%c0_7, %c0_8] : memref<16x64xf32, #tpu.memory_space<vmem>>, vector<16x64xf32>
    %cst_9 = arith.constant 0.000000e+00 : f32
    %9 = vector.broadcast %cst_9 : f32 to vector<7x64xf32>
    %10 = vector.extract_strided_slice %6 {offsets = [0, 0], sizes = [16, 64], strides = [1, 1]} : vector<32x64xf32> to vector<16x64xf32>
    %11 = arith.addf %10, %8 : vector<16x64xf32>
    %12 = tpu.concatenate %11, %7, %9 in 0 : vector<16x64xf32>, vector<1x64xf32>, vector<7x64xf32> -> vector<24x64xf32>
    %13 = vector.extract_strided_slice %6 {offsets = [16, 0], sizes = [16, 64], strides = [1, 1]} : vector<32x64xf32> to vector<16x64xf32>
    %14 = arith.addf %13, %8 : vector<16x64xf32>
    %15 = tpu.concatenate %14, %7, %9 in 0 : vector<16x64xf32>, vector<1x64xf32>, vector<7x64xf32> -> vector<24x64xf32>
    %16 = tpu.concatenate %12, %15 in 0 : vector<24x64xf32>, vector<24x64xf32> -> vector<48x64xf32>
    %c0_10 = arith.constant 0 : index
    %c0_11 = arith.constant 0 : index
    %17 = vector.load %arg1[%c0_10, %c0_11] : memref<48x48xf32, #tpu.memory_space<vmem>>, vector<48x48xf32>
    %c0_12 = arith.constant 0 : index
    %c0_13 = arith.constant 0 : index
    %c0_14 = arith.constant 0 : index
    %18 = vector.load %arg6[%c0_12, %c0_13, %c0_14] : memref<2x1x64xf32, #tpu.memory_space<vmem>>, vector<1x1x64xf32>
    %19 = vector.shape_cast %18 : vector<1x1x64xf32> to vector<1x64xf32>
    %c0_15 = arith.constant 0 : index
    %c0_16 = arith.constant 0 : index
    %c0_17 = arith.constant 0 : index
    %20 = vector.load %arg7[%c0_15, %c0_16, %c0_17] : memref<2x1x64xf32, #tpu.memory_space<vmem>>, vector<1x1x64xf32>
    %21 = vector.shape_cast %20 : vector<1x1x64xf32> to vector<1x64xf32>
    %cst_18 = arith.constant dense<0.000000e+00> : vector<48xf32>
    %22 = vector.multi_reduction <add>, %16, %cst_18 [1] : vector<48x64xf32> to vector<48xf32>
    %23 = vector.shape_cast %22 : vector<48xf32> to vector<48x1xf32>
    %cst_19 = arith.constant 6.400000e+01 : f32
    %24 = vector.broadcast %cst_19 : f32 to vector<48x1xf32>
    %25 = arith.divf %23, %24 : vector<48x1xf32>
    %26 = vector.broadcast %25 : vector<48x1xf32> to vector<48x64xf32>
    %27 = arith.subf %16, %26 : vector<48x64xf32>
    %28 = arith.mulf %27, %27 : vector<48x64xf32>
    %cst_20 = arith.constant dense<0.000000e+00> : vector<48xf32>
    %29 = vector.multi_reduction <add>, %28, %cst_20 [1] : vector<48x64xf32> to vector<48xf32>
    %30 = vector.shape_cast %29 : vector<48xf32> to vector<48x1xf32>
    %cst_21 = arith.constant 6.400000e+01 : f32
    %31 = vector.broadcast %cst_21 : f32 to vector<48x1xf32>
    %32 = arith.divf %30, %31 : vector<48x1xf32>
    %33 = vector.broadcast %25 : vector<48x1xf32> to vector<48x64xf32>
    %34 = arith.subf %16, %33 : vector<48x64xf32>
    %cst_22 = arith.constant 9.99999974E-6 : f32
    %35 = vector.broadcast %cst_22 : f32 to vector<48x1xf32>
    %36 = arith.addf %32, %35 : vector<48x1xf32>
    %37 = math.rsqrt %36 : vector<48x1xf32>
    %38 = vector.broadcast %37 : vector<48x1xf32> to vector<48x64xf32>
    %39 = arith.mulf %34, %38 : vector<48x64xf32>
    %40 = vector.broadcast %19 : vector<1x64xf32> to vector<48x64xf32>
    %41 = arith.mulf %39, %40 : vector<48x64xf32>
    %42 = vector.broadcast %21 : vector<1x64xf32> to vector<48x64xf32>
    %43 = arith.addf %41, %42 : vector<48x64xf32>
    %44 = arith.truncf %43 : vector<48x64xf32> to vector<48x64xbf16>
    %c0_23 = arith.constant 0 : index
    %c0_24 = arith.constant 0 : index
    %c0_25 = arith.constant 0 : index
    %45 = vector.load %arg8[%c0_23, %c0_24, %c0_25] : memref<2x64x192xbf16, #tpu.memory_space<vmem>>, vector<1x64x192xbf16>
    %46 = vector.shape_cast %45 : vector<1x64x192xbf16> to vector<64x192xbf16>
    %cst_26 = arith.constant dense<0.000000e+00> : vector<48x192xf32>
    %47 = tpu.matmul %44, %46, %cst_26 {dimension_numbers = #tpu.dot_dimension_numbers<[1], [0], [0], [1], [0, 0, 1, 1], [], []>} : vector<48x64xbf16>, vector<64x192xbf16>, vector<48x192xf32> -> vector<48x192xf32>
    %c0_27 = arith.constant 0 : index
    %c0_28 = arith.constant 0 : index
    %c0_29 = arith.constant 0 : index
    %48 = vector.load %arg9[%c0_27, %c0_28, %c0_29] : memref<2x1x192xf32, #tpu.memory_space<vmem>>, vector<1x1x192xf32>
    %49 = vector.shape_cast %48 : vector<1x1x192xf32> to vector<1x192xf32>
    %50 = vector.broadcast %49 : vector<1x192xf32> to vector<48x192xf32>
    %51 = arith.addf %47, %50 : vector<48x192xf32>
    %52 = vector.extract_strided_slice %51 {offsets = [0, 0], sizes = [48, 16], strides = [1, 1]} : vector<48x192xf32> to vector<48x16xf32>
    %cst_30 = arith.constant 2.500000e-01 : f32
    %53 = vector.broadcast %cst_30 : f32 to vector<48x16xf32>
    %54 = arith.mulf %52, %53 : vector<48x16xf32>
    %55 = vector.extract_strided_slice %51 {offsets = [0, 64], sizes = [48, 16], strides = [1, 1]} : vector<48x192xf32> to vector<48x16xf32>
    %56 = vector.extract_strided_slice %51 {offsets = [0, 128], sizes = [48, 16], strides = [1, 1]} : vector<48x192xf32> to vector<48x16xf32>
    %57 = arith.truncf %54 : vector<48x16xf32> to vector<48x16xbf16>
    %58 = arith.truncf %55 : vector<48x16xf32> to vector<48x16xbf16>
    %cst_31 = arith.constant dense<0.000000e+00> : vector<48x48xf32>
    %59 = tpu.matmul %57, %58, %cst_31 {dimension_numbers = #tpu.dot_dimension_numbers<[1], [1], [0], [0], [0, 0, 1, 0], [], []>} : vector<48x16xbf16>, vector<48x16xbf16>, vector<48x48xf32> -> vector<48x48xf32>
    %60 = arith.addf %59, %17 : vector<48x48xf32>
    %cst_32 = arith.constant dense<0xFF800000> : vector<48xf32>
    %61 = vector.multi_reduction <maximumf>, %60, %cst_32 [1] : vector<48x48xf32> to vector<48xf32>
    %62 = vector.shape_cast %61 : vector<48xf32> to vector<48x1xf32>
    %63 = vector.broadcast %62 : vector<48x1xf32> to vector<48x48xf32>
    %64 = arith.subf %60, %63 : vector<48x48xf32>
    %65 = math.exp %64 : vector<48x48xf32>
    %cst_33 = arith.constant dense<0.000000e+00> : vector<48xf32>
    %66 = vector.multi_reduction <add>, %65, %cst_33 [1] : vector<48x48xf32> to vector<48xf32>
    %67 = vector.shape_cast %66 : vector<48xf32> to vector<48x1xf32>
    %68 = tpu.reciprocal %67 {approx = true} : vector<48x1xf32> -> vector<48x1xf32>
    %69 = vector.broadcast %68 : vector<48x1xf32> to vector<48x48xf32>
    %70 = arith.mulf %65, %69 : vector<48x48xf32>
    %71 = arith.truncf %70 : vector<48x48xf32> to vector<48x48xbf16>
    %72 = arith.truncf %56 : vector<48x16xf32> to vector<48x16xbf16>
    %cst_34 = arith.constant dense<0.000000e+00> : vector<48x16xf32>
    %73 = tpu.matmul %71, %72, %cst_34 {dimension_numbers = #tpu.dot_dimension_numbers<[1], [0], [0], [1], [0, 0, 1, 1], [], []>} : vector<48x48xbf16>, vector<48x16xbf16>, vector<48x16xf32> -> vector<48x16xf32>
    %74 = vector.extract_strided_slice %51 {offsets = [0, 16], sizes = [48, 16], strides = [1, 1]} : vector<48x192xf32> to vector<48x16xf32>
    %cst_35 = arith.constant 2.500000e-01 : f32
    %75 = vector.broadcast %cst_35 : f32 to vector<48x16xf32>
    %76 = arith.mulf %74, %75 : vector<48x16xf32>
    %77 = vector.extract_strided_slice %51 {offsets = [0, 80], sizes = [48, 16], strides = [1, 1]} : vector<48x192xf32> to vector<48x16xf32>
    %78 = vector.extract_strided_slice %51 {offsets = [0, 144], sizes = [48, 16], strides = [1, 1]} : vector<48x192xf32> to vector<48x16xf32>
    %79 = arith.truncf %76 : vector<48x16xf32> to vector<48x16xbf16>
    %80 = arith.truncf %77 : vector<48x16xf32> to vector<48x16xbf16>
    %cst_36 = arith.constant dense<0.000000e+00> : vector<48x48xf32>
    %81 = tpu.matmul %79, %80, %cst_36 {dimension_numbers = #tpu.dot_dimension_numbers<[1], [1], [0], [0], [0, 0, 1, 0], [], []>} : vector<48x16xbf16>, vector<48x16xbf16>, vector<48x48xf32> -> vector<48x48xf32>
    %82 = arith.addf %81, %17 : vector<48x48xf32>
    %cst_37 = arith.constant dense<0xFF800000> : vector<48xf32>
    %83 = vector.multi_reduction <maximumf>, %82, %cst_37 [1] : vector<48x48xf32> to vector<48xf32>
    %84 = vector.shape_cast %83 : vector<48xf32> to vector<48x1xf32>
    %85 = vector.broadcast %84 : vector<48x1xf32> to vector<48x48xf32>
    %86 = arith.subf %82, %85 : vector<48x48xf32>
    %87 = math.exp %86 : vector<48x48xf32>
    %cst_38 = arith.constant dense<0.000000e+00> : vector<48xf32>
    %88 = vector.multi_reduction <add>, %87, %cst_38 [1] : vector<48x48xf32> to vector<48xf32>
    %89 = vector.shape_cast %88 : vector<48xf32> to vector<48x1xf32>
    %90 = tpu.reciprocal %89 {approx = true} : vector<48x1xf32> -> vector<48x1xf32>
    %91 = vector.broadcast %90 : vector<48x1xf32> to vector<48x48xf32>
    %92 = arith.mulf %87, %91 : vector<48x48xf32>
    %93 = arith.truncf %92 : vector<48x48xf32> to vector<48x48xbf16>
    %94 = arith.truncf %78 : vector<48x16xf32> to vector<48x16xbf16>
    %cst_39 = arith.constant dense<0.000000e+00> : vector<48x16xf32>
    %95 = tpu.matmul %93, %94, %cst_39 {dimension_numbers = #tpu.dot_dimension_numbers<[1], [0], [0], [1], [0, 0, 1, 1], [], []>} : vector<48x48xbf16>, vector<48x16xbf16>, vector<48x16xf32> -> vector<48x16xf32>
    %96 = vector.extract_strided_slice %51 {offsets = [0, 32], sizes = [48, 16], strides = [1, 1]} : vector<48x192xf32> to vector<48x16xf32>
    %cst_40 = arith.constant 2.500000e-01 : f32
    %97 = vector.broadcast %cst_40 : f32 to vector<48x16xf32>
    %98 = arith.mulf %96, %97 : vector<48x16xf32>
    %99 = vector.extract_strided_slice %51 {offsets = [0, 96], sizes = [48, 16], strides = [1, 1]} : vector<48x192xf32> to vector<48x16xf32>
    %100 = vector.extract_strided_slice %51 {offsets = [0, 160], sizes = [48, 16], strides = [1, 1]} : vector<48x192xf32> to vector<48x16xf32>
    %101 = arith.truncf %98 : vector<48x16xf32> to vector<48x16xbf16>
    %102 = arith.truncf %99 : vector<48x16xf32> to vector<48x16xbf16>
    %cst_41 = arith.constant dense<0.000000e+00> : vector<48x48xf32>
    %103 = tpu.matmul %101, %102, %cst_41 {dimension_numbers = #tpu.dot_dimension_numbers<[1], [1], [0], [0], [0, 0, 1, 0], [], []>} : vector<48x16xbf16>, vector<48x16xbf16>, vector<48x48xf32> -> vector<48x48xf32>
    %104 = arith.addf %103, %17 : vector<48x48xf32>
    %cst_42 = arith.constant dense<0xFF800000> : vector<48xf32>
    %105 = vector.multi_reduction <maximumf>, %104, %cst_42 [1] : vector<48x48xf32> to vector<48xf32>
    %106 = vector.shape_cast %105 : vector<48xf32> to vector<48x1xf32>
    %107 = vector.broadcast %106 : vector<48x1xf32> to vector<48x48xf32>
    %108 = arith.subf %104, %107 : vector<48x48xf32>
    %109 = math.exp %108 : vector<48x48xf32>
    %cst_43 = arith.constant dense<0.000000e+00> : vector<48xf32>
    %110 = vector.multi_reduction <add>, %109, %cst_43 [1] : vector<48x48xf32> to vector<48xf32>
    %111 = vector.shape_cast %110 : vector<48xf32> to vector<48x1xf32>
    %112 = tpu.reciprocal %111 {approx = true} : vector<48x1xf32> -> vector<48x1xf32>
    %113 = vector.broadcast %112 : vector<48x1xf32> to vector<48x48xf32>
    %114 = arith.mulf %109, %113 : vector<48x48xf32>
    %115 = arith.truncf %114 : vector<48x48xf32> to vector<48x48xbf16>
    %116 = arith.truncf %100 : vector<48x16xf32> to vector<48x16xbf16>
    %cst_44 = arith.constant dense<0.000000e+00> : vector<48x16xf32>
    %117 = tpu.matmul %115, %116, %cst_44 {dimension_numbers = #tpu.dot_dimension_numbers<[1], [0], [0], [1], [0, 0, 1, 1], [], []>} : vector<48x48xbf16>, vector<48x16xbf16>, vector<48x16xf32> -> vector<48x16xf32>
    %118 = vector.extract_strided_slice %51 {offsets = [0, 48], sizes = [48, 16], strides = [1, 1]} : vector<48x192xf32> to vector<48x16xf32>
    %cst_45 = arith.constant 2.500000e-01 : f32
    %119 = vector.broadcast %cst_45 : f32 to vector<48x16xf32>
    %120 = arith.mulf %118, %119 : vector<48x16xf32>
    %121 = vector.extract_strided_slice %51 {offsets = [0, 112], sizes = [48, 16], strides = [1, 1]} : vector<48x192xf32> to vector<48x16xf32>
    %122 = vector.extract_strided_slice %51 {offsets = [0, 176], sizes = [48, 16], strides = [1, 1]} : vector<48x192xf32> to vector<48x16xf32>
    %123 = arith.truncf %120 : vector<48x16xf32> to vector<48x16xbf16>
    %124 = arith.truncf %121 : vector<48x16xf32> to vector<48x16xbf16>
    %cst_46 = arith.constant dense<0.000000e+00> : vector<48x48xf32>
    %125 = tpu.matmul %123, %124, %cst_46 {dimension_numbers = #tpu.dot_dimension_numbers<[1], [1], [0], [0], [0, 0, 1, 0], [], []>} : vector<48x16xbf16>, vector<48x16xbf16>, vector<48x48xf32> -> vector<48x48xf32>
    %126 = arith.addf %125, %17 : vector<48x48xf32>
    %cst_47 = arith.constant dense<0xFF800000> : vector<48xf32>
    %127 = vector.multi_reduction <maximumf>, %126, %cst_47 [1] : vector<48x48xf32> to vector<48xf32>
    %128 = vector.shape_cast %127 : vector<48xf32> to vector<48x1xf32>
    %129 = vector.broadcast %128 : vector<48x1xf32> to vector<48x48xf32>
    %130 = arith.subf %126, %129 : vector<48x48xf32>
    %131 = math.exp %130 : vector<48x48xf32>
    %cst_48 = arith.constant dense<0.000000e+00> : vector<48xf32>
    %132 = vector.multi_reduction <add>, %131, %cst_48 [1] : vector<48x48xf32> to vector<48xf32>
    %133 = vector.shape_cast %132 : vector<48xf32> to vector<48x1xf32>
    %134 = tpu.reciprocal %133 {approx = true} : vector<48x1xf32> -> vector<48x1xf32>
    %135 = vector.broadcast %134 : vector<48x1xf32> to vector<48x48xf32>
    %136 = arith.mulf %131, %135 : vector<48x48xf32>
    %137 = arith.truncf %136 : vector<48x48xf32> to vector<48x48xbf16>
    %138 = arith.truncf %122 : vector<48x16xf32> to vector<48x16xbf16>
    %cst_49 = arith.constant dense<0.000000e+00> : vector<48x16xf32>
    %139 = tpu.matmul %137, %138, %cst_49 {dimension_numbers = #tpu.dot_dimension_numbers<[1], [0], [0], [1], [0, 0, 1, 1], [], []>} : vector<48x48xbf16>, vector<48x16xbf16>, vector<48x16xf32> -> vector<48x16xf32>
    %140 = tpu.concatenate %73, %95, %117, %139 in 1 : vector<48x16xf32>, vector<48x16xf32>, vector<48x16xf32>, vector<48x16xf32> -> vector<48x64xf32>
    %141 = arith.truncf %140 : vector<48x64xf32> to vector<48x64xbf16>
    %c0_50 = arith.constant 0 : index
    %c0_51 = arith.constant 0 : index
    %c0_52 = arith.constant 0 : index
    %142 = vector.load %arg10[%c0_50, %c0_51, %c0_52] : memref<2x64x64xbf16, #tpu.memory_space<vmem>>, vector<1x64x64xbf16>
    %143 = vector.shape_cast %142 : vector<1x64x64xbf16> to vector<64x64xbf16>
    %cst_53 = arith.constant dense<0.000000e+00> : vector<48x64xf32>
    %144 = tpu.matmul %141, %143, %cst_53 {dimension_numbers = #tpu.dot_dimension_numbers<[1], [0], [0], [1], [0, 0, 1, 1], [], []>} : vector<48x64xbf16>, vector<64x64xbf16>, vector<48x64xf32> -> vector<48x64xf32>
    %c0_54 = arith.constant 0 : index
    %c0_55 = arith.constant 0 : index
    %c0_56 = arith.constant 0 : index
    %145 = vector.load %arg11[%c0_54, %c0_55, %c0_56] : memref<2x1x64xf32, #tpu.memory_space<vmem>>, vector<1x1x64xf32>
    %146 = vector.shape_cast %145 : vector<1x1x64xf32> to vector<1x64xf32>
    %147 = vector.broadcast %146 : vector<1x64xf32> to vector<48x64xf32>
    %148 = arith.addf %144, %147 : vector<48x64xf32>
    %149 = arith.addf %16, %148 : vector<48x64xf32>
    %c0_57 = arith.constant 0 : index
    %c0_58 = arith.constant 0 : index
    %c0_59 = arith.constant 0 : index
    %150 = vector.load %arg12[%c0_57, %c0_58, %c0_59] : memref<2x1x64xf32, #tpu.memory_space<vmem>>, vector<1x1x64xf32>
    %151 = vector.shape_cast %150 : vector<1x1x64xf32> to vector<1x64xf32>
    %c0_60 = arith.constant 0 : index
    %c0_61 = arith.constant 0 : index
    %c0_62 = arith.constant 0 : index
    %152 = vector.load %arg13[%c0_60, %c0_61, %c0_62] : memref<2x1x64xf32, #tpu.memory_space<vmem>>, vector<1x1x64xf32>
    %153 = vector.shape_cast %152 : vector<1x1x64xf32> to vector<1x64xf32>
    %cst_63 = arith.constant dense<0.000000e+00> : vector<48xf32>
    %154 = vector.multi_reduction <add>, %149, %cst_63 [1] : vector<48x64xf32> to vector<48xf32>
    %155 = vector.shape_cast %154 : vector<48xf32> to vector<48x1xf32>
    %cst_64 = arith.constant 6.400000e+01 : f32
    %156 = vector.broadcast %cst_64 : f32 to vector<48x1xf32>
    %157 = arith.divf %155, %156 : vector<48x1xf32>
    %158 = vector.broadcast %157 : vector<48x1xf32> to vector<48x64xf32>
    %159 = arith.subf %149, %158 : vector<48x64xf32>
    %160 = arith.mulf %159, %159 : vector<48x64xf32>
    %cst_65 = arith.constant dense<0.000000e+00> : vector<48xf32>
    %161 = vector.multi_reduction <add>, %160, %cst_65 [1] : vector<48x64xf32> to vector<48xf32>
    %162 = vector.shape_cast %161 : vector<48xf32> to vector<48x1xf32>
    %cst_66 = arith.constant 6.400000e+01 : f32
    %163 = vector.broadcast %cst_66 : f32 to vector<48x1xf32>
    %164 = arith.divf %162, %163 : vector<48x1xf32>
    %165 = vector.broadcast %157 : vector<48x1xf32> to vector<48x64xf32>
    %166 = arith.subf %149, %165 : vector<48x64xf32>
    %cst_67 = arith.constant 9.99999974E-6 : f32
    %167 = vector.broadcast %cst_67 : f32 to vector<48x1xf32>
    %168 = arith.addf %164, %167 : vector<48x1xf32>
    %169 = math.rsqrt %168 : vector<48x1xf32>
    %170 = vector.broadcast %169 : vector<48x1xf32> to vector<48x64xf32>
    %171 = arith.mulf %166, %170 : vector<48x64xf32>
    %172 = vector.broadcast %151 : vector<1x64xf32> to vector<48x64xf32>
    %173 = arith.mulf %171, %172 : vector<48x64xf32>
    %174 = vector.broadcast %153 : vector<1x64xf32> to vector<48x64xf32>
    %175 = arith.addf %173, %174 : vector<48x64xf32>
    %176 = arith.truncf %175 : vector<48x64xf32> to vector<48x64xbf16>
    %c0_68 = arith.constant 0 : index
    %c0_69 = arith.constant 0 : index
    %c0_70 = arith.constant 0 : index
    %177 = vector.load %arg14[%c0_68, %c0_69, %c0_70] : memref<2x64x128xbf16, #tpu.memory_space<vmem>>, vector<1x64x128xbf16>
    %178 = vector.shape_cast %177 : vector<1x64x128xbf16> to vector<64x128xbf16>
    %cst_71 = arith.constant dense<0.000000e+00> : vector<48x128xf32>
    %179 = tpu.matmul %176, %178, %cst_71 {dimension_numbers = #tpu.dot_dimension_numbers<[1], [0], [0], [1], [0, 0, 1, 1], [], []>} : vector<48x64xbf16>, vector<64x128xbf16>, vector<48x128xf32> -> vector<48x128xf32>
    %c0_72 = arith.constant 0 : index
    %c0_73 = arith.constant 0 : index
    %c0_74 = arith.constant 0 : index
    %180 = vector.load %arg15[%c0_72, %c0_73, %c0_74] : memref<2x1x128xf32, #tpu.memory_space<vmem>>, vector<1x1x128xf32>
    %181 = vector.shape_cast %180 : vector<1x1x128xf32> to vector<1x128xf32>
    %182 = vector.broadcast %181 : vector<1x128xf32> to vector<48x128xf32>
    %183 = arith.addf %179, %182 : vector<48x128xf32>
    %184 = arith.mulf %183, %183 : vector<48x128xf32>
    %185 = arith.mulf %183, %184 : vector<48x128xf32>
    %cst_75 = arith.constant 4.471500e-02 : f32
    %186 = vector.broadcast %cst_75 : f32 to vector<48x128xf32>
    %187 = arith.mulf %186, %185 : vector<48x128xf32>
    %188 = arith.addf %183, %187 : vector<48x128xf32>
    %cst_76 = arith.constant 0.797884583 : f32
    %189 = vector.broadcast %cst_76 : f32 to vector<48x128xf32>
    %190 = arith.mulf %189, %188 : vector<48x128xf32>
    %191 = math.tanh %190 : vector<48x128xf32>
    %cst_77 = arith.constant 1.000000e+00 : f32
    %192 = vector.broadcast %cst_77 : f32 to vector<48x128xf32>
    %193 = arith.addf %192, %191 : vector<48x128xf32>
    %cst_78 = arith.constant 5.000000e-01 : f32
    %194 = vector.broadcast %cst_78 : f32 to vector<48x128xf32>
    %195 = arith.mulf %194, %193 : vector<48x128xf32>
    %196 = arith.mulf %183, %195 : vector<48x128xf32>
    %197 = arith.truncf %196 : vector<48x128xf32> to vector<48x128xbf16>
    %c0_79 = arith.constant 0 : index
    %c0_80 = arith.constant 0 : index
    %c0_81 = arith.constant 0 : index
    %198 = vector.load %arg16[%c0_79, %c0_80, %c0_81] : memref<2x128x64xbf16, #tpu.memory_space<vmem>>, vector<1x128x64xbf16>
    %199 = vector.shape_cast %198 : vector<1x128x64xbf16> to vector<128x64xbf16>
    %cst_82 = arith.constant dense<0.000000e+00> : vector<48x64xf32>
    %200 = tpu.matmul %197, %199, %cst_82 {dimension_numbers = #tpu.dot_dimension_numbers<[1], [0], [0], [1], [0, 0, 1, 1], [], []>} : vector<48x128xbf16>, vector<128x64xbf16>, vector<48x64xf32> -> vector<48x64xf32>
    %c0_83 = arith.constant 0 : index
    %c0_84 = arith.constant 0 : index
    %c0_85 = arith.constant 0 : index
    %201 = vector.load %arg17[%c0_83, %c0_84, %c0_85] : memref<2x1x64xf32, #tpu.memory_space<vmem>>, vector<1x1x64xf32>
    %202 = vector.shape_cast %201 : vector<1x1x64xf32> to vector<1x64xf32>
    %203 = vector.broadcast %202 : vector<1x64xf32> to vector<48x64xf32>
    %204 = arith.addf %200, %203 : vector<48x64xf32>
    %205 = arith.addf %149, %204 : vector<48x64xf32>
    %c1 = arith.constant 1 : index
    %c0_86 = arith.constant 0 : index
    %c0_87 = arith.constant 0 : index
    %206 = vector.load %arg6[%c1, %c0_86, %c0_87] : memref<2x1x64xf32, #tpu.memory_space<vmem>>, vector<1x1x64xf32>
    %207 = vector.shape_cast %206 : vector<1x1x64xf32> to vector<1x64xf32>
    %c1_88 = arith.constant 1 : index
    %c0_89 = arith.constant 0 : index
    %c0_90 = arith.constant 0 : index
    %208 = vector.load %arg7[%c1_88, %c0_89, %c0_90] : memref<2x1x64xf32, #tpu.memory_space<vmem>>, vector<1x1x64xf32>
    %209 = vector.shape_cast %208 : vector<1x1x64xf32> to vector<1x64xf32>
    %cst_91 = arith.constant dense<0.000000e+00> : vector<48xf32>
    %210 = vector.multi_reduction <add>, %205, %cst_91 [1] : vector<48x64xf32> to vector<48xf32>
    %211 = vector.shape_cast %210 : vector<48xf32> to vector<48x1xf32>
    %cst_92 = arith.constant 6.400000e+01 : f32
    %212 = vector.broadcast %cst_92 : f32 to vector<48x1xf32>
    %213 = arith.divf %211, %212 : vector<48x1xf32>
    %214 = vector.broadcast %213 : vector<48x1xf32> to vector<48x64xf32>
    %215 = arith.subf %205, %214 : vector<48x64xf32>
    %216 = arith.mulf %215, %215 : vector<48x64xf32>
    %cst_93 = arith.constant dense<0.000000e+00> : vector<48xf32>
    %217 = vector.multi_reduction <add>, %216, %cst_93 [1] : vector<48x64xf32> to vector<48xf32>
    %218 = vector.shape_cast %217 : vector<48xf32> to vector<48x1xf32>
    %cst_94 = arith.constant 6.400000e+01 : f32
    %219 = vector.broadcast %cst_94 : f32 to vector<48x1xf32>
    %220 = arith.divf %218, %219 : vector<48x1xf32>
    %221 = vector.broadcast %213 : vector<48x1xf32> to vector<48x64xf32>
    %222 = arith.subf %205, %221 : vector<48x64xf32>
    %cst_95 = arith.constant 9.99999974E-6 : f32
    %223 = vector.broadcast %cst_95 : f32 to vector<48x1xf32>
    %224 = arith.addf %220, %223 : vector<48x1xf32>
    %225 = math.rsqrt %224 : vector<48x1xf32>
    %226 = vector.broadcast %225 : vector<48x1xf32> to vector<48x64xf32>
    %227 = arith.mulf %222, %226 : vector<48x64xf32>
    %228 = vector.broadcast %207 : vector<1x64xf32> to vector<48x64xf32>
    %229 = arith.mulf %227, %228 : vector<48x64xf32>
    %230 = vector.broadcast %209 : vector<1x64xf32> to vector<48x64xf32>
    %231 = arith.addf %229, %230 : vector<48x64xf32>
    %232 = arith.truncf %231 : vector<48x64xf32> to vector<48x64xbf16>
    %c1_96 = arith.constant 1 : index
    %c0_97 = arith.constant 0 : index
    %c0_98 = arith.constant 0 : index
    %233 = vector.load %arg8[%c1_96, %c0_97, %c0_98] : memref<2x64x192xbf16, #tpu.memory_space<vmem>>, vector<1x64x192xbf16>
    %234 = vector.shape_cast %233 : vector<1x64x192xbf16> to vector<64x192xbf16>
    %cst_99 = arith.constant dense<0.000000e+00> : vector<48x192xf32>
    %235 = tpu.matmul %232, %234, %cst_99 {dimension_numbers = #tpu.dot_dimension_numbers<[1], [0], [0], [1], [0, 0, 1, 1], [], []>} : vector<48x64xbf16>, vector<64x192xbf16>, vector<48x192xf32> -> vector<48x192xf32>
    %c1_100 = arith.constant 1 : index
    %c0_101 = arith.constant 0 : index
    %c0_102 = arith.constant 0 : index
    %236 = vector.load %arg9[%c1_100, %c0_101, %c0_102] : memref<2x1x192xf32, #tpu.memory_space<vmem>>, vector<1x1x192xf32>
    %237 = vector.shape_cast %236 : vector<1x1x192xf32> to vector<1x192xf32>
    %238 = vector.broadcast %237 : vector<1x192xf32> to vector<48x192xf32>
    %239 = arith.addf %235, %238 : vector<48x192xf32>
    %240 = vector.extract_strided_slice %239 {offsets = [0, 0], sizes = [48, 16], strides = [1, 1]} : vector<48x192xf32> to vector<48x16xf32>
    %cst_103 = arith.constant 2.500000e-01 : f32
    %241 = vector.broadcast %cst_103 : f32 to vector<48x16xf32>
    %242 = arith.mulf %240, %241 : vector<48x16xf32>
    %243 = vector.extract_strided_slice %239 {offsets = [0, 64], sizes = [48, 16], strides = [1, 1]} : vector<48x192xf32> to vector<48x16xf32>
    %244 = vector.extract_strided_slice %239 {offsets = [0, 128], sizes = [48, 16], strides = [1, 1]} : vector<48x192xf32> to vector<48x16xf32>
    %245 = arith.truncf %242 : vector<48x16xf32> to vector<48x16xbf16>
    %246 = arith.truncf %243 : vector<48x16xf32> to vector<48x16xbf16>
    %cst_104 = arith.constant dense<0.000000e+00> : vector<48x48xf32>
    %247 = tpu.matmul %245, %246, %cst_104 {dimension_numbers = #tpu.dot_dimension_numbers<[1], [1], [0], [0], [0, 0, 1, 0], [], []>} : vector<48x16xbf16>, vector<48x16xbf16>, vector<48x48xf32> -> vector<48x48xf32>
    %248 = arith.addf %247, %17 : vector<48x48xf32>
    %cst_105 = arith.constant dense<0xFF800000> : vector<48xf32>
    %249 = vector.multi_reduction <maximumf>, %248, %cst_105 [1] : vector<48x48xf32> to vector<48xf32>
    %250 = vector.shape_cast %249 : vector<48xf32> to vector<48x1xf32>
    %251 = vector.broadcast %250 : vector<48x1xf32> to vector<48x48xf32>
    %252 = arith.subf %248, %251 : vector<48x48xf32>
    %253 = math.exp %252 : vector<48x48xf32>
    %cst_106 = arith.constant dense<0.000000e+00> : vector<48xf32>
    %254 = vector.multi_reduction <add>, %253, %cst_106 [1] : vector<48x48xf32> to vector<48xf32>
    %255 = vector.shape_cast %254 : vector<48xf32> to vector<48x1xf32>
    %256 = tpu.reciprocal %255 {approx = true} : vector<48x1xf32> -> vector<48x1xf32>
    %257 = vector.broadcast %256 : vector<48x1xf32> to vector<48x48xf32>
    %258 = arith.mulf %253, %257 : vector<48x48xf32>
    %259 = arith.truncf %258 : vector<48x48xf32> to vector<48x48xbf16>
    %260 = arith.truncf %244 : vector<48x16xf32> to vector<48x16xbf16>
    %cst_107 = arith.constant dense<0.000000e+00> : vector<48x16xf32>
    %261 = tpu.matmul %259, %260, %cst_107 {dimension_numbers = #tpu.dot_dimension_numbers<[1], [0], [0], [1], [0, 0, 1, 1], [], []>} : vector<48x48xbf16>, vector<48x16xbf16>, vector<48x16xf32> -> vector<48x16xf32>
    %262 = vector.extract_strided_slice %239 {offsets = [0, 16], sizes = [48, 16], strides = [1, 1]} : vector<48x192xf32> to vector<48x16xf32>
    %cst_108 = arith.constant 2.500000e-01 : f32
    %263 = vector.broadcast %cst_108 : f32 to vector<48x16xf32>
    %264 = arith.mulf %262, %263 : vector<48x16xf32>
    %265 = vector.extract_strided_slice %239 {offsets = [0, 80], sizes = [48, 16], strides = [1, 1]} : vector<48x192xf32> to vector<48x16xf32>
    %266 = vector.extract_strided_slice %239 {offsets = [0, 144], sizes = [48, 16], strides = [1, 1]} : vector<48x192xf32> to vector<48x16xf32>
    %267 = arith.truncf %264 : vector<48x16xf32> to vector<48x16xbf16>
    %268 = arith.truncf %265 : vector<48x16xf32> to vector<48x16xbf16>
    %cst_109 = arith.constant dense<0.000000e+00> : vector<48x48xf32>
    %269 = tpu.matmul %267, %268, %cst_109 {dimension_numbers = #tpu.dot_dimension_numbers<[1], [1], [0], [0], [0, 0, 1, 0], [], []>} : vector<48x16xbf16>, vector<48x16xbf16>, vector<48x48xf32> -> vector<48x48xf32>
    %270 = arith.addf %269, %17 : vector<48x48xf32>
    %cst_110 = arith.constant dense<0xFF800000> : vector<48xf32>
    %271 = vector.multi_reduction <maximumf>, %270, %cst_110 [1] : vector<48x48xf32> to vector<48xf32>
    %272 = vector.shape_cast %271 : vector<48xf32> to vector<48x1xf32>
    %273 = vector.broadcast %272 : vector<48x1xf32> to vector<48x48xf32>
    %274 = arith.subf %270, %273 : vector<48x48xf32>
    %275 = math.exp %274 : vector<48x48xf32>
    %cst_111 = arith.constant dense<0.000000e+00> : vector<48xf32>
    %276 = vector.multi_reduction <add>, %275, %cst_111 [1] : vector<48x48xf32> to vector<48xf32>
    %277 = vector.shape_cast %276 : vector<48xf32> to vector<48x1xf32>
    %278 = tpu.reciprocal %277 {approx = true} : vector<48x1xf32> -> vector<48x1xf32>
    %279 = vector.broadcast %278 : vector<48x1xf32> to vector<48x48xf32>
    %280 = arith.mulf %275, %279 : vector<48x48xf32>
    %281 = arith.truncf %280 : vector<48x48xf32> to vector<48x48xbf16>
    %282 = arith.truncf %266 : vector<48x16xf32> to vector<48x16xbf16>
    %cst_112 = arith.constant dense<0.000000e+00> : vector<48x16xf32>
    %283 = tpu.matmul %281, %282, %cst_112 {dimension_numbers = #tpu.dot_dimension_numbers<[1], [0], [0], [1], [0, 0, 1, 1], [], []>} : vector<48x48xbf16>, vector<48x16xbf16>, vector<48x16xf32> -> vector<48x16xf32>
    %284 = vector.extract_strided_slice %239 {offsets = [0, 32], sizes = [48, 16], strides = [1, 1]} : vector<48x192xf32> to vector<48x16xf32>
    %cst_113 = arith.constant 2.500000e-01 : f32
    %285 = vector.broadcast %cst_113 : f32 to vector<48x16xf32>
    %286 = arith.mulf %284, %285 : vector<48x16xf32>
    %287 = vector.extract_strided_slice %239 {offsets = [0, 96], sizes = [48, 16], strides = [1, 1]} : vector<48x192xf32> to vector<48x16xf32>
    %288 = vector.extract_strided_slice %239 {offsets = [0, 160], sizes = [48, 16], strides = [1, 1]} : vector<48x192xf32> to vector<48x16xf32>
    %289 = arith.truncf %286 : vector<48x16xf32> to vector<48x16xbf16>
    %290 = arith.truncf %287 : vector<48x16xf32> to vector<48x16xbf16>
    %cst_114 = arith.constant dense<0.000000e+00> : vector<48x48xf32>
    %291 = tpu.matmul %289, %290, %cst_114 {dimension_numbers = #tpu.dot_dimension_numbers<[1], [1], [0], [0], [0, 0, 1, 0], [], []>} : vector<48x16xbf16>, vector<48x16xbf16>, vector<48x48xf32> -> vector<48x48xf32>
    %292 = arith.addf %291, %17 : vector<48x48xf32>
    %cst_115 = arith.constant dense<0xFF800000> : vector<48xf32>
    %293 = vector.multi_reduction <maximumf>, %292, %cst_115 [1] : vector<48x48xf32> to vector<48xf32>
    %294 = vector.shape_cast %293 : vector<48xf32> to vector<48x1xf32>
    %295 = vector.broadcast %294 : vector<48x1xf32> to vector<48x48xf32>
    %296 = arith.subf %292, %295 : vector<48x48xf32>
    %297 = math.exp %296 : vector<48x48xf32>
    %cst_116 = arith.constant dense<0.000000e+00> : vector<48xf32>
    %298 = vector.multi_reduction <add>, %297, %cst_116 [1] : vector<48x48xf32> to vector<48xf32>
    %299 = vector.shape_cast %298 : vector<48xf32> to vector<48x1xf32>
    %300 = tpu.reciprocal %299 {approx = true} : vector<48x1xf32> -> vector<48x1xf32>
    %301 = vector.broadcast %300 : vector<48x1xf32> to vector<48x48xf32>
    %302 = arith.mulf %297, %301 : vector<48x48xf32>
    %303 = arith.truncf %302 : vector<48x48xf32> to vector<48x48xbf16>
    %304 = arith.truncf %288 : vector<48x16xf32> to vector<48x16xbf16>
    %cst_117 = arith.constant dense<0.000000e+00> : vector<48x16xf32>
    %305 = tpu.matmul %303, %304, %cst_117 {dimension_numbers = #tpu.dot_dimension_numbers<[1], [0], [0], [1], [0, 0, 1, 1], [], []>} : vector<48x48xbf16>, vector<48x16xbf16>, vector<48x16xf32> -> vector<48x16xf32>
    %306 = vector.extract_strided_slice %239 {offsets = [0, 48], sizes = [48, 16], strides = [1, 1]} : vector<48x192xf32> to vector<48x16xf32>
    %cst_118 = arith.constant 2.500000e-01 : f32
    %307 = vector.broadcast %cst_118 : f32 to vector<48x16xf32>
    %308 = arith.mulf %306, %307 : vector<48x16xf32>
    %309 = vector.extract_strided_slice %239 {offsets = [0, 112], sizes = [48, 16], strides = [1, 1]} : vector<48x192xf32> to vector<48x16xf32>
    %310 = vector.extract_strided_slice %239 {offsets = [0, 176], sizes = [48, 16], strides = [1, 1]} : vector<48x192xf32> to vector<48x16xf32>
    %311 = arith.truncf %308 : vector<48x16xf32> to vector<48x16xbf16>
    %312 = arith.truncf %309 : vector<48x16xf32> to vector<48x16xbf16>
    %cst_119 = arith.constant dense<0.000000e+00> : vector<48x48xf32>
    %313 = tpu.matmul %311, %312, %cst_119 {dimension_numbers = #tpu.dot_dimension_numbers<[1], [1], [0], [0], [0, 0, 1, 0], [], []>} : vector<48x16xbf16>, vector<48x16xbf16>, vector<48x48xf32> -> vector<48x48xf32>
    %314 = arith.addf %313, %17 : vector<48x48xf32>
    %cst_120 = arith.constant dense<0xFF800000> : vector<48xf32>
    %315 = vector.multi_reduction <maximumf>, %314, %cst_120 [1] : vector<48x48xf32> to vector<48xf32>
    %316 = vector.shape_cast %315 : vector<48xf32> to vector<48x1xf32>
    %317 = vector.broadcast %316 : vector<48x1xf32> to vector<48x48xf32>
    %318 = arith.subf %314, %317 : vector<48x48xf32>
    %319 = math.exp %318 : vector<48x48xf32>
    %cst_121 = arith.constant dense<0.000000e+00> : vector<48xf32>
    %320 = vector.multi_reduction <add>, %319, %cst_121 [1] : vector<48x48xf32> to vector<48xf32>
    %321 = vector.shape_cast %320 : vector<48xf32> to vector<48x1xf32>
    %322 = tpu.reciprocal %321 {approx = true} : vector<48x1xf32> -> vector<48x1xf32>
    %323 = vector.broadcast %322 : vector<48x1xf32> to vector<48x48xf32>
    %324 = arith.mulf %319, %323 : vector<48x48xf32>
    %325 = arith.truncf %324 : vector<48x48xf32> to vector<48x48xbf16>
    %326 = arith.truncf %310 : vector<48x16xf32> to vector<48x16xbf16>
    %cst_122 = arith.constant dense<0.000000e+00> : vector<48x16xf32>
    %327 = tpu.matmul %325, %326, %cst_122 {dimension_numbers = #tpu.dot_dimension_numbers<[1], [0], [0], [1], [0, 0, 1, 1], [], []>} : vector<48x48xbf16>, vector<48x16xbf16>, vector<48x16xf32> -> vector<48x16xf32>
    %328 = tpu.concatenate %261, %283, %305, %327 in 1 : vector<48x16xf32>, vector<48x16xf32>, vector<48x16xf32>, vector<48x16xf32> -> vector<48x64xf32>
    %329 = arith.truncf %328 : vector<48x64xf32> to vector<48x64xbf16>
    %c1_123 = arith.constant 1 : index
    %c0_124 = arith.constant 0 : index
    %c0_125 = arith.constant 0 : index
    %330 = vector.load %arg10[%c1_123, %c0_124, %c0_125] : memref<2x64x64xbf16, #tpu.memory_space<vmem>>, vector<1x64x64xbf16>
    %331 = vector.shape_cast %330 : vector<1x64x64xbf16> to vector<64x64xbf16>
    %cst_126 = arith.constant dense<0.000000e+00> : vector<48x64xf32>
    %332 = tpu.matmul %329, %331, %cst_126 {dimension_numbers = #tpu.dot_dimension_numbers<[1], [0], [0], [1], [0, 0, 1, 1], [], []>} : vector<48x64xbf16>, vector<64x64xbf16>, vector<48x64xf32> -> vector<48x64xf32>
    %c1_127 = arith.constant 1 : index
    %c0_128 = arith.constant 0 : index
    %c0_129 = arith.constant 0 : index
    %333 = vector.load %arg11[%c1_127, %c0_128, %c0_129] : memref<2x1x64xf32, #tpu.memory_space<vmem>>, vector<1x1x64xf32>
    %334 = vector.shape_cast %333 : vector<1x1x64xf32> to vector<1x64xf32>
    %335 = vector.broadcast %334 : vector<1x64xf32> to vector<48x64xf32>
    %336 = arith.addf %332, %335 : vector<48x64xf32>
    %337 = arith.addf %205, %336 : vector<48x64xf32>
    %c1_130 = arith.constant 1 : index
    %c0_131 = arith.constant 0 : index
    %c0_132 = arith.constant 0 : index
    %338 = vector.load %arg12[%c1_130, %c0_131, %c0_132] : memref<2x1x64xf32, #tpu.memory_space<vmem>>, vector<1x1x64xf32>
    %339 = vector.shape_cast %338 : vector<1x1x64xf32> to vector<1x64xf32>
    %c1_133 = arith.constant 1 : index
    %c0_134 = arith.constant 0 : index
    %c0_135 = arith.constant 0 : index
    %340 = vector.load %arg13[%c1_133, %c0_134, %c0_135] : memref<2x1x64xf32, #tpu.memory_space<vmem>>, vector<1x1x64xf32>
    %341 = vector.shape_cast %340 : vector<1x1x64xf32> to vector<1x64xf32>
    %cst_136 = arith.constant dense<0.000000e+00> : vector<48xf32>
    %342 = vector.multi_reduction <add>, %337, %cst_136 [1] : vector<48x64xf32> to vector<48xf32>
    %343 = vector.shape_cast %342 : vector<48xf32> to vector<48x1xf32>
    %cst_137 = arith.constant 6.400000e+01 : f32
    %344 = vector.broadcast %cst_137 : f32 to vector<48x1xf32>
    %345 = arith.divf %343, %344 : vector<48x1xf32>
    %346 = vector.broadcast %345 : vector<48x1xf32> to vector<48x64xf32>
    %347 = arith.subf %337, %346 : vector<48x64xf32>
    %348 = arith.mulf %347, %347 : vector<48x64xf32>
    %cst_138 = arith.constant dense<0.000000e+00> : vector<48xf32>
    %349 = vector.multi_reduction <add>, %348, %cst_138 [1] : vector<48x64xf32> to vector<48xf32>
    %350 = vector.shape_cast %349 : vector<48xf32> to vector<48x1xf32>
    %cst_139 = arith.constant 6.400000e+01 : f32
    %351 = vector.broadcast %cst_139 : f32 to vector<48x1xf32>
    %352 = arith.divf %350, %351 : vector<48x1xf32>
    %353 = vector.broadcast %345 : vector<48x1xf32> to vector<48x64xf32>
    %354 = arith.subf %337, %353 : vector<48x64xf32>
    %cst_140 = arith.constant 9.99999974E-6 : f32
    %355 = vector.broadcast %cst_140 : f32 to vector<48x1xf32>
    %356 = arith.addf %352, %355 : vector<48x1xf32>
    %357 = math.rsqrt %356 : vector<48x1xf32>
    %358 = vector.broadcast %357 : vector<48x1xf32> to vector<48x64xf32>
    %359 = arith.mulf %354, %358 : vector<48x64xf32>
    %360 = vector.broadcast %339 : vector<1x64xf32> to vector<48x64xf32>
    %361 = arith.mulf %359, %360 : vector<48x64xf32>
    %362 = vector.broadcast %341 : vector<1x64xf32> to vector<48x64xf32>
    %363 = arith.addf %361, %362 : vector<48x64xf32>
    %364 = arith.truncf %363 : vector<48x64xf32> to vector<48x64xbf16>
    %c1_141 = arith.constant 1 : index
    %c0_142 = arith.constant 0 : index
    %c0_143 = arith.constant 0 : index
    %365 = vector.load %arg14[%c1_141, %c0_142, %c0_143] : memref<2x64x128xbf16, #tpu.memory_space<vmem>>, vector<1x64x128xbf16>
    %366 = vector.shape_cast %365 : vector<1x64x128xbf16> to vector<64x128xbf16>
    %cst_144 = arith.constant dense<0.000000e+00> : vector<48x128xf32>
    %367 = tpu.matmul %364, %366, %cst_144 {dimension_numbers = #tpu.dot_dimension_numbers<[1], [0], [0], [1], [0, 0, 1, 1], [], []>} : vector<48x64xbf16>, vector<64x128xbf16>, vector<48x128xf32> -> vector<48x128xf32>
    %c1_145 = arith.constant 1 : index
    %c0_146 = arith.constant 0 : index
    %c0_147 = arith.constant 0 : index
    %368 = vector.load %arg15[%c1_145, %c0_146, %c0_147] : memref<2x1x128xf32, #tpu.memory_space<vmem>>, vector<1x1x128xf32>
    %369 = vector.shape_cast %368 : vector<1x1x128xf32> to vector<1x128xf32>
    %370 = vector.broadcast %369 : vector<1x128xf32> to vector<48x128xf32>
    %371 = arith.addf %367, %370 : vector<48x128xf32>
    %372 = arith.mulf %371, %371 : vector<48x128xf32>
    %373 = arith.mulf %371, %372 : vector<48x128xf32>
    %cst_148 = arith.constant 4.471500e-02 : f32
    %374 = vector.broadcast %cst_148 : f32 to vector<48x128xf32>
    %375 = arith.mulf %374, %373 : vector<48x128xf32>
    %376 = arith.addf %371, %375 : vector<48x128xf32>
    %cst_149 = arith.constant 0.797884583 : f32
    %377 = vector.broadcast %cst_149 : f32 to vector<48x128xf32>
    %378 = arith.mulf %377, %376 : vector<48x128xf32>
    %379 = math.tanh %378 : vector<48x128xf32>
    %cst_150 = arith.constant 1.000000e+00 : f32
    %380 = vector.broadcast %cst_150 : f32 to vector<48x128xf32>
    %381 = arith.addf %380, %379 : vector<48x128xf32>
    %cst_151 = arith.constant 5.000000e-01 : f32
    %382 = vector.broadcast %cst_151 : f32 to vector<48x128xf32>
    %383 = arith.mulf %382, %381 : vector<48x128xf32>
    %384 = arith.mulf %371, %383 : vector<48x128xf32>
    %385 = arith.truncf %384 : vector<48x128xf32> to vector<48x128xbf16>
    %c1_152 = arith.constant 1 : index
    %c0_153 = arith.constant 0 : index
    %c0_154 = arith.constant 0 : index
    %386 = vector.load %arg16[%c1_152, %c0_153, %c0_154] : memref<2x128x64xbf16, #tpu.memory_space<vmem>>, vector<1x128x64xbf16>
    %387 = vector.shape_cast %386 : vector<1x128x64xbf16> to vector<128x64xbf16>
    %cst_155 = arith.constant dense<0.000000e+00> : vector<48x64xf32>
    %388 = tpu.matmul %385, %387, %cst_155 {dimension_numbers = #tpu.dot_dimension_numbers<[1], [0], [0], [1], [0, 0, 1, 1], [], []>} : vector<48x128xbf16>, vector<128x64xbf16>, vector<48x64xf32> -> vector<48x64xf32>
    %c1_156 = arith.constant 1 : index
    %c0_157 = arith.constant 0 : index
    %c0_158 = arith.constant 0 : index
    %389 = vector.load %arg17[%c1_156, %c0_157, %c0_158] : memref<2x1x64xf32, #tpu.memory_space<vmem>>, vector<1x1x64xf32>
    %390 = vector.shape_cast %389 : vector<1x1x64xf32> to vector<1x64xf32>
    %391 = vector.broadcast %390 : vector<1x64xf32> to vector<48x64xf32>
    %392 = arith.addf %388, %391 : vector<48x64xf32>
    %393 = arith.addf %337, %392 : vector<48x64xf32>
    %c0_159 = arith.constant 0 : index
    %c0_160 = arith.constant 0 : index
    %394 = vector.load %arg18[%c0_159, %c0_160] : memref<1x64xf32, #tpu.memory_space<vmem>>, vector<1x64xf32>
    %c0_161 = arith.constant 0 : index
    %c0_162 = arith.constant 0 : index
    %395 = vector.load %arg19[%c0_161, %c0_162] : memref<1x64xf32, #tpu.memory_space<vmem>>, vector<1x64xf32>
    %396 = vector.extract_strided_slice %393 {offsets = [0, 0], sizes = [16, 64], strides = [1, 1]} : vector<48x64xf32> to vector<16x64xf32>
    %cst_163 = arith.constant dense<0.000000e+00> : vector<16xf32>
    %397 = vector.multi_reduction <add>, %396, %cst_163 [1] : vector<16x64xf32> to vector<16xf32>
    %398 = vector.shape_cast %397 : vector<16xf32> to vector<16x1xf32>
    %cst_164 = arith.constant 6.400000e+01 : f32
    %399 = vector.broadcast %cst_164 : f32 to vector<16x1xf32>
    %400 = arith.divf %398, %399 : vector<16x1xf32>
    %401 = vector.broadcast %400 : vector<16x1xf32> to vector<16x64xf32>
    %402 = arith.subf %396, %401 : vector<16x64xf32>
    %403 = arith.mulf %402, %402 : vector<16x64xf32>
    %cst_165 = arith.constant dense<0.000000e+00> : vector<16xf32>
    %404 = vector.multi_reduction <add>, %403, %cst_165 [1] : vector<16x64xf32> to vector<16xf32>
    %405 = vector.shape_cast %404 : vector<16xf32> to vector<16x1xf32>
    %cst_166 = arith.constant 6.400000e+01 : f32
    %406 = vector.broadcast %cst_166 : f32 to vector<16x1xf32>
    %407 = arith.divf %405, %406 : vector<16x1xf32>
    %408 = vector.broadcast %400 : vector<16x1xf32> to vector<16x64xf32>
    %409 = arith.subf %396, %408 : vector<16x64xf32>
    %cst_167 = arith.constant 9.99999974E-6 : f32
    %410 = vector.broadcast %cst_167 : f32 to vector<16x1xf32>
    %411 = arith.addf %407, %410 : vector<16x1xf32>
    %412 = math.rsqrt %411 : vector<16x1xf32>
    %413 = vector.broadcast %412 : vector<16x1xf32> to vector<16x64xf32>
    %414 = arith.mulf %409, %413 : vector<16x64xf32>
    %415 = vector.broadcast %394 : vector<1x64xf32> to vector<16x64xf32>
    %416 = arith.mulf %414, %415 : vector<16x64xf32>
    %417 = vector.broadcast %395 : vector<1x64xf32> to vector<16x64xf32>
    %418 = arith.addf %416, %417 : vector<16x64xf32>
    %419 = vector.extract_strided_slice %393 {offsets = [24, 0], sizes = [16, 64], strides = [1, 1]} : vector<48x64xf32> to vector<16x64xf32>
    %cst_168 = arith.constant dense<0.000000e+00> : vector<16xf32>
    %420 = vector.multi_reduction <add>, %419, %cst_168 [1] : vector<16x64xf32> to vector<16xf32>
    %421 = vector.shape_cast %420 : vector<16xf32> to vector<16x1xf32>
    %cst_169 = arith.constant 6.400000e+01 : f32
    %422 = vector.broadcast %cst_169 : f32 to vector<16x1xf32>
    %423 = arith.divf %421, %422 : vector<16x1xf32>
    %424 = vector.broadcast %423 : vector<16x1xf32> to vector<16x64xf32>
    %425 = arith.subf %419, %424 : vector<16x64xf32>
    %426 = arith.mulf %425, %425 : vector<16x64xf32>
    %cst_170 = arith.constant dense<0.000000e+00> : vector<16xf32>
    %427 = vector.multi_reduction <add>, %426, %cst_170 [1] : vector<16x64xf32> to vector<16xf32>
    %428 = vector.shape_cast %427 : vector<16xf32> to vector<16x1xf32>
    %cst_171 = arith.constant 6.400000e+01 : f32
    %429 = vector.broadcast %cst_171 : f32 to vector<16x1xf32>
    %430 = arith.divf %428, %429 : vector<16x1xf32>
    %431 = vector.broadcast %423 : vector<16x1xf32> to vector<16x64xf32>
    %432 = arith.subf %419, %431 : vector<16x64xf32>
    %cst_172 = arith.constant 9.99999974E-6 : f32
    %433 = vector.broadcast %cst_172 : f32 to vector<16x1xf32>
    %434 = arith.addf %430, %433 : vector<16x1xf32>
    %435 = math.rsqrt %434 : vector<16x1xf32>
    %436 = vector.broadcast %435 : vector<16x1xf32> to vector<16x64xf32>
    %437 = arith.mulf %432, %436 : vector<16x64xf32>
    %438 = vector.broadcast %394 : vector<1x64xf32> to vector<16x64xf32>
    %439 = arith.mulf %437, %438 : vector<16x64xf32>
    %440 = vector.broadcast %395 : vector<1x64xf32> to vector<16x64xf32>
    %441 = arith.addf %439, %440 : vector<16x64xf32>
    %cst_173 = arith.constant dense<0.000000e+00> : vector<16xf32>
    %442 = vector.multi_reduction <add>, %418, %cst_173 [1] : vector<16x64xf32> to vector<16xf32>
    %443 = vector.shape_cast %442 : vector<16xf32> to vector<16x1xf32>
    %cst_174 = arith.constant 0.000000e+00 : f32
    %444 = vector.broadcast %cst_174 : f32 to vector<16x1xf32>
    %445 = arith.addf %444, %443 : vector<16x1xf32>
    %cst_175 = arith.constant dense<0.000000e+00> : vector<16xf32>
    %446 = vector.multi_reduction <add>, %441, %cst_175 [1] : vector<16x64xf32> to vector<16xf32>
    %447 = vector.shape_cast %446 : vector<16xf32> to vector<16x1xf32>
    %448 = arith.addf %445, %447 : vector<16x1xf32>
    %cst_176 = arith.constant 7.812500e-03 : f32
    %449 = vector.broadcast %cst_176 : f32 to vector<16x1xf32>
    %450 = arith.mulf %448, %449 : vector<16x1xf32>
    %451 = vector.broadcast %450 : vector<16x1xf32> to vector<16x64xf32>
    %452 = arith.subf %418, %451 : vector<16x64xf32>
    %453 = arith.mulf %452, %452 : vector<16x64xf32>
    %cst_177 = arith.constant dense<0.000000e+00> : vector<16xf32>
    %454 = vector.multi_reduction <add>, %453, %cst_177 [1] : vector<16x64xf32> to vector<16xf32>
    %455 = vector.shape_cast %454 : vector<16xf32> to vector<16x1xf32>
    %cst_178 = arith.constant 0.000000e+00 : f32
    %456 = vector.broadcast %cst_178 : f32 to vector<16x1xf32>
    %457 = arith.addf %456, %455 : vector<16x1xf32>
    %458 = vector.broadcast %450 : vector<16x1xf32> to vector<16x64xf32>
    %459 = arith.subf %441, %458 : vector<16x64xf32>
    %460 = arith.mulf %459, %459 : vector<16x64xf32>
    %cst_179 = arith.constant dense<0.000000e+00> : vector<16xf32>
    %461 = vector.multi_reduction <add>, %460, %cst_179 [1] : vector<16x64xf32> to vector<16xf32>
    %462 = vector.shape_cast %461 : vector<16xf32> to vector<16x1xf32>
    %463 = arith.addf %457, %462 : vector<16x1xf32>
    %cst_180 = arith.constant 7.812500e-03 : f32
    %464 = vector.broadcast %cst_180 : f32 to vector<16x1xf32>
    %465 = arith.mulf %463, %464 : vector<16x1xf32>
    %cst_181 = arith.constant 9.99999974E-6 : f32
    %466 = vector.broadcast %cst_181 : f32 to vector<16x1xf32>
    %467 = arith.addf %465, %466 : vector<16x1xf32>
    %468 = math.rsqrt %467 : vector<16x1xf32>
    %c0_182 = arith.constant 0 : index
    %c0_183 = arith.constant 0 : index
    %469 = vector.load %arg20[%c0_182, %c0_183] : memref<16x1xf32, #tpu.memory_space<vmem>>, vector<16x1xf32>
    %c0_184 = arith.constant 0 : index
    %c0_185 = arith.constant 0 : index
    %470 = vector.load %arg21[%c0_184, %c0_185] : memref<16x1xf32, #tpu.memory_space<vmem>>, vector<16x1xf32>
    %471 = vector.broadcast %450 : vector<16x1xf32> to vector<16x64xf32>
    %472 = arith.subf %418, %471 : vector<16x64xf32>
    %473 = vector.broadcast %468 : vector<16x1xf32> to vector<16x64xf32>
    %474 = arith.mulf %472, %473 : vector<16x64xf32>
    %475 = vector.broadcast %469 : vector<16x1xf32> to vector<16x64xf32>
    %476 = arith.mulf %474, %475 : vector<16x64xf32>
    %477 = vector.broadcast %470 : vector<16x1xf32> to vector<16x64xf32>
    %478 = arith.addf %476, %477 : vector<16x64xf32>
    %cst_186 = arith.constant dense<0.000000e+00> : vector<64xf32>
    %479 = vector.multi_reduction <add>, %478, %cst_186 [0] : vector<16x64xf32> to vector<64xf32>
    %480 = vector.shape_cast %479 : vector<64xf32> to vector<1x64xf32>
    %cst_187 = arith.constant 6.250000e-02 : f32
    %481 = vector.broadcast %cst_187 : f32 to vector<1x64xf32>
    %482 = arith.mulf %480, %481 : vector<1x64xf32>
    %483 = vector.broadcast %450 : vector<16x1xf32> to vector<16x64xf32>
    %484 = arith.subf %441, %483 : vector<16x64xf32>
    %485 = vector.broadcast %468 : vector<16x1xf32> to vector<16x64xf32>
    %486 = arith.mulf %484, %485 : vector<16x64xf32>
    %487 = vector.broadcast %469 : vector<16x1xf32> to vector<16x64xf32>
    %488 = arith.mulf %486, %487 : vector<16x64xf32>
    %489 = vector.broadcast %470 : vector<16x1xf32> to vector<16x64xf32>
    %490 = arith.addf %488, %489 : vector<16x64xf32>
    %cst_188 = arith.constant dense<0.000000e+00> : vector<64xf32>
    %491 = vector.multi_reduction <add>, %490, %cst_188 [0] : vector<16x64xf32> to vector<64xf32>
    %492 = vector.shape_cast %491 : vector<64xf32> to vector<1x64xf32>
    %cst_189 = arith.constant 6.250000e-02 : f32
    %493 = vector.broadcast %cst_189 : f32 to vector<1x64xf32>
    %494 = arith.mulf %492, %493 : vector<1x64xf32>
    %495 = tpu.concatenate %482, %494 in 0 : vector<1x64xf32>, vector<1x64xf32> -> vector<2x64xf32>
    %496 = arith.truncf %495 : vector<2x64xf32> to vector<2x64xbf16>
    %c0_190 = arith.constant 0 : index
    %c0_191 = arith.constant 0 : index
    %497 = vector.load %arg22[%c0_190, %c0_191] : memref<64x256xbf16, #tpu.memory_space<vmem>>, vector<64x256xbf16>
    %cst_192 = arith.constant dense<0.000000e+00> : vector<2x256xf32>
    %498 = tpu.matmul %496, %497, %cst_192 {dimension_numbers = #tpu.dot_dimension_numbers<[1], [0], [0], [1], [0, 0, 1, 1], [], []>} : vector<2x64xbf16>, vector<64x256xbf16>, vector<2x256xf32> -> vector<2x256xf32>
    %c0_193 = arith.constant 0 : index
    %c0_194 = arith.constant 0 : index
    %499 = vector.load %arg23[%c0_193, %c0_194] : memref<1x256xf32, #tpu.memory_space<vmem>>, vector<1x256xf32>
    %500 = vector.broadcast %499 : vector<1x256xf32> to vector<2x256xf32>
    %501 = arith.addf %498, %500 : vector<2x256xf32>
    %cst_195 = arith.constant 0.000000e+00 : f32
    %502 = vector.broadcast %cst_195 : f32 to vector<2x256xf32>
    %503 = arith.maximumf %501, %502 : vector<2x256xf32>
    %504 = arith.truncf %503 : vector<2x256xf32> to vector<2x256xbf16>
    %c0_196 = arith.constant 0 : index
    %c0_197 = arith.constant 0 : index
    %505 = vector.load %arg24[%c0_196, %c0_197] : memref<256x128xbf16, #tpu.memory_space<vmem>>, vector<256x128xbf16>
    %cst_198 = arith.constant dense<0.000000e+00> : vector<2x128xf32>
    %506 = tpu.matmul %504, %505, %cst_198 {dimension_numbers = #tpu.dot_dimension_numbers<[1], [0], [0], [1], [0, 0, 1, 1], [], []>} : vector<2x256xbf16>, vector<256x128xbf16>, vector<2x128xf32> -> vector<2x128xf32>
    %c0_199 = arith.constant 0 : index
    %c0_200 = arith.constant 0 : index
    %507 = vector.load %arg25[%c0_199, %c0_200] : memref<1x128xf32, #tpu.memory_space<vmem>>, vector<1x128xf32>
    %508 = vector.broadcast %507 : vector<1x128xf32> to vector<2x128xf32>
    %509 = arith.addf %506, %508 : vector<2x128xf32>
    %c0_201 = arith.constant 0 : index
    %c0_202 = arith.constant 0 : index
    %510 = vector.load %arg26[%c0_201, %c0_202] : memref<2x128xf32, #tpu.memory_space<vmem>>, vector<2x128xf32>
    tpu.vector_store %arg26[%c0_201, %c0_202], %509 {strides = array<i32>} : memref<2x128xf32, #tpu.memory_space<vmem>>, vector<2x128xf32>,
    return
  }
}

</mosaic_0001>

<bundles_post_ra>
// kernel: mae_linear_probe_forward.1
= control target key start
LH: loop header
LB: loop body
LE: loop exit
PB: predicated region body
PF: predicated region fallthrough
CT: control target
= control target key end

     0   :  { %s7515_s0 = inlined_call_operand.vmem [shape: f32[32,64], index: 0, kind: input, shape index: {}]   ;;  %s7516_s1 = inlined_call_operand.vmem [shape: f32[48,48], index: 1, kind: input, shape index: {}]   ;;  %s7517_s2 = inlined_call_operand.vmem [shape: bf16[64,64], index: 2, kind: input, shape index: {}]   ;;  %s7518_s3 = inlined_call_operand.vmem [shape: f32[1,64], index: 3, kind: input, shape index: {}]   ;;  %s7519_s4 = inlined_call_operand.vmem [shape: f32[1,64], index: 4, kind: input, shape index: {}]   ;;  %s7520_s5 = inlined_call_operand.vmem [shape: f32[16,64], index: 5, kind: input, shape index: {}]   ;;  %s7521_s6 = inlined_call_operand.vmem [shape: f32[2,1,64], index: 6, kind: input, shape index: {}]   ;;  %s7522_s7 = inlined_call_operand.vmem [shape: f32[2,1,64], index: 7, kind: input, shape index: {}]   ;;  %s7523_s8 = inlined_call_operand.vmem [shape: bf16[2,64,192], index: 8, kind: input, shape index: {}]   ;;  %s7524_s9 = inlined_call_operand.vmem [shape: f32[2,1,192], index: 9, kind: input, shape index: {}]   ;;  %s7525_s10 = inlined_call_operand.vmem [shape: bf16[2,64,64], index: 10, kind: input, shape index: {}]   ;;  %s7526_s11 = inlined_call_operand.vmem [shape: f32[2,1,64], index: 11, kind: input, shape index: {}]   ;;  %s7527_s12 = inlined_call_operand.vmem [shape: f32[2,1,64], index: 12, kind: input, shape index: {}]   ;;  %s7528_s13 = inlined_call_operand.vmem [shape: f32[2,1,64], index: 13, kind: input, shape index: {}]   ;;  %s7529_s14 = inlined_call_operand.vmem [shape: bf16[2,64,128], index: 14, kind: input, shape index: {}]   ;;  %s7530_s15 = inlined_call_operand.vmem [shape: f32[2,1,128], index: 15, kind: input, shape index: {}]   ;;  %s7531_s16 = inlined_call_operand.vmem [shape: bf16[2,128,64], index: 16, kind: input, shape index: {}]   ;;  %s7532_s17 = inlined_call_operand.vmem [shape: f32[2,1,64], index: 17, kind: input, shape index: {}]   ;;  %s7533_s18 = inlined_call_operand.vmem [shape: f32[1,64], index: 18, kind: input, shape index: {}]   ;;  %s7534_s19 = inlined_call_operand.vmem [shape: f32[1,64], index: 19, kind: input, shape index: {}]   ;;  %s7535_s20 = inlined_call_operand.vmem [shape: f32[16,1], index: 20, kind: input, shape index: {}]   ;;  %s7536_s21 = inlined_call_operand.vmem [shape: f32[16,1], index: 21, kind: input, shape index: {}]   ;;  %s7537_s22 = inlined_call_operand.vmem [shape: bf16[64,256], index: 22, kind: input, shape index: {}]   ;;  %s7538_s23 = inlined_call_operand.vmem [shape: f32[1,256], index: 23, kind: input, shape index: {}]   ;;  %s7539_s24 = inlined_call_operand.vmem [shape: bf16[256,128], index: 24, kind: input, shape index: {}]   ;;  %s7540_s25 = inlined_call_operand.vmem [shape: f32[1,128], index: 25, kind: input, shape index: {}]   ;;  %s7541_s26 = inlined_call_operand.hbm [shape: f32[2,128], index: 26, kind: output, shape index: {}]  }
   0x1   :  { %7566 = sst [smem:[#allocation5_spill]] %s7515_s0 }
   0x2   :  { %7567 = sst [smem:[#allocation6_spill]] %s7516_s1 }
   0x3   :  { %7568 = sst [smem:[#allocation7_spill]] %s7517_s2 }
   0x4   :  { %7569 = sst [smem:[#allocation8_spill]] %s7518_s3 }
   0x5   :  { %7570 = sst [smem:[#allocation9_spill]] %s7519_s4 }
   0x6   :  { %7571 = sst [smem:[#allocation10_spill]] %s7520_s5 }
   0x7   :  { %7572 = sst [smem:[#allocation11_spill]] %s7521_s6 }
   0x8   :  { %7573 = sst [smem:[#allocation12_spill]] %s7522_s7 }
   0x9   :  { %7574 = sst [smem:[#allocation13_spill]] %s7523_s8 }
   0xa   :  { %7575 = sst [smem:[#allocation14_spill]] %s7524_s9 }
   0xb   :  { %7576 = sst [smem:[#allocation15_spill]] %s7525_s10 }
   0xc   :  { %7577 = sst [smem:[#allocation16_spill]] %s7541_s26 }
   0xd   :  { %s7578_s7 = sld [smem:[#allocation7_spill]]  ;;  %s7579_s30 = sld [smem:[#allocation5_spill]]  ;;  %vm130_vm0 = vcmask 523264  }
  0x13   :  { %v5164_v0 = vld [vmem:[%s7578_s7] sm:$0xff]   ;;  %v5165_v1 = vld [vmem:[%s7578_s7 + $0x8] sm:$0xff]   ;;  %v5166_v2 = vld [vmem:[%s7578_s7 + $0x10] sm:$0xff]  }
  0x14   :  { %4619 = vmatprep.subr.bf16.mxu0 %v5164_v0  ;;  %v85_v3 = vld [vmem:[%s7579_s30] sm:$0xff]  ;;  %v86_v4 = vld [vmem:[%s7579_s30 + $0x8] sm:$0xff]  ;;  %v5167_v6 = vld [vmem:[%s7578_s7 + $0x18] sm:$0xff]  }
  0x15   :  { %4620 = vmatpush3.bf16.msra.mxu0 %v5164_v0  ;;  %v89_v5 = vpack.c.bf16 %v86_v4, %v85_v3  ;;  %v87_v7 = vld [vmem:[%s7579_s30 + $0x10] sm:$0xff]  ;;  %v88_v8 = vld [vmem:[%s7579_s30 + $0x18] sm:$0xff] }
  0x16   :  { %4621 = vmatprep.subr.bf16.mxu0 %v5165_v1  ;;  %v90_v9 = vpack.c.bf16 %v88_v8, %v87_v7 }
  0x17   :  { %4627 = vmatprep.mubr.msk.bf16.mxu0 %vm130_vm0, %v89_v5 }
  0x19   :  { %4622 = vmatpush3.bf16.msra.mxu0 %v5165_v1 }
  0x1a   :  { %4623 = vmatprep.subr.bf16.mxu0 %v5166_v2 }
  0x1d   :  { %4624 = vmatpush3.bf16.msra.mxu0 %v5166_v2 }
  0x1e   :  { %4625 = vmatprep.subr.bf16.mxu0 %v5167_v6 }
  0x21   :  { %4626 = vmatpush3.bf16.msra.mxu0 %v5167_v6 }
  0x24   :  { %4628 = vmatmul.mubr.msk.bf16.vlgmr.msra.gmra.mrb[0].mxu0 %vm130_vm0, %v90_v9 }
  0x25   :  { %31 = vsyncpa [#allocation3], 0  ;;  %s7580_s4 = sld [smem:[#allocation9_spill]]  ;;  %vm191_vm1 = vcmask 1040384   ;;  %s7581_s9 = sld [smem:[#allocation8_spill]]  ;;  %v5556_v62 = vmov 0  }
  0x26   :  { %s7582_s5 = sld [smem:[#allocation10_spill]]  ;;  %s7583_s3 = sld [smem:[#allocation13_spill]]  ;;  %395 = vmatprep.mubr.bf16.mxu1 %v5556_v62  ;;  %5162 = vset.pattern.permute.xlu1 %v5556_v62  ;;  %vm5560_vm2 = vmmov 0   ;;  %vm447_vm3 = vcmask 130048   ;;  %vm523_vm4 = vcmask 392192   ;;  %vm1439_vm5 = vcmask 261120  }
  0x27   :  { %5163 = vset.pattern.permute.xlu0 %v5556_v62  ;;  %s7584_s8 = sld [smem:[#allocation11_spill]]  ;;  %s7585_s0 = sld [smem:[#allocation12_spill]] }
  0x28   :  { %s7586_s2 = sld [smem:[#allocation14_spill]]  ;;  %s7563_s10 = smov 48  }
  0x29   :  { %s7551_s6 = smov 112   ;;  %s7555_s1 = smov 96  }
  0x2a   :  { %s7561_s27 = smov 32   ;;  %s7553_s28 = smov 80  }
  0x2b   :  { %v186_v10 = vld [vmem:[%s7580_s4] sm:$0x1]  ;;  %s7559_s7 = smov 16   ;;  %s7588_s29 = sld [smem:[#allocation15_spill]] }
  0x2c   :  { %v5732_v11 = vsel %vm191_vm1, %v186_v10, 0.0  ;;  %v4234_v13 = vld [vmem:[%s7581_s9] ss:$0 sm:$0xff]  ;;  %v188_v21 = vld [vmem:[%s7582_s5 + $0x8] sm:$0xff]  ;;  %v5171_v59 = vld [vmem:[%s7583_s3 + $0x14] ss:$8 sps:$4 sm:$0xff]  }
  0x2d   :  { %v209_v12 = vsel %vm130_vm0, %v5732_v11, 0.0  ;;  %v187_v15 = vld [vmem:[%s7582_s5] sm:$0xff]  ;;  %v5173_v60 = vld [vmem:[%s7583_s3 + $0x10] ss:$8 sps:$4 sm:$0xff]   ;;  %v5177_v0 = vld [vmem:[%s7583_s3 + $0x34] ss:$8 sps:$4 sm:$0xff]  }
  0x2e   :  { %210 = vadd.xlane.f32.xlu1 %v209_v12  ;;  %v5168_v57 = vld [vmem:[%s7583_s3 + $0x4] ss:$8 sps:$4 sm:$0xff]   ;;  %v5170_v58 = vld [vmem:[%s7583_s3] ss:$8 sps:$4 sm:$0xff]   ;;  %v5179_v1 = vld [vmem:[%s7583_s3 + $0x30] ss:$8 sps:$4 sm:$0xff]  }
  0x2f   :  { %363 = vmatprep.subr.bf16.mxu1 %v5168_v57  ;;  %v5174_v61 = vld [vmem:[%s7583_s3 + $0x24] ss:$8 sps:$4 sm:$0xff]   ;;  %v5176_v63 = vld [vmem:[%s7583_s3 + $0x20] ss:$8 sps:$4 sm:$0xff]   ;;  %s7557_s5 = smov 64   ;;  %s7587_s9 = sld [smem:[#allocation6_spill]] }
  0x30   :  { %364 = vmatpush1.bf16.msra.mxu1 %v5170_v58 }
  0x31   :  { %365 = vmatprep.subr.bf16.mxu1 %v5171_v59 }
  0x34   :  { %366 = vmatpush1.bf16.msra.mxu1 %v5173_v60 }
  0x35   :  { %367 = vmatprep.subr.bf16.mxu1 %v5174_v61 }
  0x38   :  { %368 = vmatpush1.bf16.msra.mxu1 %v5176_v63 }
  0x39   :  { %369 = vmatprep.subr.bf16.mxu1 %v5177_v0 }
  0x3c   :  { %370 = vmatpush1.bf16.msra.mxu1 %v5179_v1 }
  0xbb   :  { %v211_v32 = vpop.xlane.xlu1 %210 }
  0xbc   :  { %v221_v33 = vmul.f32 0.015625, %v211_v32 }
  0xbe   :  { %v5762_v36 = vsub.f32 %v5732_v11, %v221_v33 }
  0xc0   :  { %v231_v43 = vmul.f32 %v5762_v36, %v5762_v36 }
  0xc2   :  { %v240_v49 = vsel %vm130_vm0, %v231_v43, 0.0 }
  0xf7   :  { %v4629_v14 = vpop.f32.mrb[0].mxu0 }
  0xf8   :  { %v180_v16 = vadd.f32 %v4629_v14, %v4234_v13  ;;  %v171_v17 = vpop.f32.mrb[1].mxu0 }
  0xf9   :  { %v172_v18 = vadd.f32 %v4234_v13, %v171_v17  ;;  %v4630_v19 = vpop.f32.mrb[2].mxu0 }
  0xfa   :  { %v5742_v20 = vadd.f32 %v187_v15, %v180_v16  ;;  %v174_v22 = vpop.f32.mrb[3].mxu0  ;;  %v183_v26 = vadd.f32 %v4630_v19, %v4234_v13 }
  0xfb   :  { %v5747_v23 = vadd.f32 %v187_v15, %v172_v18  ;;  %v175_v24 = vadd.f32 %v4234_v13, %v174_v22 }
  0xfc   :  { %v212_v25 = vsel %vm130_vm0, %v5742_v20, 0.0  ;;  %v5755_v29 = vadd.f32 %v188_v21, %v183_v26 }
  0xfd   :  { %v5751_v27 = vadd.f32 %v188_v21, %v175_v24  ;;  %213 = vadd.xlane.f32.xlu1 %v212_v25  ;;  %v203_v28 = vsel %vm130_vm0, %v5747_v23, 0.0  ;;  %v4241_v21 = vld [vmem:[%s7584_s8] ss:$0 sm:$0xff] }
  0xfe   :  { %204 = vadd.xlane.f32.xlu0 %v203_v28  ;;  %v215_v31 = vsel %vm130_vm0, %v5755_v29, 0.0  ;;  %v4242_v28 = vld [vmem:[%s7585_s0] ss:$0 sm:$0xff] }
  0xff   :  { %v206_v30 = vsel %vm130_vm0, %v5751_v27, 0.0 }
 0x102   :  { %207 = vadd.xlane.f32.xlu0 %v206_v30 }
 0x106   :  { %216 = vadd.xlane.f32.xlu0 %v215_v31 }
 0x18a   :  { %v214_v34 = vpop.xlane.xlu1 %213 }
 0x18b   :  { %v205_v35 = vpop.xlane.xlu0 %204  ;;  %v222_v38 = vmul.f32 0.015625, %v214_v34 }
 0x18c   :  { %v219_v37 = vmul.f32 0.015625, %v205_v35 }
 0x18d   :  { %v5772_v44 = vsub.f32 %v5742_v20, %v222_v38 }
 0x18e   :  { %v5765_v39 = vsub.f32 %v5747_v23, %v219_v37 }
 0x18f   :  { %v208_v40 = vpop.xlane.xlu0 %207  ;;  %v232_v53 = vmul.f32 %v5772_v44, %v5772_v44 }
 0x190   :  { %v220_v41 = vmul.f32 0.015625, %v208_v40  ;;  %v229_v42 = vmul.f32 %v5765_v39, %v5765_v39 }
 0x191   :  { %v243_v55 = vsel %vm130_vm0, %v232_v53, 0.0 }
 0x192   :  { %v225_v45 = vsub.f32 %v5751_v27, %v220_v41  ;;  %v234_v46 = vsel %vm130_vm0, %v229_v42, 0.0 }
 0x193   :  { %235 = vadd.xlane.f32.xlu1 %v234_v46  ;;  %v217_v47 = vpop.xlane.xlu0 %216 }
 0x194   :  { %v223_v48 = vmul.f32 0.015625, %v217_v47  ;;  %v230_v50 = vmul.f32 %v225_v45, %v225_v45  ;;  %v5557_v47 = vmov 0.0  }
 0x195   :  { %4649 = vmatprep.subr.bf16.mxu1 %v5557_v47  ;;  %4631 = vmatprep.subr.bf16.mxu0 %v5557_v47 }
 0x196   :  { %v5778_v51 = vsub.f32 %v5755_v29, %v223_v48  ;;  %v237_v52 = vsel %vm130_vm0, %v230_v50, 0.0  ;;  %v304_v48 = vlaneseq  ;;  %4637 = vmatprep.mubr.msk.bf16.mxu0 %vm5560_vm2, %v5557_v47 }
 0x197   :  { %241 = vadd.xlane.f32.xlu1 %v240_v49  ;;  %238 = vadd.xlane.f32.xlu0 %v237_v52 }
 0x198   :  { %v233_v54 = vmul.f32 %v5778_v51, %v5778_v51  ;;  %v305_v49 = vshrl.u32 %v304_v48, 7 }
 0x19a   :  { %v246_v56 = vsel %vm130_vm0, %v233_v54, 0.0  ;;  %v5831_v50 = vsub.s32 0, %v305_v49  ;;  %v5836_v52 = vsub.s32 1, %v305_v49 }
 0x19b   :  { %244 = vadd.xlane.f32.xlu0 %v243_v55  ;;  %247 = vadd.xlane.f32.xlu1 %v246_v56 }
 0x220   :  { %v236_v2 = vpop.xlane.xlu1 %235 }
 0x221   :  { %v249_v3 = vmul.f32 0.015625, %v236_v2 }
 0x223   :  { %v254_v4 = vadd.f32 1e-05, %v249_v3 }
 0x224   :  { %v242_v5 = vpop.xlane.xlu1 %241  ;;  %v239_v6 = vpop.xlane.xlu0 %238 }
 0x225   :  { %5252 = vrsqrt.f32 %v254_v4  ;;  %v251_v7 = vmul.f32 0.015625, %v242_v5  ;;  %v250_v8 = vmul.f32 0.015625, %v239_v6 }
 0x227   :  { %v255_v9 = vadd.f32 1e-05, %v250_v8  ;;  %v256_v10 = vadd.f32 1e-05, %v251_v7 }
 0x228   :  { %v248_v12 = vpop.xlane.xlu1 %247  ;;  %v245_v13 = vpop.xlane.xlu0 %244 }
 0x229   :  { %v252_v14 = vmul.f32 0.015625, %v245_v13  ;;  %5254 = vrsqrt.f32 %v255_v9  ;;  %v253_v15 = vmul.f32 0.015625, %v248_v12 }
 0x22a   :  { %5256 = vrsqrt.f32 %v256_v10 }
 0x22b   :  { %v257_v16 = vadd.f32 1e-05, %v252_v14  ;;  %v258_v17 = vadd.f32 1e-05, %v253_v15 }
 0x22d   :  { %5258 = vrsqrt.f32 %v257_v16 }
 0x22e   :  { %5260 = vrsqrt.f32 %v258_v17 }
 0x22f   :  { %v5253_v18 = vpop.eup %5252 }
 0x230   :  { %v264_v19 = vmul.f32 %v5253_v18, %v5765_v39 }
 0x232   :  { %v275_v25 = vmul.f32 %v4241_v21, %v264_v19 }
 0x233   :  { %v5255_v22 = vpop.eup %5254 }
 0x234   :  { %v265_v24 = vmul.f32 %v5255_v22, %v225_v45  ;;  %v5257_v26 = vpop.eup %5256  ;;  %v286_v32 = vadd.f32 %v4242_v28, %v275_v25 }
 0x235   :  { %v266_v34 = vmul.f32 %v5257_v26, %v5762_v36 }
 0x236   :  { %v276_v30 = vmul.f32 %v4241_v21, %v265_v24 }
 0x237   :  { %v5259_v31 = vpop.eup %5258  ;;  %v277_v40 = vmul.f32 %v4241_v21, %v266_v34 }
 0x238   :  { %v287_v33 = vadd.f32 %v4242_v28, %v276_v30  ;;  %v267_v35 = vmul.f32 %v5259_v31, %v5772_v44  ;;  %v5261_v39 = vpop.eup %5260 }
 0x239   :  { %v268_v42 = vmul.f32 %v5261_v39, %v5778_v51  ;;  %v288_v43 = vadd.f32 %v4242_v28, %v277_v40  ;;  %v302_v51 = vld [vmem:[%s7586_s2] sm:$0x3] }
 0x23a   :  { %v291_v37 = vpack.c.bf16 %v287_v33, %v286_v32  ;;  %v278_v38 = vmul.f32 %v4241_v21, %v267_v35  ;;  %v307_v53 = vrot.slane %v302_v51, %v5831_v50  ;;  %v311_v55 = vrot.slane %v302_v51, %v5836_v52 }
 0x23b   :  { %v279_v46 = vmul.f32 %v4241_v21, %v268_v42 }
 0x23c   :  { %4251 = vmatmul.mubr.msk.bf16.vlgmr.msra.gmra.mrb[0].mxu1 %vm130_vm0, %v291_v37  ;;  %v289_v41 = vadd.f32 %v4242_v28, %v278_v38 }
 0x23d   :  { %405 = vmatprep.mubr.bf16.mxu1 %v5556_v62  ;;  %v290_v36 = vadd.f32 %v4242_v28, %v279_v46 }
 0x23e   :  { %v292_v45 = vpack.c.bf16 %v289_v41, %v288_v43 }
 0x23f   :  { %v293_v44 = vpack.c.bf16 %v288_v43, %v290_v36 }
 0x244   :  { %4252 = vmatmul.mubr.msk.bf16.gmra.mrb[4].mxu1 %vm130_vm0, %v292_v45 }
 0x245   :  { %415 = vmatprep.mubr.bf16.mxu1 %v5556_v62 }
 0x24c   :  { %4253 = vmatmul.mubr.msk.bf16.gmra.mrb[8].mxu1 %vm130_vm0, %v293_v44 }
 0x24d   :  { %4655 = vmatprep.mubr.msk.bf16.mxu1 %vm5560_vm2, %v5557_v47 }
 0x30f   :  { %v397_v54 = vpop.f32.mrb[0].mxu1 }
 0x310   :  { %v398_v56 = vadd.f32 %v397_v54, %v307_v53  ;;  %v399_v57 = vpop.f32.mrb[1].mxu1 }
 0x311   :  { %v401_v58 = vpop.f32.mrb[2].mxu1  ;;  %v400_v61 = vadd.f32 %v399_v57, %v311_v55 }
 0x312   :  { %v402_v59 = vadd.f32 %v401_v58, %v307_v53  ;;  %v403_v60 = vpop.f32.mrb[3].mxu1  ;;  %v426_v0 = vmul.f32 0.25, %v398_v56 }
 0x313   :  { %v404_v63 = vadd.f32 %v403_v60, %v311_v55 }
 0x314   :  { %v427_v1 = vmul.f32 0.25, %v402_v59  ;;  %v435_v2 = vpack.c.bf16 %v402_v59, %v398_v56 }
 0x315   :  { %v5840_v3 = vpack.c.bf16 %v404_v63, %v400_v61 }
 0x316   :  { %v5842_v4 = vpack.c.bf16 %v427_v1, %v426_v0  ;;  %441 = vrot.lane.b32.xlu0 %v435_v2, %s7557_s5 }
 0x317   :  { %v407_v5 = vpop.f32.mrb[4].mxu1  ;;  %4650 = vmatpush3.bf16.msra.mxu1 %v5840_v3 }
 0x318   :  { %v408_v6 = vadd.f32 %v407_v5, %v307_v53  ;;  %v409_v7 = vpop.f32.mrb[5].mxu1  ;;  %4651 = vmatprep.subr.bf16.mxu1 %v5557_v47 }
 0x319   :  { %v411_v8 = vpop.f32.mrb[6].mxu1  ;;  %v410_v12 = vadd.f32 %v409_v7, %v311_v55 }
 0x31a   :  { %v412_v9 = vadd.f32 %v411_v8, %v307_v53  ;;  %v413_v10 = vpop.f32.mrb[7].mxu1  ;;  %v428_v14 = vmul.f32 0.25, %v408_v6 }
 0x31b   :  { %v414_v13 = vadd.f32 %v413_v10, %v311_v55  ;;  %v5958_v10 = vld [vmem:[%s7587_s9] sm:$0xff] }
 0x31c   :  { %v429_v15 = vmul.f32 0.25, %v412_v9  ;;  %v436_v16 = vpack.c.bf16 %v412_v9, %v408_v6 }
 0x31d   :  { %v5847_v17 = vpack.c.bf16 %v414_v13, %v410_v12  ;;  %v5963_v13 = vld [vmem:[%s7587_s9 + $0x8] sm:$0xff] }
 0x31e   :  { %v5849_v18 = vpack.c.bf16 %v429_v15, %v428_v14  ;;  %673 = vrot.lane.b32.xlu0 %v436_v16, %s7563_s10  ;;  %443 = vrot.lane.b32.xlu1 %v436_v16, %s7557_s5 }
 0x31f   :  { %v417_v19 = vpop.f32.mrb[8].mxu1  ;;  %4652 = vmatpush3.bf16.msra.mxu1 %v5847_v17 }
 0x320   :  { %v418_v21 = vadd.f32 %v417_v19, %v307_v53  ;;  %v419_v22 = vpop.f32.mrb[9].mxu1  ;;  %4653 = vmatprep.subr.bf16.mxu1 %v5557_v47 }
 0x321   :  { %v421_v24 = vpop.f32.mrb[10].mxu1  ;;  %v420_v28 = vadd.f32 %v419_v22, %v311_v55 }
 0x322   :  { %v422_v25 = vadd.f32 %v421_v24, %v307_v53  ;;  %v423_v26 = vpop.f32.mrb[11].mxu1  ;;  %665 = vrot.lane.b32.xlu0 %v5842_v4, %s7551_s6  ;;  %v430_v31 = vmul.f32 0.25, %v418_v21  ;;  %v5978_v24 = vld [vmem:[%s7587_s9 + $0x10] sm:$0xff] }
 0x323   :  { %v424_v30 = vadd.f32 %v423_v26, %v311_v55  ;;  %v5983_v26 = vld [vmem:[%s7587_s9 + $0x18] sm:$0xff] }
 0x324   :  { %v431_v32 = vmul.f32 0.25, %v422_v25  ;;  %v437_v33 = vpack.c.bf16 %v422_v25, %v418_v21 }
 0x325   :  { %v5861_v34 = vpack.c.bf16 %v424_v30, %v420_v28 }
 0x326   :  { %v434_v35 = vpack.c.bf16 %v431_v32, %v430_v31  ;;  %445 = vrot.lane.b32.xlu1 %v437_v33, %s7557_s5  ;;  %667 = vrot.lane.b32.xlu0 %v5849_v18, %s7551_s6 }
 0x327   :  { %4654 = vmatpush3.bf16.msra.mxu1 %v5861_v34 }
 0x328   :  { %4685 = vmatprep.subr.bf16.mxu1 %v5557_v47 }
 0x32a   :  { %671 = vrot.lane.b32.xlu1 %v435_v2, %s7563_s10  ;;  %669 = vrot.lane.b32.xlu0 %v434_v35, %s7551_s6 }
 0x32e   :  { %675 = vrot.lane.b32.xlu1 %v437_v33, %s7563_s10  ;;  %899 = vrot.lane.b32.xlu0 %v5842_v4, %s7555_s1 }
 0x332   :  { %905 = vrot.lane.b32.xlu1 %v435_v2, %s7561_s27  ;;  %901 = vrot.lane.b32.xlu0 %v5849_v18, %s7555_s1 }
 0x336   :  { %907 = vrot.lane.b32.xlu1 %v436_v16, %s7561_s27  ;;  %903 = vrot.lane.b32.xlu0 %v434_v35, %s7555_s1 }
 0x33a   :  { %909 = vrot.lane.b32.xlu1 %v437_v33, %s7561_s27  ;;  %1130 = vrot.lane.b32.xlu0 %v5842_v4, %s7553_s28 }
 0x33e   :  { %1136 = vrot.lane.b32.xlu1 %v435_v2, %s7559_s7  ;;  %1134 = vrot.lane.b32.xlu0 %v434_v35, %s7553_s28 }
 0x342   :  { %1138 = vrot.lane.b32.xlu1 %v436_v16, %s7559_s7  ;;  %826 = vrot.lane.b32.xlu0 %v5847_v17, %s7551_s6 }
 0x346   :  { %1140 = vrot.lane.b32.xlu1 %v437_v33, %s7559_s7 }
 0x34a   :  { %1132 = vrot.lane.b32.xlu1 %v5849_v18, %s7553_s28 }
 0x34e   :  { %824 = vrot.lane.b32.xlu1 %v5840_v3, %s7551_s6 }
 0x352   :  { %828 = vrot.lane.b32.xlu1 %v5861_v34, %s7551_s6  ;;  %s7593_s6 = smov 96  }
 0x388   :  { %v442_v37 = vpop.permute.xlu0 %441 }
 0x389   :  { %v458_v38 = vsel %vm447_vm3, %v442_v37, 0  ;;  %v5996_v37 = vld [vmem:[%s7587_s9 + $0x20] sm:$0xff] }
 0x38a   :  { %4632 = vmatpush3.bf16.xpose.msra.mxu0 %v458_v38 }
 0x38b   :  { %4633 = vmatprep.subr.bf16.mxu0 %v5557_v47 }
 0x390   :  { %v444_v39 = vpop.permute.xlu1 %443  ;;  %v674_v46 = vpop.permute.xlu0 %673 }
 0x391   :  { %v461_v40 = vsel %vm447_vm3, %v444_v39, 0  ;;  %v690_v36 = vsel %vm447_vm3, %v674_v46, 0 }
 0x392   :  { %4634 = vmatpush3.bf16.xpose.msra.mxu0 %v461_v40  ;;  %v6003_v40 = vld [vmem:[%s7587_s9 + $0x28] sm:$0xff] }
 0x393   :  { %4635 = vmatprep.subr.bf16.mxu0 %v5557_v47 }
 0x394   :  { %v666_v51 = vpop.permute.xlu0 %665 }
 0x398   :  { %v446_v41 = vpop.permute.xlu1 %445  ;;  %v668_v55 = vpop.permute.xlu0 %667 }
 0x399   :  { %v464_v42 = vsel %vm447_vm3, %v446_v41, 0 }
 0x39a   :  { %4636 = vmatpush3.bf16.xpose.msra.mxu0 %v464_v42 }
 0x39b   :  { %4667 = vmatprep.subr.bf16.mxu0 %v5557_v47 }
 0x39c   :  { %v672_v43 = vpop.permute.xlu1 %671  ;;  %v670_v58 = vpop.permute.xlu0 %669 }
 0x39d   :  { %v687_v45 = vsel %vm447_vm3, %v672_v43, 0 }
 0x3a0   :  { %v676_v44 = vpop.permute.xlu1 %675  ;;  %v900_v61 = vpop.permute.xlu0 %899 }
 0x3a1   :  { %4638 = vmatmul.mubr.msk.bf16.vlgmr.msra.gmra.mrb[4].mxu0 %vm447_vm3, %v5842_v4  ;;  %v693_v48 = vsel %vm447_vm3, %v676_v44, 0 }
 0x3a2   :  { %4668 = vmatpush3.bf16.xpose.msra.mxu0 %v687_v45  ;;  %4641 = vmatprep.mubr.msk.bf16.mxu0 %vm5560_vm2, %v5557_v47 }
 0x3a3   :  { %4669 = vmatprep.subr.bf16.mxu0 %v5557_v47 }
 0x3a4   :  { %v906_v49 = vpop.permute.xlu1 %905  ;;  %v902_v1 = vpop.permute.xlu0 %901 }
 0x3a5   :  { %v921_v53 = vsel %vm447_vm3, %v906_v49, 0 }
 0x3a8   :  { %v908_v54 = vpop.permute.xlu1 %907  ;;  %v904_v5 = vpop.permute.xlu0 %903 }
 0x3a9   :  { %4642 = vmatmul.mubr.msk.bf16.gmra.mrb[8].mxu0 %vm447_vm3, %v5849_v18  ;;  %v924_v56 = vsel %vm447_vm3, %v908_v54, 0 }
 0x3aa   :  { %4670 = vmatpush3.bf16.xpose.msra.mxu0 %v690_v36  ;;  %4645 = vmatprep.mubr.msk.bf16.mxu0 %vm5560_vm2, %v5557_v47 }
 0x3ab   :  { %4671 = vmatprep.subr.bf16.mxu0 %v5557_v47 }
 0x3ac   :  { %v910_v57 = vpop.permute.xlu1 %909  ;;  %v1131_v7 = vpop.permute.xlu0 %1130 }
 0x3ad   :  { %v927_v59 = vsel %vm447_vm3, %v910_v57, 0 }
 0x3b0   :  { %v1137_v60 = vpop.permute.xlu1 %1136  ;;  %v1135_v9 = vpop.permute.xlu0 %1134 }
 0x3b1   :  { %4646 = vmatmul.mubr.msk.bf16.gmra.mrb[12].mxu0 %vm447_vm3, %v434_v35  ;;  %v1152_v63 = vsel %vm447_vm3, %v1137_v60, 0 }
 0x3b2   :  { %4672 = vmatpush3.bf16.xpose.msra.mxu0 %v693_v48  ;;  %4673 = vmatprep.mubr.msk.bf16.mxu0 %vm5560_vm2, %v5557_v47 }
 0x3b3   :  { %4703 = vmatprep.subr.bf16.mxu0 %v5557_v47 }
 0x3b4   :  { %v1139_v0 = vpop.permute.xlu1 %1138 }
 0x3b5   :  { %v1155_v2 = vsel %vm447_vm3, %v1139_v0, 0 }
 0x3b8   :  { %v1141_v4 = vpop.permute.xlu1 %1140 }
 0x3b9   :  { %4674 = vmatmul.mubr.msk.bf16.vlgmr.msra.gmra.mrb[16].mxu0 %vm447_vm3, %v666_v51  ;;  %v1158_v6 = vsel %vm447_vm3, %v1141_v4, 0 }
 0x3ba   :  { %4704 = vmatpush3.bf16.xpose.msra.mxu0 %v921_v53  ;;  %4677 = vmatprep.mubr.msk.bf16.mxu0 %vm5560_vm2, %v5557_v47 }
 0x3bb   :  { %4705 = vmatprep.subr.bf16.mxu0 %v5557_v47 }
 0x3bc   :  { %v1133_v8 = vpop.permute.xlu1 %1132 }
 0x3c1   :  { %4678 = vmatmul.mubr.msk.bf16.gmra.mrb[20].mxu0 %vm447_vm3, %v668_v55 }
 0x3c2   :  { %4706 = vmatpush3.bf16.xpose.msra.mxu0 %v924_v56  ;;  %4681 = vmatprep.mubr.msk.bf16.mxu0 %vm5560_vm2, %v5557_v47 }
 0x3c3   :  { %4707 = vmatprep.subr.bf16.mxu0 %v5557_v47 }
 0x3c9   :  { %4682 = vmatmul.mubr.msk.bf16.gmra.mrb[24].mxu0 %vm447_vm3, %v670_v58 }
 0x3ca   :  { %4708 = vmatpush3.bf16.xpose.msra.mxu0 %v927_v59  ;;  %4709 = vmatprep.mubr.msk.bf16.mxu0 %vm5560_vm2, %v5557_v47 }
 0x3cb   :  { %4739 = vmatprep.subr.bf16.mxu0 %v5557_v47 }
 0x3d1   :  { %4710 = vmatmul.mubr.msk.bf16.vlgmr.msra.gmra.mrb[28].mxu0 %vm447_vm3, %v900_v61 }
 0x3d2   :  { %4740 = vmatpush3.bf16.xpose.msra.mxu0 %v1152_v63  ;;  %4713 = vmatprep.mubr.msk.bf16.mxu0 %vm5560_vm2, %v5557_v47 }
 0x3d3   :  { %4741 = vmatprep.subr.bf16.mxu0 %v5557_v47 }
 0x3d9   :  { %4714 = vmatmul.mubr.msk.bf16.gmra.mrb[32].mxu0 %vm447_vm3, %v902_v1 }
 0x3da   :  { %4742 = vmatpush3.bf16.xpose.msra.mxu0 %v1155_v2  ;;  %4717 = vmatprep.mubr.msk.bf16.mxu0 %vm5560_vm2, %v5557_v47 }
 0x3db   :  { %4743 = vmatprep.subr.bf16.mxu0 %v5557_v47 }
 0x3e1   :  { %4718 = vmatmul.mubr.msk.bf16.gmra.mrb[36].mxu0 %vm447_vm3, %v904_v5 }
 0x3e2   :  { %4744 = vmatpush3.bf16.xpose.msra.mxu0 %v1158_v6  ;;  %4745 = vmatprep.mubr.msk.bf16.mxu0 %vm5560_vm2, %v5557_v47 }
 0x3e3   :  { %4775 = vmatprep.subr.bf16.mxu0 %v5557_v47 }
 0x3e9   :  { %4746 = vmatmul.mubr.msk.bf16.vlgmr.msra.gmra.mrb[40].mxu0 %vm447_vm3, %v1131_v7 }
 0x3ea   :  { %4749 = vmatprep.mubr.msk.bf16.mxu0 %vm5560_vm2, %v5557_v47 }
 0x3f1   :  { %4750 = vmatmul.mubr.msk.bf16.gmra.mrb[44].mxu0 %vm447_vm3, %v1133_v8 }
 0x3f2   :  { %4753 = vmatprep.mubr.msk.bf16.mxu0 %vm5560_vm2, %v5557_v47 }
 0x3f9   :  { %4754 = vmatmul.mubr.msk.bf16.gmra.mrb[48].mxu0 %vm447_vm3, %v1135_v9 }
 0x3fa   :  { %4783 = vmatprep.mubr.msk.bf16.mxu0 %vm5560_vm2, %v5557_v47 }
 0x474   :  { %v500_v12 = vpop.f32.mrb[4].mxu0 }
 0x475   :  { %v5966_v14 = vadd.f32 %v500_v12, %v5958_v10  ;;  %v4639_v15 = vpop.f32.mrb[5].mxu0 }
 0x476   :  { %v503_v16 = vpop.f32.mrb[6].mxu0 }
 0x477   :  { %v5969_v18 = vadd.f32 %v503_v16, %v5963_v13  ;;  %v4640_v19 = vpop.f32.mrb[7].mxu0  ;;  %v524_v21 = vsel %vm523_vm4, %v5966_v14, -inf }
 0x478   :  { %525 = vmax.xlane.f32.xlu1 %v524_v21 }
 0x479   :  { %v527_v22 = vsel %vm523_vm4, %v5969_v18, -inf }
 0x47a   :  { %528 = vmax.xlane.f32.xlu0 %v527_v22 }
 0x47c   :  { %v508_v25 = vpop.f32.mrb[8].mxu0 }
 0x47d   :  { %v5986_v28 = vadd.f32 %v508_v25, %v5978_v24  ;;  %v4643_v30 = vpop.f32.mrb[9].mxu0 }
 0x47e   :  { %v511_v31 = vpop.f32.mrb[10].mxu0 }
 0x47f   :  { %v5989_v32 = vadd.f32 %v511_v31, %v5983_v26  ;;  %v4644_v33 = vpop.f32.mrb[11].mxu0  ;;  %v530_v35 = vsel %vm523_vm4, %v5986_v28, -inf }
 0x480   :  { %531 = vmax.xlane.f32.xlu0 %v530_v35 }
 0x481   :  { %v533_v38 = vsel %vm523_vm4, %v5989_v32, -inf }
 0x484   :  { %534 = vmax.xlane.f32.xlu0 %v533_v38  ;;  %v516_v39 = vpop.f32.mrb[12].mxu0 }
 0x485   :  { %v6006_v41 = vadd.f32 %v516_v39, %v5996_v37  ;;  %v4647_v42 = vpop.f32.mrb[13].mxu0 }
 0x486   :  { %v519_v43 = vpop.f32.mrb[14].mxu0 }
 0x487   :  { %v6009_v45 = vadd.f32 %v519_v43, %v6003_v40  ;;  %v4648_v46 = vpop.f32.mrb[15].mxu0  ;;  %v536_v36 = vsel %vm523_vm4, %v6006_v41, -inf }
 0x488   :  { %537 = vmax.xlane.f32.xlu1 %v536_v36 }
 0x489   :  { %v539_v44 = vsel %vm523_vm4, %v6009_v45, -inf }
 0x48a   :  { %540 = vmax.xlane.f32.xlu0 %v539_v44 }
 0x48c   :  { %v729_v48 = vpop.f32.mrb[16].mxu0 }
 0x48d   :  { %v6016_v49 = vadd.f32 %v729_v48, %v5958_v10  ;;  %v4675_v51 = vpop.f32.mrb[17].mxu0 }
 0x48e   :  { %v732_v53 = vpop.f32.mrb[18].mxu0 }
 0x48f   :  { %v6019_v54 = vadd.f32 %v732_v53, %v5963_v13  ;;  %v4676_v55 = vpop.f32.mrb[19].mxu0  ;;  %v752_v56 = vsel %vm523_vm4, %v6016_v49, -inf }
 0x490   :  { %753 = vmax.xlane.f32.xlu1 %v752_v56 }
 0x491   :  { %v755_v57 = vsel %vm523_vm4, %v6019_v54, -inf }
 0x492   :  { %756 = vmax.xlane.f32.xlu0 %v755_v57 }
 0x494   :  { %v737_v58 = vpop.f32.mrb[20].mxu0 }
 0x495   :  { %v6026_v59 = vadd.f32 %v737_v58, %v5978_v24  ;;  %v4679_v60 = vpop.f32.mrb[21].mxu0 }
 0x496   :  { %v740_v61 = vpop.f32.mrb[22].mxu0 }
 0x497   :  { %v6029_v63 = vadd.f32 %v740_v61, %v5983_v26  ;;  %v4680_v0 = vpop.f32.mrb[23].mxu0  ;;  %v758_v1 = vsel %vm523_vm4, %v6026_v59, -inf }
 0x498   :  { %759 = vmax.xlane.f32.xlu1 %v758_v1 }
 0x499   :  { %v761_v2 = vsel %vm523_vm4, %v6029_v63, -inf }
 0x49a   :  { %762 = vmax.xlane.f32.xlu0 %v761_v2 }
 0x49c   :  { %v745_v4 = vpop.f32.mrb[24].mxu0 }
 0x49d   :  { %v6036_v5 = vadd.f32 %v745_v4, %v5996_v37  ;;  %v4683_v6 = vpop.f32.mrb[25].mxu0 }
 0x49e   :  { %v748_v7 = vpop.f32.mrb[26].mxu0 }
 0x49f   :  { %v4684_v8 = vpop.f32.mrb[27].mxu0  ;;  %v764_v9 = vsel %vm523_vm4, %v6036_v5, -inf  ;;  %v6045_v53 = vadd.f32 %v748_v7, %v6003_v40 }
 0x4a0   :  { %765 = vmax.xlane.f32.xlu1 %v764_v9 }
 0x4a1   :  { %v767_v60 = vsel %vm523_vm4, %v6045_v53, -inf }
 0x4a4   :  { %v963_v12 = vpop.f32.mrb[28].mxu0 }
 0x4a5   :  { %v4711_v15 = vpop.f32.mrb[29].mxu0  ;;  %v6053_v0 = vadd.f32 %v963_v12, %v5958_v10 }
 0x4a6   :  { %v966_v16 = vpop.f32.mrb[30].mxu0 }
 0x4a7   :  { %v4712_v19 = vpop.f32.mrb[31].mxu0  ;;  %v6048_v57 = vadd.f32 %v966_v16, %v5963_v13  ;;  %v986_v6 = vsel %vm523_vm4, %v6053_v0, -inf }
 0x4a9   :  { %v989_v2 = vsel %vm523_vm4, %v6048_v57, -inf }
 0x4ac   :  { %v971_v21 = vpop.f32.mrb[32].mxu0 }
 0x4ad   :  { %v4715_v22 = vpop.f32.mrb[33].mxu0  ;;  %v6061_v4 = vadd.f32 %v971_v21, %v5978_v24 }
 0x4ae   :  { %v974_v25 = vpop.f32.mrb[34].mxu0 }
 0x4af   :  { %v4716_v30 = vpop.f32.mrb[35].mxu0  ;;  %v6056_v1 = vadd.f32 %v974_v25, %v5983_v26  ;;  %v992_v12 = vsel %vm523_vm4, %v6061_v4, -inf }
 0x4b0   :  { %1057 = vrot.lane.b32.xlu0 %v5847_v17, %s7555_s1 }
 0x4b1   :  { %1055 = vrot.lane.b32.xlu1 %v5840_v3, %s7555_s1  ;;  %v995_v8 = vsel %vm523_vm4, %v6056_v1, -inf }
 0x4b4   :  { %v979_v31 = vpop.f32.mrb[36].mxu0 }
 0x4b5   :  { %v4719_v33 = vpop.f32.mrb[37].mxu0  ;;  %v6071_v9 = vadd.f32 %v979_v31, %v5996_v37 }
 0x4b6   :  { %v982_v35 = vpop.f32.mrb[38].mxu0 }
 0x4b7   :  { %v4720_v38 = vpop.f32.mrb[39].mxu0  ;;  %v6066_v7 = vadd.f32 %v982_v35, %v6003_v40  ;;  %v998_v21 = vsel %vm523_vm4, %v6071_v9, -inf }
 0x4b9   :  { %v1001_v16 = vsel %vm523_vm4, %v6066_v7, -inf }
 0x4bc   :  { %v1194_v39 = vpop.f32.mrb[40].mxu0 }
 0x4bd   :  { %v4747_v42 = vpop.f32.mrb[41].mxu0  ;;  %v6081_v19 = vadd.f32 %v1194_v39, %v5958_v10  ;;  %v6113_v39 = vpop.permute.xlu0 %826 }
 0x4be   :  { %v1197_v43 = vpop.f32.mrb[42].mxu0 }
 0x4bf   :  { %v4748_v46 = vpop.f32.mrb[43].mxu0  ;;  %v6076_v15 = vadd.f32 %v1197_v43, %v5963_v13  ;;  %v1217_v30 = vsel %vm523_vm4, %v6081_v19, -inf }
 0x4c1   :  { %v1220_v25 = vsel %vm523_vm4, %v6076_v15, -inf }
 0x4c4   :  { %v1202_v36 = vpop.f32.mrb[44].mxu0 }
 0x4c5   :  { %v4751_v44 = vpop.f32.mrb[45].mxu0  ;;  %v6091_v13 = vadd.f32 %v1202_v36, %v5978_v24 }
 0x4c6   :  { %v1205_v48 = vpop.f32.mrb[46].mxu0 }
 0x4c7   :  { %v4752_v51 = vpop.f32.mrb[47].mxu0  ;;  %v6086_v22 = vadd.f32 %v1205_v48, %v5983_v26  ;;  %v1223_v33 = vsel %vm523_vm4, %v6091_v13, -inf }
 0x4c9   :  { %v1226_v31 = vsel %vm523_vm4, %v6086_v22, -inf }
 0x4cc   :  { %v1210_v55 = vpop.f32.mrb[48].mxu0 }
 0x4cd   :  { %v4755_v56 = vpop.f32.mrb[49].mxu0  ;;  %v6101_v26 = vadd.f32 %v1210_v55, %v5996_v37 }
 0x4ce   :  { %v1213_v58 = vpop.f32.mrb[50].mxu0 }
 0x4cf   :  { %768 = vmax.xlane.f32.xlu0 %v767_v60  ;;  %v4756_v61 = vpop.f32.mrb[51].mxu0  ;;  %v6096_v10 = vadd.f32 %v1213_v58, %v6003_v40  ;;  %v1229_v35 = vsel %vm523_vm4, %v6101_v26, -inf  ;;  %v6109_v40 = vpop.permute.xlu1 %824 }
 0x4d1   :  { %v1232_v24 = vsel %vm523_vm4, %v6096_v10, -inf }
 0x4d3   :  { %990 = vmax.xlane.f32.xlu0 %v989_v2  ;;  %v6111_v38 = vpop.permute.xlu1 %828 }
 0x4d5   :  { %987 = vmax.xlane.f32.xlu1 %v986_v6 }
 0x4d7   :  { %996 = vmax.xlane.f32.xlu0 %v995_v8 }
 0x4d9   :  { %993 = vmax.xlane.f32.xlu1 %v992_v12 }
 0x4db   :  { %1002 = vmax.xlane.f32.xlu0 %v1001_v16 }
 0x4dd   :  { %999 = vmax.xlane.f32.xlu1 %v998_v21 }
 0x4df   :  { %1221 = vmax.xlane.f32.xlu0 %v1220_v25 }
 0x4e1   :  { %1218 = vmax.xlane.f32.xlu1 %v1217_v30 }
 0x4e3   :  { %1227 = vmax.xlane.f32.xlu0 %v1226_v31 }
 0x4e5   :  { %1224 = vmax.xlane.f32.xlu1 %v1223_v33 }
 0x4e7   :  { %1233 = vmax.xlane.f32.xlu0 %v1232_v24 }
 0x4e9   :  { %1230 = vmax.xlane.f32.xlu1 %v1229_v35 }
 0x505   :  { %v526_v37 = vpop.xlane.xlu1 %525 }
 0x506   :  { %v542_v42 = vsub.f32 %v5966_v14, %v526_v37 }
 0x507   :  { %v529_v43 = vpop.xlane.xlu0 %528 }
 0x508   :  { %v548_v46 = vmul.f32 1.442695, %v542_v42  ;;  %v543_v36 = vsub.f32 %v5969_v18, %v529_v43 }
 0x50a   :  { %5262 = vpow2.f32 %v548_v46  ;;  %v550_v44 = vmul.f32 1.442695, %v543_v36 }
 0x50c   :  { %5264 = vpow2.f32 %v550_v44 }
 0x50d   :  { %v532_v48 = vpop.xlane.xlu0 %531 }
 0x50e   :  { %v544_v51 = vsub.f32 %v5986_v28, %v532_v48 }
 0x510   :  { %v552_v55 = vmul.f32 1.442695, %v544_v51 }
 0x511   :  { %v535_v56 = vpop.xlane.xlu0 %534 }
 0x512   :  { %5266 = vpow2.f32 %v552_v55  ;;  %v545_v58 = vsub.f32 %v5989_v32, %v535_v56 }
 0x514   :  { %v6119_v60 = vpop.eup %5262  ;;  %v554_v61 = vmul.f32 1.442695, %v545_v58 }
 0x515   :  { %v538_v2 = vpop.xlane.xlu1 %537  ;;  %v560_v14 = vsel %vm523_vm4, %v6119_v60, 0.0 }
 0x516   :  { %v6123_v6 = vpop.eup %5264  ;;  %5268 = vpow2.f32 %v554_v61  ;;  %v546_v18 = vsub.f32 %v6006_v41, %v538_v2  ;;  %561 = vadd.xlane.f32.xlu1 %v560_v14 }
 0x517   :  { %v541_v8 = vpop.xlane.xlu0 %540  ;;  %v563_v28 = vsel %vm523_vm4, %v6123_v6, 0.0 }
 0x518   :  { %v556_v12 = vmul.f32 1.442695, %v546_v18  ;;  %v547_v32 = vsub.f32 %v6009_v45, %v541_v8  ;;  %564 = vadd.xlane.f32.xlu0 %v563_v28 }
 0x51a   :  { %5270 = vpow2.f32 %v556_v12  ;;  %v558_v16 = vmul.f32 1.442695, %v547_v32 }
 0x51c   :  { %v6129_v21 = vpop.eup %5266  ;;  %5272 = vpow2.f32 %v558_v16 }
 0x51d   :  { %v754_v25 = vpop.xlane.xlu1 %753  ;;  %v566_v30 = vsel %vm523_vm4, %v6129_v21, 0.0 }
 0x51e   :  { %v770_v41 = vsub.f32 %v6016_v49, %v754_v25  ;;  %567 = vadd.xlane.f32.xlu1 %v566_v30 }
 0x51f   :  { %v757_v31 = vpop.xlane.xlu0 %756 }
 0x520   :  { %v6134_v33 = vpop.eup %5268  ;;  %v776_v24 = vmul.f32 1.442695, %v770_v41  ;;  %v771_v35 = vsub.f32 %v6019_v54, %v757_v31 }
 0x521   :  { %v569_v45 = vsel %vm523_vm4, %v6134_v33, 0.0 }
 0x522   :  { %5274 = vpow2.f32 %v776_v24  ;;  %v778_v37 = vmul.f32 1.442695, %v771_v35  ;;  %570 = vadd.xlane.f32.xlu0 %v569_v45 }
 0x524   :  { %v6139_v42 = vpop.eup %5270  ;;  %5276 = vpow2.f32 %v778_v37 }
 0x525   :  { %v760_v43 = vpop.xlane.xlu1 %759  ;;  %v572_v49 = vsel %vm523_vm4, %v6139_v42, 0.0 }
 0x526   :  { %v6143_v46 = vpop.eup %5272  ;;  %v772_v36 = vsub.f32 %v6026_v59, %v760_v43  ;;  %573 = vadd.xlane.f32.xlu1 %v572_v49 }
 0x527   :  { %v763_v44 = vpop.xlane.xlu0 %762  ;;  %v575_v54 = vsel %vm523_vm4, %v6143_v46, 0.0 }
 0x528   :  { %v780_v48 = vmul.f32 1.442695, %v772_v36  ;;  %v773_v51 = vsub.f32 %v6029_v63, %v763_v44  ;;  %576 = vadd.xlane.f32.xlu0 %v575_v54 }
 0x52a   :  { %5278 = vpow2.f32 %v780_v48  ;;  %v782_v55 = vmul.f32 1.442695, %v773_v51 }
 0x52b   :  { %v6170_v16 = vpop.permute.xlu0 %1057 }
 0x52c   :  { %v6149_v56 = vpop.eup %5274  ;;  %5280 = vpow2.f32 %v782_v55 }
 0x52d   :  { %v766_v58 = vpop.xlane.xlu1 %765  ;;  %v788_v61 = vsel %vm523_vm4, %v6149_v56, 0.0 }
 0x52e   :  { %v6153_v2 = vpop.eup %5276  ;;  %v774_v59 = vsub.f32 %v6036_v5, %v766_v58  ;;  %789 = vadd.xlane.f32.xlu1 %v788_v61 }
 0x52f   :  { %v791_v14 = vsel %vm523_vm4, %v6153_v2, 0.0 }
 0x530   :  { %v784_v18 = vmul.f32 1.442695, %v774_v59  ;;  %792 = vadd.xlane.f32.xlu0 %v791_v14 }
 0x531   :  { %v6173_v41 = vpop.permute.xlu1 %1055 }
 0x532   :  { %5282 = vpow2.f32 %v784_v18 }
 0x534   :  { %v6158_v63 = vpop.eup %5278 }
 0x535   :  { %v794_v8 = vsel %vm523_vm4, %v6158_v63, 0.0 }
 0x536   :  { %v6162_v28 = vpop.eup %5280  ;;  %795 = vadd.xlane.f32.xlu1 %v794_v8 }
 0x537   :  { %v797_v12 = vsel %vm523_vm4, %v6162_v28, 0.0 }
 0x538   :  { %798 = vadd.xlane.f32.xlu0 %v797_v12 }
 0x53c   :  { %v6166_v5 = vpop.eup %5282 }
 0x53d   :  { %v800_v32 = vsel %vm523_vm4, %v6166_v5, 0.0 }
 0x53e   :  { %801 = vadd.xlane.f32.xlu1 %v800_v32 }
 0x55c   :  { %v769_v25 = vpop.xlane.xlu0 %768 }
 0x55d   :  { %v775_v30 = vsub.f32 %v6045_v53, %v769_v25 }
 0x55f   :  { %v786_v31 = vmul.f32 1.442695, %v775_v30 }
 0x560   :  { %v991_v36 = vpop.xlane.xlu0 %990 }
 0x561   :  { %5284 = vpow2.f32 %v786_v31  ;;  %v1005_v51 = vsub.f32 %v6048_v57, %v991_v36 }
 0x562   :  { %v988_v24 = vpop.xlane.xlu1 %987 }
 0x563   :  { %v1004_v35 = vsub.f32 %v6053_v0, %v988_v24  ;;  %v1012_v61 = vmul.f32 1.442695, %v1005_v51 }
 0x564   :  { %v997_v44 = vpop.xlane.xlu0 %996 }
 0x565   :  { %v1010_v45 = vmul.f32 1.442695, %v1004_v35  ;;  %v1007_v8 = vsub.f32 %v6056_v1, %v997_v44 }
 0x566   :  { %v994_v54 = vpop.xlane.xlu1 %993 }
 0x567   :  { %5286 = vpow2.f32 %v1010_v45  ;;  %v1006_v59 = vsub.f32 %v6061_v4, %v994_v54  ;;  %v1016_v25 = vmul.f32 1.442695, %v1007_v8 }
 0x568   :  { %v1003_v0 = vpop.xlane.xlu0 %1002  ;;  %5288 = vpow2.f32 %v1012_v61 }
 0x569   :  { %v1014_v12 = vmul.f32 1.442695, %v1006_v59  ;;  %v1009_v24 = vsub.f32 %v6066_v7, %v1003_v0 }
 0x56a   :  { %v1000_v48 = vpop.xlane.xlu1 %999 }
 0x56b   :  { %v6176_v37 = vpop.eup %5284  ;;  %5290 = vpow2.f32 %v1014_v12  ;;  %v1008_v30 = vsub.f32 %v6071_v9, %v1000_v48  ;;  %v1020_v35 = vmul.f32 1.442695, %v1009_v24 }
 0x56c   :  { %v803_v43 = vsel %vm523_vm4, %v6176_v37, 0.0  ;;  %v1222_v55 = vpop.xlane.xlu0 %1221 }
 0x56d   :  { %804 = vadd.xlane.f32.xlu0 %v803_v43  ;;  %v1018_v4 = vmul.f32 1.442695, %v1008_v30  ;;  %v1236_v45 = vsub.f32 %v6076_v15, %v1222_v55 }
 0x56e   :  { %v1219_v58 = vpop.xlane.xlu1 %1218 }
 0x56f   :  { %v1235_v14 = vsub.f32 %v6081_v19, %v1219_v58  ;;  %v1243_v36 = vmul.f32 1.442695, %v1236_v45 }
 0x570   :  { %v1228_v18 = vpop.xlane.xlu0 %1227 }
 0x571   :  { %v6180_v49 = vpop.eup %5286  ;;  %v1238_v32 = vsub.f32 %v6086_v22, %v1228_v18 }
 0x572   :  { %v1022_v53 = vsel %vm523_vm4, %v6180_v49, 0.0  ;;  %v1225_v57 = vpop.xlane.xlu1 %1224  ;;  %v6195_v19 = vpop.eup %5288 }
 0x573   :  { %1023 = vadd.xlane.f32.xlu1 %v1022_v53  ;;  %v1247_v31 = vmul.f32 1.442695, %v1238_v32  ;;  %v1025_v43 = vsel %vm523_vm4, %v6195_v19, 0.0  ;;  %v1237_v44 = vsub.f32 %v6091_v13, %v1225_v57 }
 0x574   :  { %v1234_v22 = vpop.xlane.xlu0 %1233 }
 0x575   :  { %v6200_v9 = vpop.eup %5290  ;;  %v1245_v58 = vmul.f32 1.442695, %v1237_v44 }
 0x576   :  { %v1231_v1 = vpop.xlane.xlu1 %1230  ;;  %v1028_v0 = vsel %vm523_vm4, %v6200_v9, 0.0 }
 0x577   :  { %v1239_v48 = vsub.f32 %v6101_v26, %v1231_v1  ;;  %v1240_v26 = vsub.f32 %v6096_v10, %v1234_v22 }
 0x579   :  { %v1249_v59 = vmul.f32 1.442695, %v1239_v48  ;;  %v1251_v30 = vmul.f32 1.442695, %v1240_v26 }
 0x583   :  { %1286 = vrot.lane.b32.xlu0 %v5840_v3, %s7553_s28  ;;  %v1241_v3 = vmul.f32 1.442695, %v1235_v14 }
 0x584   :  { %1059 = vrot.lane.b32.xlu1 %v5861_v34, %s7555_s1  ;;  %s7591_s1 = smov 32  }
 0x585   :  { %5292 = vpow2.f32 %v1241_v3 }
 0x586   :  { %5294 = vpow2.f32 %v1016_v25 }
 0x587   :  { %5296 = vpow2.f32 %v1247_v31 }
 0x588   :  { %5298 = vpow2.f32 %v1018_v4 }
 0x589   :  { %5300 = vpow2.f32 %v1020_v35 }
 0x58f   :  { %v6202_v7 = vpop.eup %5292 }
 0x590   :  { %v6207_v15 = vpop.eup %5294  ;;  %v1253_v51 = vsel %vm523_vm4, %v6202_v7, 0.0 }
 0x591   :  { %v6212_v55 = vpop.eup %5296  ;;  %v1031_v13 = vsel %vm523_vm4, %v6207_v15, 0.0 }
 0x592   :  { %v6216_v61 = vpop.eup %5298  ;;  %v1262_v18 = vsel %vm523_vm4, %v6212_v55, 0.0 }
 0x593   :  { %v6221_v8 = vpop.eup %5300  ;;  %v1034_v12 = vsel %vm523_vm4, %v6216_v61, 0.0 }
 0x594   :  { %v1037_v10 = vsel %vm523_vm4, %v6221_v8, 0.0 }
 0x5a2   :  { %1026 = vadd.xlane.f32.xlu0 %v1025_v43 }
 0x5a3   :  { %v562_v53 = vpop.xlane.xlu1 %561 }
 0x5a4   :  { %5302 = vrcp.f32 %v562_v53 }
 0x5a5   :  { %v565_v54 = vpop.xlane.xlu0 %564 }
 0x5a6   :  { %5304 = vrcp.f32 %v565_v54  ;;  %1029 = vadd.xlane.f32.xlu0 %v1028_v0 }
 0x5a7   :  { %5306 = vpow2.f32 %v1243_v36 }
 0x5a8   :  { %1254 = vadd.xlane.f32.xlu1 %v1253_v51  ;;  %5308 = vpow2.f32 %v1245_v58 }
 0x5aa   :  { %1032 = vadd.xlane.f32.xlu0 %v1031_v13 }
 0x5ab   :  { %v568_v14 = vpop.xlane.xlu1 %567 }
 0x5ac   :  { %1263 = vadd.xlane.f32.xlu1 %v1262_v18  ;;  %5310 = vrcp.f32 %v568_v14 }
 0x5ad   :  { %5312 = vpow2.f32 %v1249_v59 }
 0x5ae   :  { %v5303_v3 = vpop.eup %5302  ;;  %1035 = vadd.xlane.f32.xlu0 %v1034_v12 }
 0x5af   :  { %v571_v32 = vpop.xlane.xlu0 %570  ;;  %v584_v57 = vmul.f32 %v5303_v3, %v6119_v60 }
 0x5b0   :  { %v5305_v25 = vpop.eup %5304  ;;  %5314 = vrcp.f32 %v571_v32 }
 0x5b1   :  { %v585_v31 = vmul.f32 %v5305_v25, %v6123_v6  ;;  %v6229_v24 = vpop.eup %5306  ;;  %5316 = vpow2.f32 %v1251_v30 }
 0x5b2   :  { %1038 = vadd.xlane.f32.xlu0 %v1037_v10  ;;  %v1256_v45 = vsel %vm523_vm4, %v6229_v24, 0.0  ;;  %v6234_v22 = vpop.eup %5308 }
 0x5b3   :  { %v590_v4 = vpack.c.bf16 %v585_v31, %v584_v57  ;;  %v574_v35 = vpop.xlane.xlu1 %573  ;;  %v1259_v43 = vsel %vm523_vm4, %v6234_v22, 0.0 }
 0x5b4   :  { %5318 = vrcp.f32 %v574_v35 }
 0x5b5   :  { %4656 = vmatmul.mubr.msk.bf16.vlgmr.msra.gmra.mrb[12].mxu1 %vm523_vm4, %v590_v4  ;;  %v577_v1 = vpop.xlane.xlu0 %576 }
 0x5b6   :  { %4686 = vmatpush3.bf16.msra.mxu1 %v6109_v40  ;;  %5320 = vrcp.f32 %v577_v1  ;;  %1257 = vadd.xlane.f32.xlu0 %v1256_v45  ;;  %v5311_v60 = vpop.eup %5310 }
 0x5b7   :  { %4687 = vmatprep.subr.bf16.mxu1 %v5557_v47  ;;  %4659 = vmatprep.mubr.msk.bf16.mxu1 %vm5560_vm2, %v5557_v47  ;;  %v6240_v6 = vpop.eup %5312  ;;  %v586_v40 = vmul.f32 %v5311_v60, %v6129_v21 }
 0x5b8   :  { %v1265_v0 = vsel %vm523_vm4, %v6240_v6, 0.0 }
 0x5ba   :  { %v5315_v53 = vpop.eup %5314  ;;  %4688 = vmatpush3.bf16.msra.mxu1 %v6113_v39  ;;  %1260 = vadd.xlane.f32.xlu0 %v1259_v43 }
 0x5bb   :  { %v790_v36 = vpop.xlane.xlu1 %789  ;;  %4689 = vmatprep.subr.bf16.mxu1 %v5557_v47  ;;  %v587_v44 = vmul.f32 %v5315_v53, %v6134_v33  ;;  %v6252_v51 = vpop.eup %5316 }
 0x5bc   :  { %5322 = vrcp.f32 %v790_v36 }
 0x5bd   :  { %1290 = vrot.lane.b32.xlu1 %v5861_v34, %s7553_s28  ;;  %v793_v54 = vpop.xlane.xlu0 %792  ;;  %v591_v48 = vpack.c.bf16 %v587_v44, %v586_v40  ;;  %v1268_v34 = vsel %vm523_vm4, %v6252_v51, 0.0 }
 0x5be   :  { %4690 = vmatpush3.bf16.msra.mxu1 %v6111_v38  ;;  %5324 = vrcp.f32 %v793_v54  ;;  %1266 = vadd.xlane.f32.xlu0 %v1265_v0  ;;  %v5319_v39 = vpop.eup %5318 }
 0x5bf   :  { %4660 = vmatmul.mubr.msk.bf16.gmra.mrb[16].mxu1 %vm523_vm4, %v591_v48  ;;  %4721 = vmatprep.subr.bf16.mxu1 %v5557_v47  ;;  %v588_v38 = vmul.f32 %v5319_v39, %v6139_v42 }
 0x5c0   :  { %v5321_v21 = vpop.eup %5320  ;;  %4663 = vmatprep.mubr.msk.bf16.mxu1 %vm5560_vm2, %v5557_v47 }
 0x5c1   :  { %v589_v33 = vmul.f32 %v5321_v21, %v6143_v46 }
 0x5c2   :  { %1269 = vadd.xlane.f32.xlu0 %v1268_v34 }
 0x5c3   :  { %v796_v58 = vpop.xlane.xlu1 %795  ;;  %v592_v59 = vpack.c.bf16 %v589_v33, %v588_v38 }
 0x5c4   :  { %5326 = vrcp.f32 %v796_v58 }
 0x5c5   :  { %v799_v13 = vpop.xlane.xlu0 %798 }
 0x5c6   :  { %5328 = vrcp.f32 %v799_v13  ;;  %v5323_v14 = vpop.eup %5322 }
 0x5c7   :  { %4664 = vmatmul.mubr.msk.bf16.gmra.mrb[20].mxu1 %vm523_vm4, %v592_v59  ;;  %v812_v12 = vmul.f32 %v5323_v14, %v6149_v56 }
 0x5c8   :  { %v5325_v18 = vpop.eup %5324  ;;  %4691 = vmatprep.mubr.msk.bf16.mxu1 %vm5560_vm2, %v5557_v47 }
 0x5c9   :  { %v813_v26 = vmul.f32 %v5325_v18, %v6153_v2 }
 0x5cb   :  { %v818_v46 = vpack.c.bf16 %v813_v26, %v812_v12  ;;  %v802_v56 = vpop.xlane.xlu1 %801 }
 0x5cc   :  { %5330 = vrcp.f32 %v802_v56 }
 0x5ce   :  { %v5327_v3 = vpop.eup %5326 }
 0x5cf   :  { %4692 = vmatmul.mubr.msk.bf16.vlgmr.msra.gmra.mrb[24].mxu1 %vm523_vm4, %v818_v46  ;;  %v814_v25 = vmul.f32 %v5327_v3, %v6158_v63 }
 0x5d0   :  { %v5329_v42 = vpop.eup %5328  ;;  %4722 = vmatpush3.bf16.msra.mxu1 %v6173_v41  ;;  %4695 = vmatprep.mubr.msk.bf16.mxu1 %vm5560_vm2, %v5557_v47 }
 0x5d1   :  { %4723 = vmatprep.subr.bf16.mxu1 %v5557_v47  ;;  %v815_v32 = vmul.f32 %v5329_v42, %v6162_v28 }
 0x5d3   :  { %v819_v2 = vpack.c.bf16 %v815_v32, %v814_v25 }
 0x5d4   :  { %4724 = vmatpush3.bf16.msra.mxu1 %v6170_v16 }
 0x5d5   :  { %4725 = vmatprep.subr.bf16.mxu1 %v5557_v47 }
 0x5d6   :  { %v5331_v30 = vpop.eup %5330 }
 0x5d7   :  { %4696 = vmatmul.mubr.msk.bf16.gmra.mrb[28].mxu1 %vm523_vm4, %v819_v2  ;;  %v816_v16 = vmul.f32 %v5331_v30, %v6166_v5 }
 0x5d8   :  { %1288 = vrot.lane.b32.xlu0 %v5847_v17, %s7553_s28  ;;  %4699 = vmatprep.mubr.msk.bf16.mxu1 %vm5560_vm2, %v5557_v47  ;;  %s7592_s28 = smov 112  }
 0x5fa   :  { %v805_v41 = vpop.xlane.xlu0 %804 }
 0x5fb   :  { %5332 = vrcp.f32 %v805_v41 }
 0x5fe   :  { %v1287_v17 = vpop.permute.xlu0 %1286 }
 0x600   :  { %v1024_v28 = vpop.xlane.xlu1 %1023 }
 0x601   :  { %5334 = vrcp.f32 %v1024_v28 }
 0x604   :  { %v1060_v63 = vpop.permute.xlu1 %1059 }
 0x605   :  { %v5333_v57 = vpop.eup %5332  ;;  %4726 = vmatpush3.bf16.msra.mxu1 %v1060_v63 }
 0x606   :  { %v817_v31 = vmul.f32 %v5333_v57, %v6176_v37  ;;  %4757 = vmatprep.subr.bf16.mxu1 %v5557_v47 }
 0x608   :  { %v820_v10 = vpack.c.bf16 %v817_v31, %v816_v16 }
 0x60a   :  { %4700 = vmatmul.mubr.msk.bf16.gmra.mrb[32].mxu1 %vm523_vm4, %v820_v10 }
 0x60b   :  { %4727 = vmatprep.mubr.msk.bf16.mxu1 %vm5560_vm2, %v5557_v47  ;;  %v5335_v45 = vpop.eup %5334 }
 0x60c   :  { %v1046_v37 = vmul.f32 %v5335_v45, %v6180_v49 }
 0x62f   :  { %v1027_v4 = vpop.xlane.xlu0 %1026 }
 0x630   :  { %5336 = vrcp.f32 %v1027_v4 }
 0x633   :  { %v1030_v35 = vpop.xlane.xlu0 %1029 }
 0x634   :  { %5338 = vrcp.f32 %v1030_v35 }
 0x635   :  { %v1255_v48 = vpop.xlane.xlu1 %1254 }
 0x637   :  { %v1033_v1 = vpop.xlane.xlu0 %1032 }
 0x638   :  { %5340 = vrcp.f32 %v1033_v1 }
 0x639   :  { %v1264_v13 = vpop.xlane.xlu1 %1263 }
 0x63a   :  { %v5337_v5 = vpop.eup %5336 }
 0x63b   :  { %v1047_v60 = vmul.f32 %v5337_v5, %v6195_v19  ;;  %v1036_v43 = vpop.xlane.xlu0 %1035 }
 0x63c   :  { %5342 = vrcp.f32 %v1036_v43 }
 0x63d   :  { %v1052_v53 = vpack.c.bf16 %v1047_v60, %v1046_v37 }
 0x63e   :  { %v5339_v40 = vpop.eup %5338 }
 0x63f   :  { %4728 = vmatmul.mubr.msk.bf16.vlgmr.msra.gmra.mrb[36].mxu1 %vm523_vm4, %v1052_v53  ;;  %v1039_v36 = vpop.xlane.xlu0 %1038  ;;  %v1048_v49 = vmul.f32 %v5339_v40, %v6200_v9 }
 0x640   :  { %4758 = vmatpush3.bf16.msra.mxu1 %v1287_v17  ;;  %5344 = vrcp.f32 %v1039_v36  ;;  %4731 = vmatprep.mubr.msk.bf16.mxu1 %vm5560_vm2, %v5557_v47 }
 0x641   :  { %4759 = vmatprep.subr.bf16.mxu1 %v5557_v47 }
 0x642   :  { %v5341_v44 = vpop.eup %5340 }
 0x643   :  { %v1258_v54 = vpop.xlane.xlu0 %1257  ;;  %v1049_v19 = vmul.f32 %v5341_v44, %v6207_v15 }
 0x644   :  { %5346 = vrcp.f32 %v1258_v54 }
 0x645   :  { %v1053_v0 = vpack.c.bf16 %v1049_v19, %v1048_v49  ;;  %5348 = vrcp.f32 %v1255_v48  ;;  %v5181_v48 = vld [vmem:[%s7588_s29 + $0x8] sm:$0xff]  }
 0x646   :  { %v5343_v21 = vpop.eup %5342 }
 0x647   :  { %4732 = vmatmul.mubr.msk.bf16.gmra.mrb[40].mxu1 %vm523_vm4, %v1053_v0  ;;  %v1261_v39 = vpop.xlane.xlu0 %1260  ;;  %v1050_v58 = vmul.f32 %v5343_v21, %v6216_v61  ;;  %v5180_v0 = vld [vmem:[%s7588_s29] sm:$0xff]   ;;  %v5182_v21 = vld [vmem:[%s7588_s29 + $0x10] sm:$0xff]  }
 0x648   :  { %4735 = vmatprep.mubr.msk.bf16.mxu1 %vm5560_vm2, %v5557_v47  ;;  %5350 = vrcp.f32 %v1261_v39  ;;  %4776 = vmatpush3.bf16.msra.mxu0 %v5180_v0 }
 0x649   :  { %5352 = vrcp.f32 %v1264_v13  ;;  %4777 = vmatprep.subr.bf16.mxu0 %v5557_v47 }
 0x64a   :  { %v5345_v34 = vpop.eup %5344 }
 0x64b   :  { %v1267_v33 = vpop.xlane.xlu0 %1266  ;;  %v1051_v38 = vmul.f32 %v5345_v34, %v6221_v8  ;;  %v1291_v8 = vpop.permute.xlu1 %1290 }
 0x64c   :  { %4778 = vmatpush3.bf16.msra.mxu0 %v5181_v48 }
 0x64d   :  { %v1054_v9 = vpack.c.bf16 %v1051_v38, %v1050_v58  ;;  %4779 = vmatprep.subr.bf16.mxu0 %v5557_v47 }
 0x64e   :  { %v5347_v59 = vpop.eup %5346 }
 0x64f   :  { %4736 = vmatmul.mubr.msk.bf16.gmra.mrb[44].mxu1 %vm523_vm4, %v1054_v9  ;;  %v1270_v15 = vpop.xlane.xlu0 %1269  ;;  %v5349_v18 = vpop.eup %5348  ;;  %v1278_v26 = vmul.f32 %v5347_v59, %v6229_v24 }
 0x650   :  { %4763 = vmatprep.mubr.msk.bf16.mxu1 %vm5560_vm2, %v5557_v47  ;;  %v1277_v61 = vmul.f32 %v5349_v18, %v6202_v7  ;;  %5354 = vrcp.f32 %v1270_v15  ;;  %4780 = vmatpush3.bf16.msra.mxu0 %v5182_v21 }
 0x651   :  { %5356 = vrcp.f32 %v1267_v33  ;;  %4781 = vmatprep.subr.bf16.mxu0 %v5557_v47 }
 0x652   :  { %v1283_v12 = vpack.c.bf16 %v1278_v26, %v1277_v61  ;;  %v5351_v46 = vpop.eup %5350 }
 0x653   :  { %v1289_v14 = vpop.permute.xlu0 %1288  ;;  %v5353_v3 = vpop.eup %5352  ;;  %v1279_v24 = vmul.f32 %v5351_v46, %v6234_v22  ;;  %v5183_v46 = vld [vmem:[%s7588_s29 + $0x18] sm:$0xff]  }
 0x654   :  { %4760 = vmatpush3.bf16.msra.mxu1 %v1289_v14  ;;  %v1280_v42 = vmul.f32 %v5353_v3, %v6212_v55  ;;  %4782 = vmatpush3.bf16.msra.mxu0 %v5183_v46 }
 0x655   :  { %4761 = vmatprep.subr.bf16.mxu1 %v5557_v47  ;;  %4815 = vmatprep.subr.bf16.mxu0 %v5557_v47 }
 0x656   :  { %v1284_v32 = vpack.c.bf16 %v1280_v42, %v1279_v24 }
 0x658   :  { %4762 = vmatpush3.bf16.msra.mxu1 %v1291_v8 }
 0x659   :  { %4795 = vmatprep.subr.bf16.mxu1 %v5557_v47 }
 0x65a   :  { %v5355_v7 = vpop.eup %5354 }
 0x65b   :  { %4764 = vmatmul.mubr.msk.bf16.vlgmr.msra.gmra.mrb[48].mxu1 %vm523_vm4, %v1283_v12  ;;  %v5357_v25 = vpop.eup %5356  ;;  %v1282_v2 = vmul.f32 %v5355_v7, %v6252_v51 }
 0x65c   :  { %4767 = vmatprep.mubr.msk.bf16.mxu1 %vm5560_vm2, %v5557_v47  ;;  %v1281_v56 = vmul.f32 %v5357_v25, %v6240_v6 }
 0x65e   :  { %v1285_v41 = vpack.c.bf16 %v1282_v2, %v1281_v56 }
 0x663   :  { %4768 = vmatmul.mubr.msk.bf16.gmra.mrb[52].mxu1 %vm523_vm4, %v1284_v32 }
 0x664   :  { %4771 = vmatprep.mubr.msk.bf16.mxu1 %vm5560_vm2, %v5557_v47 }
 0x66b   :  { %4772 = vmatmul.mubr.msk.bf16.gmra.mrb[56].mxu1 %vm523_vm4, %v1285_v41 }
 0x66c   :  { %4803 = vmatprep.mubr.msk.bf16.mxu1 %vm5560_vm2, %v5557_v47 }
 0x688   :  { %v6321_v22 = vpop.f32.mrb[12].mxu1 }
 0x689   :  { %v4657_v55 = vpop.f32.mrb[13].mxu1 }
 0x68a   :  { %v6323_v28 = vpop.f32.mrb[14].mxu1 }
 0x68b   :  { %v4658_v30 = vpop.f32.mrb[15].mxu1 }
 0x692   :  { %v6325_v63 = vpop.f32.mrb[16].mxu1 }
 0x693   :  { %v4661_v57 = vpop.f32.mrb[17].mxu1 }
 0x694   :  { %v6327_v16 = vpop.f32.mrb[18].mxu1 }
 0x695   :  { %v4662_v51 = vpop.f32.mrb[19].mxu1 }
 0x69a   :  { %v6329_v31 = vpop.f32.mrb[20].mxu1 }
 0x69b   :  { %v4665_v6 = vpop.f32.mrb[21].mxu1 }
 0x69c   :  { %v6331_v10 = vpop.f32.mrb[22].mxu1 }
 0x69d   :  { %v4666_v17 = vpop.f32.mrb[23].mxu1 }
 0x6a2   :  { %v876_v4 = vpop.f32.mrb[24].mxu1 }
 0x6a3   :  { %v4693_v35 = vpop.f32.mrb[25].mxu1 }
 0x6a4   :  { %v879_v1 = vpop.f32.mrb[26].mxu1 }
 0x6a5   :  { %v5072_v45 = vpack.i.bf16 %v879_v1, %v876_v4  ;;  %v4694_v5 = vpop.f32.mrb[27].mxu1 }
 0x6a7   :  { %5073 = vrot.lane.b32.xlu0 %v5072_v45, %s7559_s7 }
 0x6aa   :  { %v884_v37 = vpop.f32.mrb[28].mxu1 }
 0x6ab   :  { %v4697_v60 = vpop.f32.mrb[29].mxu1 }
 0x6ac   :  { %v887_v43 = vpop.f32.mrb[30].mxu1 }
 0x6ad   :  { %v5087_v53 = vpack.i.bf16 %v887_v43, %v884_v37  ;;  %v4698_v36 = vpop.f32.mrb[31].mxu1 }
 0x6dd   :  { %v892_v40 = vpop.f32.mrb[32].mxu1 }
 0x6de   :  { %v4701_v44 = vpop.f32.mrb[33].mxu1 }
 0x6df   :  { %v895_v54 = vpop.f32.mrb[34].mxu1 }
 0x6e0   :  { %v5102_v49 = vpack.i.bf16 %v895_v54, %v892_v40  ;;  %v4702_v19 = vpop.f32.mrb[35].mxu1 }
 0x712   :  { %v1107_v39 = vpop.f32.mrb[36].mxu1 }
 0x713   :  { %v4729_v34 = vpop.f32.mrb[37].mxu1 }
 0x714   :  { %v1110_v33 = vpop.f32.mrb[38].mxu1 }
 0x715   :  { %v5077_v58 = vpack.i.bf16 %v1110_v33, %v1107_v39  ;;  %v4730_v38 = vpop.f32.mrb[39].mxu1 }
 0x717   :  { %5078 = vrot.lane.b32.xlu0 %v5077_v58, %s7561_s27 }
 0x719   :  { %v5074_v4 = vpop.permute.xlu0 %5073 }
 0x71a   :  { %v1115_v9 = vpop.f32.mrb[40].mxu1  ;;  %v5076_v1 = vunpack.i.h.bf16 %v5074_v4  ;;  %v5075_v45 = vunpack.i.l.bf16 %v5074_v4 }
 0x71b   :  { %v4733_v13 = vpop.f32.mrb[41].mxu1 }
 0x71c   :  { %v1118_v15 = vpop.f32.mrb[42].mxu1  ;;  %v1434_v43 = vsel %vm447_vm3, %v6323_v28, %v5076_v1 }
 0x71d   :  { %v5092_v59 = vpack.i.bf16 %v1118_v15, %v1115_v9  ;;  %v4734_v14 = vpop.f32.mrb[43].mxu1 }
 0x722   :  { %v1123_v18 = vpop.f32.mrb[44].mxu1 }
 0x723   :  { %v4737_v26 = vpop.f32.mrb[45].mxu1 }
 0x724   :  { %v1126_v61 = vpop.f32.mrb[46].mxu1 }
 0x725   :  { %v5107_v8 = vpack.i.bf16 %v1126_v61, %v1123_v18  ;;  %v4738_v12 = vpop.f32.mrb[47].mxu1 }
 0x72e   :  { %v1338_v3 = vpop.f32.mrb[48].mxu1 }
 0x72f   :  { %v4765_v24 = vpop.f32.mrb[49].mxu1 }
 0x730   :  { %v1341_v42 = vpop.f32.mrb[50].mxu1 }
 0x731   :  { %v5082_v32 = vpack.i.bf16 %v1341_v42, %v1338_v3  ;;  %v4766_v7 = vpop.f32.mrb[51].mxu1 }
 0x733   :  { %5083 = vrot.lane.b32.xlu0 %v5082_v32, %s7563_s10 }
 0x736   :  { %v1346_v25 = vpop.f32.mrb[52].mxu1 }
 0x737   :  { %5088 = vrot.lane.b32.xlu0 %v5087_v53, %s7559_s7  ;;  %v4769_v2 = vpop.f32.mrb[53].mxu1  ;;  %v1433_v53 = vsel %vm447_vm3, %v6321_v22, %v5075_v45 }
 0x738   :  { %v1349_v56 = vpop.f32.mrb[54].mxu1 }
 0x739   :  { %v5097_v41 = vpack.i.bf16 %v1349_v56, %v1346_v25  ;;  %v4770_v55 = vpop.f32.mrb[55].mxu1 }
 0x73b   :  { %5093 = vrot.lane.b32.xlu0 %v5092_v59, %s7561_s27  ;;  %5098 = vrot.lane.b32.xlu1 %v5097_v41, %s7563_s10 }
 0x73e   :  { %v1354_v30 = vpop.f32.mrb[56].mxu1 }
 0x73f   :  { %5103 = vrot.lane.b32.xlu0 %v5102_v49, %s7559_s7  ;;  %5108 = vrot.lane.b32.xlu1 %v5107_v8, %s7561_s27  ;;  %v4773_v57 = vpop.f32.mrb[57].mxu1  ;;  %s7590_s7 = smov 48  }
 0x740   :  { %v1357_v51 = vpop.f32.mrb[58].mxu1 }
 0x741   :  { %v5112_v6 = vpack.i.bf16 %v1357_v51, %v1354_v30  ;;  %v4774_v17 = vpop.f32.mrb[59].mxu1 }
 0x743   :  { %5113 = vrot.lane.b32.xlu0 %v5112_v6, %s7563_s10  ;;  %s5566_s10 = smov [#allocation2]  }
 0x744   :  { %s4226_s27 = sshll.u32 %s5566_s10, 4  ;;  %s4227_s27 = int_to_ptr.vmem [resolvable:$true] %s4226_s27 }
 0x745   :  { %p5537_p1 = scmp.lt.s32.totalorder %s4227_s27, %s4227_s27 }
 0x789   :  { %v5079_v35 = vpop.permute.xlu0 %5078 }
 0x78a   :  { %v5081_v5 = vunpack.i.h.bf16 %v5079_v35  ;;  %v5080_v37 = vunpack.i.l.bf16 %v5079_v35 }
 0x78c   :  { %v1440_v44 = vsel %vm1439_vm5, %v1433_v53, %v5080_v37  ;;  %v1441_v54 = vsel %vm1439_vm5, %v1434_v43, %v5081_v5 }
 0x7a5   :  { %v5084_v60 = vpop.permute.xlu0 %5083 }
 0x7a6   :  { %v5086_v36 = vunpack.i.h.bf16 %v5084_v60  ;;  %v5085_v40 = vunpack.i.l.bf16 %v5084_v60 }
 0x7a8   :  { %v1446_v49 = vsel %vm523_vm4, %v1440_v44, %v5085_v40  ;;  %v1447_v19 = vsel %vm523_vm4, %v1441_v54, %v5086_v36 }
 0x7a9   :  { %v1452_v0 = vpack.c.bf16 %v1447_v19, %v1446_v49  ;;  %v5089_v48 = vpop.permute.xlu0 %5088 }
 0x7aa   :  { %v5091_v39 = vunpack.i.h.bf16 %v5089_v48  ;;  %v5090_v21 = vunpack.i.l.bf16 %v5089_v48 }
 0x7ab   :  { %4784 = vmatmul.mubr.msk.bf16.vlgmr.msra.gmra.mrb[52].mxu0 %vm130_vm0, %v1452_v0 }
 0x7ac   :  { %4787 = vmatprep.mubr.msk.bf16.mxu0 %vm5560_vm2, %v5557_v47  ;;  %v1436_v9 = vsel %vm447_vm3, %v6327_v16, %v5091_v39  ;;  %v1435_v13 = vsel %vm447_vm3, %v6325_v63, %v5090_v21 }
 0x7ad   :  { %v5099_v22 = vpop.permute.xlu1 %5098  ;;  %v5094_v28 = vpop.permute.xlu0 %5093 }
 0x7ae   :  { %v5101_v34 = vunpack.i.h.bf16 %v5099_v22  ;;  %v5100_v33 = vunpack.i.l.bf16 %v5099_v22  ;;  %v5096_v58 = vunpack.i.h.bf16 %v5094_v28  ;;  %v5095_v38 = vunpack.i.l.bf16 %v5094_v28 }
 0x7b0   :  { %v1442_v15 = vsel %vm1439_vm5, %v1435_v13, %v5095_v38  ;;  %v1443_v59 = vsel %vm1439_vm5, %v1436_v9, %v5096_v58 }
 0x7b1   :  { %v5109_v14 = vpop.permute.xlu1 %5108  ;;  %v5104_v18 = vpop.permute.xlu0 %5103  ;;  %v1448_v26 = vsel %vm523_vm4, %v1442_v15, %v5100_v33  ;;  %v1449_v61 = vsel %vm523_vm4, %v1443_v59, %v5101_v34 }
 0x7b2   :  { %v5106_v8 = vunpack.i.h.bf16 %v5104_v18  ;;  %v5105_v12 = vunpack.i.l.bf16 %v5104_v18  ;;  %v5111_v46 = vunpack.i.h.bf16 %v5109_v14  ;;  %v5110_v3 = vunpack.i.l.bf16 %v5109_v14 }
 0x7b3   :  { %v1453_v24 = vpack.c.bf16 %v1449_v61, %v1448_v26 }
 0x7b4   :  { %v1438_v16 = vsel %vm447_vm3, %v6331_v10, %v5106_v8  ;;  %v1437_v63 = vsel %vm447_vm3, %v6329_v31, %v5105_v12  ;;  %v4278_v31 = vld [vmem:[%s7526_s11] ss:$0 sm:$0xff] }
 0x7b5   :  { %4788 = vmatmul.mubr.msk.bf16.gmra.mrb[56].mxu0 %vm130_vm0, %v1453_v24  ;;  %v5114_v42 = vpop.permute.xlu0 %5113  ;;  %v1444_v25 = vsel %vm1439_vm5, %v1437_v63, %v5110_v3  ;;  %v1445_v2 = vsel %vm1439_vm5, %v1438_v16, %v5111_v46 }
 0x7b6   :  { %v5116_v32 = vunpack.i.h.bf16 %v5114_v42  ;;  %v5115_v7 = vunpack.i.l.bf16 %v5114_v42  ;;  %4791 = vmatprep.mubr.msk.bf16.mxu0 %vm5560_vm2, %v5557_v47 }
 0x7b8   :  { %v1450_v56 = vsel %vm523_vm4, %v1444_v25, %v5115_v7  ;;  %v1451_v41 = vsel %vm523_vm4, %v1445_v2, %v5116_v32 }
 0x7b9   :  { %v1454_v10 = vpack.c.bf16 %v1451_v41, %v1450_v56 }
 0x7bd   :  { %4792 = vmatmul.mubr.msk.bf16.gmra.mrb[60].mxu0 %vm130_vm0, %v1454_v10 }
 0x7be   :  { %4831 = vmatprep.mubr.msk.bf16.mxu0 %vm5560_vm2, %v5557_v47 }
 0x87e   :  { %v1537_v55 = vpop.f32.mrb[52].mxu0 }
 0x87f   :  { %v1538_v30 = vadd.f32 %v4278_v31, %v1537_v55  ;;  %v4785_v57 = vpop.f32.mrb[53].mxu0  ;;  %v5184_v55 = vld [vmem:[%s7529_s14] sm:$0xff]  }
 0x880   :  { %v1540_v51 = vpop.f32.mrb[54].mxu0  ;;  %4796 = vmatpush3.bf16.msra.mxu1 %v5184_v55  ;;  %v5186_v57 = vld [vmem:[%s7529_s14 + $0x10] sm:$0xff]   ;;  %v5191_v55 = vld [vmem:[%s7531_s16 + $0x18] sm:$0xff]  }
 0x881   :  { %v6395_v6 = vadd.f32 %v1538_v30, %v5747_v23  ;;  %v1541_v17 = vadd.f32 %v4278_v31, %v1540_v51  ;;  %v4786_v4 = vpop.f32.mrb[55].mxu0  ;;  %4797 = vmatprep.subr.bf16.mxu1 %v5557_v47  ;;  %v5185_v30 = vld [vmem:[%s7529_s14 + $0x8] sm:$0xff]   ;;  %v5187_v51 = vld [vmem:[%s7529_s14 + $0x18] sm:$0xff]  }
 0x883   :  { %v6398_v35 = vadd.f32 %v1541_v17, %v5751_v27  ;;  %v1568_v1 = vsel %vm130_vm0, %v6395_v6, 0.0 }
 0x884   :  { %1569 = vadd.xlane.f32.xlu1 %v1568_v1  ;;  %4798 = vmatpush3.bf16.msra.mxu1 %v5185_v30  ;;  %v5192_v30 = vld [vmem:[%s7531_s16 + $0x20] sm:$0xff]  }
 0x885   :  { %v1571_v45 = vsel %vm130_vm0, %v6398_v35, 0.0  ;;  %4799 = vmatprep.subr.bf16.mxu1 %v5557_v47 }
 0x886   :  { %1572 = vadd.xlane.f32.xlu0 %v1571_v45 }
 0x888   :  { %v1545_v5 = vpop.f32.mrb[56].mxu0  ;;  %4800 = vmatpush3.bf16.msra.mxu1 %v5186_v57  ;;  %v5193_v57 = vld [vmem:[%s7531_s16 + $0x28] sm:$0xff]  }
 0x889   :  { %v1546_v37 = vadd.f32 %v4278_v31, %v1545_v5  ;;  %v4789_v60 = vpop.f32.mrb[57].mxu0  ;;  %4801 = vmatprep.subr.bf16.mxu1 %v5557_v47 }
 0x88a   :  { %v1548_v43 = vpop.f32.mrb[58].mxu0 }
 0x88b   :  { %v6405_v23 = vadd.f32 %v1546_v37, %v5732_v11  ;;  %v1549_v53 = vadd.f32 %v4278_v31, %v1548_v43  ;;  %v4790_v36 = vpop.f32.mrb[59].mxu0 }
 0x88c   :  { %4802 = vmatpush3.bf16.msra.mxu1 %v5187_v51  ;;  %v5194_v51 = vld [vmem:[%s7531_s16 + $0x30] sm:$0xff]  }
 0x88d   :  { %v6408_v27 = vadd.f32 %v1549_v53, %v5742_v20  ;;  %v1574_v40 = vsel %vm130_vm0, %v6405_v23, 0.0 }
 0x88e   :  { %1575 = vadd.xlane.f32.xlu0 %v1574_v40 }
 0x88f   :  { %v1577_v44 = vsel %vm130_vm0, %v6408_v27, 0.0 }
 0x890   :  { %1578 = vadd.xlane.f32.xlu1 %v1577_v44  ;;  %v1553_v54 = vpop.f32.mrb[60].mxu0 }
 0x891   :  { %v1554_v49 = vadd.f32 %v4278_v31, %v1553_v54  ;;  %v4793_v19 = vpop.f32.mrb[61].mxu0  ;;  %v4286_v54 = vld [vmem:[%s7527_s12] ss:$0 sm:$0xff] }
 0x892   :  { %v1556_v0 = vpop.f32.mrb[62].mxu0 }
 0x893   :  { %v6415_v48 = vadd.f32 %v1554_v49, %v5755_v29  ;;  %v1557_v39 = vadd.f32 %v4278_v31, %v1556_v0  ;;  %v4794_v21 = vpop.f32.mrb[63].mxu0 }
 0x895   :  { %v6418_v20 = vadd.f32 %v1557_v39, %v5732_v11  ;;  %v1580_v22 = vsel %vm130_vm0, %v6415_v48, 0.0 }
 0x896   :  { %1581 = vadd.xlane.f32.xlu0 %v1580_v22 }
 0x897   :  { %v1583_v28 = vsel %vm130_vm0, %v6418_v20, 0.0 }
 0x898   :  { %1584 = vadd.xlane.f32.xlu1 %v1583_v28  ;;  %v4287_v28 = vld [vmem:[%s7528_s13] ss:$0 sm:$0xff] }
 0x911   :  { %v1570_v34 = vpop.xlane.xlu1 %1569 }
 0x912   :  { %v1586_v33 = vmul.f32 0.015625, %v1570_v34 }
 0x913   :  { %v1573_v58 = vpop.xlane.xlu0 %1572 }
 0x914   :  { %v1592_v38 = vsub.f32 %v6395_v6, %v1586_v33  ;;  %v1587_v29 = vmul.f32 0.015625, %v1573_v58 }
 0x916   :  { %v6426_v9 = vsub.f32 %v6398_v35, %v1587_v29  ;;  %v1598_v13 = vmul.f32 %v1592_v38, %v1592_v38 }
 0x918   :  { %v1604_v11 = vsel %vm130_vm0, %v1598_v13, 0.0  ;;  %v1599_v15 = vmul.f32 %v6426_v9, %v6426_v9 }
 0x919   :  { %1605 = vadd.xlane.f32.xlu0 %v1604_v11 }
 0x91a   :  { %v1607_v59 = vsel %vm130_vm0, %v1599_v15, 0.0 }
 0x91b   :  { %v1576_v14 = vpop.xlane.xlu0 %1575  ;;  %1608 = vadd.xlane.f32.xlu1 %v1607_v59 }
 0x91c   :  { %v1588_v18 = vmul.f32 0.015625, %v1576_v14 }
 0x91d   :  { %v1579_v26 = vpop.xlane.xlu1 %1578 }
 0x91e   :  { %v6433_v61 = vsub.f32 %v6405_v23, %v1588_v18  ;;  %v1589_v8 = vmul.f32 0.015625, %v1579_v26 }
 0x920   :  { %v6436_v12 = vsub.f32 %v6408_v27, %v1589_v8  ;;  %v1600_v46 = vmul.f32 %v6433_v61, %v6433_v61 }
 0x922   :  { %v1610_v3 = vsel %vm130_vm0, %v1600_v46, 0.0  ;;  %v1601_v24 = vmul.f32 %v6436_v12, %v6436_v12 }
 0x923   :  { %1611 = vadd.xlane.f32.xlu0 %v1610_v3  ;;  %v1582_v16 = vpop.xlane.xlu0 %1581 }
 0x924   :  { %v1590_v63 = vmul.f32 0.015625, %v1582_v16  ;;  %v1613_v42 = vsel %vm130_vm0, %v1601_v24, 0.0 }
 0x925   :  { %1614 = vadd.xlane.f32.xlu1 %v1613_v42  ;;  %v1585_v32 = vpop.xlane.xlu1 %1584 }
 0x926   :  { %v6445_v7 = vsub.f32 %v6415_v48, %v1590_v63  ;;  %v1591_v25 = vmul.f32 0.015625, %v1585_v32 }
 0x928   :  { %v6448_v2 = vsub.f32 %v6418_v20, %v1591_v25  ;;  %v1602_v56 = vmul.f32 %v6445_v7, %v6445_v7 }
 0x92a   :  { %v1616_v41 = vsel %vm130_vm0, %v1602_v56, 0.0  ;;  %v1603_v10 = vmul.f32 %v6448_v2, %v6448_v2 }
 0x92b   :  { %1617 = vadd.xlane.f32.xlu0 %v1616_v41 }
 0x92c   :  { %v1619_v31 = vsel %vm130_vm0, %v1603_v10, 0.0 }
 0x92d   :  { %1620 = vadd.xlane.f32.xlu1 %v1619_v31  ;;  %v5190_v31 = vld [vmem:[%s7531_s16 + $0x10] sm:$0xff]  }
 0x9a6   :  { %v1606_v17 = vpop.xlane.xlu0 %1605 }
 0x9a7   :  { %v1622_v4 = vmul.f32 0.015625, %v1606_v17  ;;  %v5195_v17 = vld [vmem:[%s7531_s16 + $0x38] sm:$0xff]  }
 0x9a8   :  { %v1609_v1 = vpop.xlane.xlu1 %1608 }
 0x9a9   :  { %v1628_v45 = vadd.f32 1e-05, %v1622_v4  ;;  %v1623_v5 = vmul.f32 0.015625, %v1609_v1  ;;  %v4288_v4 = vld [vmem:[%s7530_s15] ss:$0 sm:$0xff] }
 0x9ab   :  { %5358 = vrsqrt.f32 %v1628_v45  ;;  %v1629_v37 = vadd.f32 1e-05, %v1623_v5 }
 0x9ad   :  { %5360 = vrsqrt.f32 %v1629_v37 }
 0x9b0   :  { %v1612_v60 = vpop.xlane.xlu0 %1611 }
 0x9b1   :  { %v1624_v43 = vmul.f32 0.015625, %v1612_v60 }
 0x9b2   :  { %v1615_v53 = vpop.xlane.xlu1 %1614 }
 0x9b3   :  { %v1630_v36 = vadd.f32 1e-05, %v1624_v43  ;;  %v1625_v40 = vmul.f32 0.015625, %v1615_v53 }
 0x9b5   :  { %v5359_v44 = vpop.eup %5358  ;;  %5362 = vrsqrt.f32 %v1630_v36  ;;  %v1631_v49 = vadd.f32 1e-05, %v1625_v40 }
 0x9b6   :  { %v1640_v19 = vmul.f32 %v5359_v44, %v1592_v38 }
 0x9b7   :  { %v5361_v0 = vpop.eup %5360  ;;  %5364 = vrsqrt.f32 %v1631_v49 }
 0x9b8   :  { %v1652_v39 = vmul.f32 %v4286_v54, %v1640_v19  ;;  %v1641_v21 = vmul.f32 %v5361_v0, %v6426_v9  ;;  %v1618_v22 = vpop.xlane.xlu0 %1617 }
 0x9b9   :  { %v1626_v34 = vmul.f32 0.015625, %v1618_v22 }
 0x9ba   :  { %v1653_v33 = vmul.f32 %v4286_v54, %v1641_v21  ;;  %v1621_v58 = vpop.xlane.xlu1 %1620  ;;  %v1664_v11 = vadd.f32 %v4287_v28, %v1652_v39 }
 0x9bb   :  { %v1632_v29 = vadd.f32 1e-05, %v1626_v34  ;;  %v1627_v13 = vmul.f32 0.015625, %v1621_v58 }
 0x9bc   :  { %v1665_v15 = vadd.f32 %v4287_v28, %v1653_v33 }
 0x9bd   :  { %5366 = vrsqrt.f32 %v1632_v29  ;;  %v1633_v59 = vadd.f32 1e-05, %v1627_v13 }
 0x9be   :  { %v1670_v38 = vpack.c.bf16 %v1665_v15, %v1664_v11 }
 0x9bf   :  { %v5363_v14 = vpop.eup %5362  ;;  %5368 = vrsqrt.f32 %v1633_v59 }
 0x9c0   :  { %4804 = vmatmul.mubr.msk.bf16.vlgmr.msra.gmra.mrb[60].mxu1 %vm130_vm0, %v1670_v38  ;;  %v1642_v9 = vmul.f32 %v5363_v14, %v6433_v61 }
 0x9c1   :  { %v5365_v18 = vpop.eup %5364  ;;  %4807 = vmatprep.mubr.msk.bf16.mxu1 %vm5560_vm2, %v5557_v47 }
 0x9c2   :  { %v1643_v26 = vmul.f32 %v5365_v18, %v6436_v12  ;;  %v1654_v8 = vmul.f32 %v4286_v54, %v1642_v9 }
 0x9c4   :  { %v1655_v46 = vmul.f32 %v4286_v54, %v1643_v26  ;;  %v1666_v3 = vadd.f32 %v4287_v28, %v1654_v8 }
 0x9c6   :  { %v1667_v24 = vadd.f32 %v4287_v28, %v1655_v46 }
 0x9c7   :  { %v5367_v16 = vpop.eup %5366 }
 0x9c8   :  { %v1671_v63 = vpack.c.bf16 %v1667_v24, %v1666_v3  ;;  %v1644_v42 = vmul.f32 %v5367_v16, %v6445_v7  ;;  %v5188_v7 = vld [vmem:[%s7531_s16] sm:$0xff]  }
 0x9c9   :  { %v5369_v32 = vpop.eup %5368  ;;  %4816 = vmatpush3.bf16.msra.mxu0 %v5188_v7 }
 0x9ca   :  { %4808 = vmatmul.mubr.msk.bf16.gmra.mrb[64].mxu1 %vm130_vm0, %v1671_v63  ;;  %v1645_v25 = vmul.f32 %v5369_v32, %v6448_v2  ;;  %v1656_v61 = vmul.f32 %v4286_v54, %v1644_v42  ;;  %4817 = vmatprep.subr.bf16.mxu0 %v5557_v47  ;;  %v5189_v2 = vld [vmem:[%s7531_s16 + $0x8] sm:$0xff]  }
 0x9cb   :  { %4811 = vmatprep.mubr.msk.bf16.mxu1 %vm5560_vm2, %v5557_v47 }
 0x9cc   :  { %v1657_v56 = vmul.f32 %v4286_v54, %v1645_v25  ;;  %v1668_v41 = vadd.f32 %v4287_v28, %v1656_v61 }
 0x9cd   :  { %4818 = vmatpush3.bf16.msra.mxu0 %v5189_v2 }
 0x9ce   :  { %v1669_v12 = vadd.f32 %v4287_v28, %v1657_v56  ;;  %4819 = vmatprep.subr.bf16.mxu0 %v5557_v47 }
 0x9d0   :  { %v1672_v10 = vpack.c.bf16 %v1669_v12, %v1668_v41 }
 0x9d1   :  { %4820 = vmatpush3.bf16.msra.mxu0 %v5190_v31 }
 0x9d2   :  { %4812 = vmatmul.mubr.msk.bf16.gmra.mrb[68].mxu1 %vm130_vm0, %v1672_v10  ;;  %4821 = vmatprep.subr.bf16.mxu0 %v5557_v47 }
 0x9d3   :  { %2181 = vmatprep.mubr.bf16.mxu1 %v5556_v62 }
 0x9d5   :  { %4822 = vmatpush3.bf16.msra.mxu0 %v5191_v55 }
 0x9d6   :  { %4823 = vmatprep.subr.bf16.mxu0 %v5557_v47 }
 0x9d9   :  { %4824 = vmatpush3.bf16.msra.mxu0 %v5192_v30 }
 0x9da   :  { %4825 = vmatprep.subr.bf16.mxu0 %v5557_v47 }
 0x9dd   :  { %4826 = vmatpush3.bf16.msra.mxu0 %v5193_v57 }
 0x9de   :  { %4827 = vmatprep.subr.bf16.mxu0 %v5557_v47 }
 0x9e1   :  { %4828 = vmatpush3.bf16.msra.mxu0 %v5194_v51 }
 0x9e2   :  { %4829 = vmatprep.subr.bf16.mxu0 %v5557_v47 }
 0x9e5   :  { %4830 = vmatpush3.bf16.msra.mxu0 %v5195_v17 }
 0x9e6   :  { %4861 = vmatprep.subr.bf16.mxu0 %v5557_v47 }
 0xa93   :  { %v1755_v1 = vpop.f32.mrb[60].mxu1 }
 0xa94   :  { %v1756_v45 = vadd.f32 %v4288_v4, %v1755_v1  ;;  %v4805_v5 = vpop.f32.mrb[61].mxu1 }
 0xa95   :  { %v1758_v37 = vpop.f32.mrb[62].mxu1 }
 0xa96   :  { %v1778_v60 = vmul.f32 %v1756_v45, %v1756_v45  ;;  %v1759_v43 = vadd.f32 %v4288_v4, %v1758_v37  ;;  %v4806_v53 = vpop.f32.mrb[63].mxu1 }
 0xa98   :  { %v1784_v36 = vmul.f32 %v1778_v60, %v1756_v45  ;;  %v1779_v40 = vmul.f32 %v1759_v43, %v1759_v43 }
 0xa9a   :  { %v1790_v44 = vmul.f32 0.044715, %v1784_v36  ;;  %v1785_v54 = vmul.f32 %v1779_v40, %v1759_v43 }
 0xa9c   :  { %v1796_v49 = vadd.f32 %v1790_v44, %v1756_v45  ;;  %v1791_v19 = vmul.f32 0.044715, %v1785_v54 }
 0xa9d   :  { %v1763_v0 = vpop.f32.mrb[64].mxu1 }
 0xa9e   :  { %v1802_v39 = vmul.f32 0.7978846, %v1796_v49  ;;  %v1797_v21 = vadd.f32 %v1791_v19, %v1759_v43  ;;  %v1764_v22 = vadd.f32 %v4288_v4, %v1763_v0  ;;  %v4809_v28 = vpop.f32.mrb[65].mxu1 }
 0xa9f   :  { %v1766_v34 = vpop.f32.mrb[66].mxu1 }
 0xaa0   :  { %5370 = vtanh.f32 %v1802_v39  ;;  %v1803_v33 = vmul.f32 0.7978846, %v1797_v21  ;;  %v1780_v58 = vmul.f32 %v1764_v22, %v1764_v22  ;;  %v1767_v29 = vadd.f32 %v4288_v4, %v1766_v34  ;;  %v4810_v13 = vpop.f32.mrb[67].mxu1 }
 0xaa2   :  { %5372 = vtanh.f32 %v1803_v33  ;;  %v1786_v11 = vmul.f32 %v1780_v58, %v1764_v22  ;;  %v1781_v15 = vmul.f32 %v1767_v29, %v1767_v29 }
 0xaa4   :  { %v1792_v59 = vmul.f32 0.044715, %v1786_v11  ;;  %v1787_v38 = vmul.f32 %v1781_v15, %v1767_v29 }
 0xaa5   :  { %v1771_v14 = vpop.f32.mrb[68].mxu1 }
 0xaa6   :  { %v1798_v9 = vadd.f32 %v1792_v59, %v1764_v22  ;;  %v1793_v18 = vmul.f32 0.044715, %v1787_v38  ;;  %v1772_v26 = vadd.f32 %v4288_v4, %v1771_v14  ;;  %v4813_v8 = vpop.f32.mrb[69].mxu1 }
 0xaa7   :  { %v1774_v46 = vpop.f32.mrb[70].mxu1 }
 0xaa8   :  { %v1804_v3 = vmul.f32 0.7978846, %v1798_v9  ;;  %v1799_v24 = vadd.f32 %v1793_v18, %v1767_v29  ;;  %v1782_v16 = vmul.f32 %v1772_v26, %v1772_v26  ;;  %v1775_v63 = vadd.f32 %v4288_v4, %v1774_v46  ;;  %v4814_v42 = vpop.f32.mrb[71].mxu1 }
 0xaaa   :  { %v5371_v32 = vpop.eup %5370  ;;  %5374 = vtanh.f32 %v1804_v3  ;;  %v1805_v25 = vmul.f32 0.7978846, %v1799_v24  ;;  %v1788_v61 = vmul.f32 %v1782_v16, %v1772_v26  ;;  %v1783_v56 = vmul.f32 %v1775_v63, %v1775_v63 }
 0xaab   :  { %v1814_v41 = vadd.f32 1.0, %v5371_v32 }
 0xaac   :  { %v5373_v12 = vpop.eup %5372  ;;  %5376 = vtanh.f32 %v1805_v25  ;;  %v1794_v10 = vmul.f32 0.044715, %v1788_v61  ;;  %v1789_v7 = vmul.f32 %v1783_v56, %v1775_v63 }
 0xaad   :  { %v1820_v2 = vmul.f32 0.5, %v1814_v41  ;;  %v1815_v31 = vadd.f32 1.0, %v5373_v12 }
 0xaae   :  { %v1800_v55 = vadd.f32 %v1794_v10, %v1772_v26  ;;  %v1795_v30 = vmul.f32 0.044715, %v1789_v7 }
 0xaaf   :  { %v1821_v57 = vmul.f32 0.5, %v1815_v31  ;;  %v1826_v1 = vmul.f32 %v1820_v2, %v1756_v45 }
 0xab0   :  { %v1806_v51 = vmul.f32 0.7978846, %v1800_v55  ;;  %v1801_v17 = vadd.f32 %v1795_v30, %v1775_v63 }
 0xab1   :  { %v1827_v4 = vmul.f32 %v1821_v57, %v1759_v43 }
 0xab2   :  { %5378 = vtanh.f32 %v1806_v51  ;;  %v1807_v5 = vmul.f32 0.7978846, %v1801_v17 }
 0xab3   :  { %v1832_v37 = vpack.c.bf16 %v1827_v4, %v1826_v1 }
 0xab4   :  { %v5375_v60 = vpop.eup %5374  ;;  %5380 = vtanh.f32 %v1807_v5 }
 0xab5   :  { %4832 = vmatmul.mubr.bf16.vlgmr.msra.gmra.mrb[64].mxu0 %v1832_v37  ;;  %v1816_v53 = vadd.f32 1.0, %v5375_v60 }
 0xab6   :  { %v5377_v36 = vpop.eup %5376  ;;  %4835 = vmatprep.mubr.msk.bf16.mxu0 %vm5560_vm2, %v5557_v47 }
 0xab7   :  { %v1817_v40 = vadd.f32 1.0, %v5377_v36  ;;  %v1822_v44 = vmul.f32 0.5, %v1816_v53 }
 0xab9   :  { %v1823_v54 = vmul.f32 0.5, %v1817_v40  ;;  %v1828_v49 = vmul.f32 %v1822_v44, %v1764_v22  ;;  %v4296_v22 = vld [vmem:[%s7532_s17] ss:$0 sm:$0xff] }
 0xabb   :  { %v1829_v19 = vmul.f32 %v1823_v54, %v1767_v29 }
 0xabc   :  { %v5379_v0 = vpop.eup %5378 }
 0xabd   :  { %v1833_v39 = vpack.c.bf16 %v1829_v19, %v1828_v49  ;;  %v1818_v45 = vadd.f32 1.0, %v5379_v0 }
 0xabe   :  { %v5381_v43 = vpop.eup %5380 }
 0xabf   :  { %4836 = vmatmul.mubr.bf16.gmra.mrb[68].mxu0 %v1833_v39  ;;  %v1819_v21 = vadd.f32 1.0, %v5381_v43  ;;  %v1824_v28 = vmul.f32 0.5, %v1818_v45 }
 0xac0   :  { %4839 = vmatprep.mubr.msk.bf16.mxu0 %vm5560_vm2, %v5557_v47 }
 0xac1   :  { %v1825_v34 = vmul.f32 0.5, %v1819_v21  ;;  %v1830_v33 = vmul.f32 %v1824_v28, %v1772_v26 }
 0xac3   :  { %v1831_v58 = vmul.f32 %v1825_v34, %v1775_v63 }
 0xac5   :  { %v1834_v13 = vpack.c.bf16 %v1831_v58, %v1830_v33 }
 0xac7   :  { %4840 = vmatmul.mubr.bf16.gmra.mrb[72].mxu0 %v1834_v13 }
 0xac8   :  { %4867 = vmatprep.mubr.msk.bf16.mxu0 %vm5560_vm2, %v5557_v47 }
 0xb88   :  { %v1940_v29 = vpop.f32.mrb[64].mxu0 }
 0xb89   :  { %v1941_v11 = vadd.f32 %v4296_v22, %v1940_v29  ;;  %v4833_v15 = vpop.f32.mrb[65].mxu0  ;;  %v5198_v29 = vld [vmem:[%s7583_s3 + $0x44] ss:$8 sps:$4 sm:$0xff]  }
 0xb8a   :  { %v1943_v59 = vpop.f32.mrb[66].mxu0  ;;  %2149 = vmatprep.subr.bf16.mxu1 %v5198_v29  ;;  %v5201_v15 = vld [vmem:[%s7583_s3 + $0x54] ss:$8 sps:$4 sm:$0xff]  }
 0xb8b   :  { %v6535_v38 = vadd.f32 %v1941_v11, %v6395_v6  ;;  %v1944_v14 = vadd.f32 %v4296_v22, %v1943_v59  ;;  %v4834_v9 = vpop.f32.mrb[67].mxu0  ;;  %v5196_v11 = vld [vmem:[%s7583_s3 + $0x40] ss:$8 sps:$4 sm:$0xff]   ;;  %v5199_v59 = vld [vmem:[%s7583_s3 + $0x50] ss:$8 sps:$4 sm:$0xff]  }
 0xb8c   :  { %2150 = vmatpush1.bf16.msra.mxu1 %v5196_v11  ;;  %v5202_v9 = vld [vmem:[%s7583_s3 + $0x60] ss:$8 sps:$4 sm:$0xff]  }
 0xb8d   :  { %v6538_v18 = vadd.f32 %v1944_v14, %v6398_v35  ;;  %v1973_v26 = vsel %vm130_vm0, %v6535_v38, 0.0  ;;  %2151 = vmatprep.subr.bf16.mxu1 %v5201_v15  ;;  %v5204_v14 = vld [vmem:[%s7583_s3 + $0x64] ss:$8 sps:$4 sm:$0xff]  }
 0xb8e   :  { %1974 = vadd.xlane.f32.xlu0 %v1973_v26  ;;  %v5207_v26 = vld [vmem:[%s7583_s3 + $0x74] ss:$8 sps:$4 sm:$0xff]  }
 0xb8f   :  { %v1976_v8 = vsel %vm130_vm0, %v6538_v18, 0.0 }
 0xb90   :  { %1977 = vadd.xlane.f32.xlu1 %v1976_v8  ;;  %2152 = vmatpush1.bf16.msra.mxu1 %v5199_v59  ;;  %v5205_v8 = vld [vmem:[%s7583_s3 + $0x70] ss:$8 sps:$4 sm:$0xff]  }
 0xb91   :  { %2153 = vmatprep.subr.bf16.mxu1 %v5204_v14 }
 0xb92   :  { %v1948_v46 = vpop.f32.mrb[68].mxu0 }
 0xb93   :  { %v1949_v3 = vadd.f32 %v4296_v22, %v1948_v46  ;;  %v4837_v24 = vpop.f32.mrb[69].mxu0 }
 0xb94   :  { %v1951_v16 = vpop.f32.mrb[70].mxu0  ;;  %2154 = vmatpush1.bf16.msra.mxu1 %v5202_v9 }
 0xb95   :  { %v6545_v6 = vadd.f32 %v1949_v3, %v6405_v23  ;;  %v1952_v63 = vadd.f32 %v4296_v22, %v1951_v16  ;;  %v4838_v42 = vpop.f32.mrb[71].mxu0  ;;  %2155 = vmatprep.subr.bf16.mxu1 %v5207_v26 }
 0xb97   :  { %v6548_v35 = vadd.f32 %v1952_v63, %v6408_v27  ;;  %v1979_v32 = vsel %vm130_vm0, %v6545_v6, 0.0 }
 0xb98   :  { %1980 = vadd.xlane.f32.xlu0 %v1979_v32  ;;  %2156 = vmatpush1.bf16.msra.mxu1 %v5205_v8 }
 0xb99   :  { %v1982_v25 = vsel %vm130_vm0, %v6548_v35, 0.0  ;;  %4843 = vmatprep.subr.bf16.mxu1 %v5557_v47 }
 0xb9a   :  { %1983 = vadd.xlane.f32.xlu1 %v1982_v25  ;;  %v1956_v61 = vpop.f32.mrb[72].mxu0 }
 0xb9b   :  { %v1957_v56 = vadd.f32 %v4296_v22, %v1956_v61  ;;  %v4841_v41 = vpop.f32.mrb[73].mxu0 }
 0xb9c   :  { %v1959_v12 = vpop.f32.mrb[74].mxu0 }
 0xb9d   :  { %v6555_v23 = vadd.f32 %v1957_v56, %v6415_v48  ;;  %v1960_v10 = vadd.f32 %v4296_v22, %v1959_v12  ;;  %v4842_v7 = vpop.f32.mrb[75].mxu0 }
 0xb9f   :  { %v6558_v27 = vadd.f32 %v1960_v10, %v6418_v20  ;;  %v1985_v2 = vsel %vm130_vm0, %v6555_v23, 0.0  ;;  %v4307_v10 = vld [vmem:[%s7584_s8 + $0x1] ss:$0 sm:$0xff] }
 0xba0   :  { %1986 = vadd.xlane.f32.xlu0 %v1985_v2 }
 0xba1   :  { %v1988_v31 = vsel %vm130_vm0, %v6558_v27, 0.0 }
 0xba2   :  { %1989 = vadd.xlane.f32.xlu1 %v1988_v31 }
 0xc1b   :  { %v1975_v55 = vpop.xlane.xlu0 %1974 }
 0xc1c   :  { %v1991_v30 = vmul.f32 0.015625, %v1975_v55 }
 0xc1d   :  { %v1978_v57 = vpop.xlane.xlu1 %1977 }
 0xc1e   :  { %v6565_v51 = vsub.f32 %v6535_v38, %v1991_v30  ;;  %v1992_v48 = vmul.f32 0.015625, %v1978_v57 }
 0xc20   :  { %v6568_v17 = vsub.f32 %v6538_v18, %v1992_v48  ;;  %v2003_v20 = vmul.f32 %v6565_v51, %v6565_v51  ;;  %v4308_v48 = vld [vmem:[%s7585_s0 + $0x1] ss:$0 sm:$0xff] }
 0xc22   :  { %v2009_v1 = vsel %vm130_vm0, %v2003_v20, 0.0  ;;  %v2004_v4 = vmul.f32 %v6568_v17, %v6568_v17 }
 0xc23   :  { %2010 = vadd.xlane.f32.xlu0 %v2009_v1 }
 0xc24   :  { %v2012_v5 = vsel %vm130_vm0, %v2004_v4, 0.0 }
 0xc25   :  { %v1981_v37 = vpop.xlane.xlu0 %1980  ;;  %2013 = vadd.xlane.f32.xlu1 %v2012_v5 }
 0xc26   :  { %v1993_v60 = vmul.f32 0.015625, %v1981_v37 }
 0xc27   :  { %v1984_v53 = vpop.xlane.xlu1 %1983 }
 0xc28   :  { %v6577_v36 = vsub.f32 %v6545_v6, %v1993_v60  ;;  %v1994_v40 = vmul.f32 0.015625, %v1984_v53 }
 0xc2a   :  { %v6580_v44 = vsub.f32 %v6548_v35, %v1994_v40  ;;  %v2005_v54 = vmul.f32 %v6577_v36, %v6577_v36 }
 0xc2c   :  { %v2015_v49 = vsel %vm130_vm0, %v2005_v54, 0.0  ;;  %v2006_v19 = vmul.f32 %v6580_v44, %v6580_v44 }
 0xc2d   :  { %2016 = vadd.xlane.f32.xlu0 %v2015_v49  ;;  %v1987_v0 = vpop.xlane.xlu0 %1986 }
 0xc2e   :  { %v1995_v39 = vmul.f32 0.015625, %v1987_v0  ;;  %v2018_v45 = vsel %vm130_vm0, %v2006_v19, 0.0 }
 0xc2f   :  { %2019 = vadd.xlane.f32.xlu1 %v2018_v45  ;;  %v1990_v43 = vpop.xlane.xlu1 %1989 }
 0xc30   :  { %v6589_v21 = vsub.f32 %v6555_v23, %v1995_v39  ;;  %v1996_v28 = vmul.f32 0.015625, %v1990_v43 }
 0xc32   :  { %v6592_v34 = vsub.f32 %v6558_v27, %v1996_v28  ;;  %v2007_v33 = vmul.f32 %v6589_v21, %v6589_v21 }
 0xc34   :  { %v2021_v58 = vsel %vm130_vm0, %v2007_v33, 0.0  ;;  %v2008_v13 = vmul.f32 %v6592_v34, %v6592_v34 }
 0xc35   :  { %2022 = vadd.xlane.f32.xlu0 %v2021_v58 }
 0xc36   :  { %v2024_v22 = vsel %vm130_vm0, %v2008_v13, 0.0 }
 0xc37   :  { %2025 = vadd.xlane.f32.xlu1 %v2024_v22 }
 0xcb0   :  { %v2011_v46 = vpop.xlane.xlu0 %2010 }
 0xcb1   :  { %v2027_v3 = vmul.f32 0.015625, %v2011_v46 }
 0xcb2   :  { %v2014_v24 = vpop.xlane.xlu1 %2013 }
 0xcb3   :  { %v2033_v16 = vadd.f32 1e-05, %v2027_v3  ;;  %v2028_v63 = vmul.f32 0.015625, %v2014_v24 }
 0xcb5   :  { %5382 = vrsqrt.f32 %v2033_v16  ;;  %v2034_v42 = vadd.f32 1e-05, %v2028_v63 }
 0xcb7   :  { %5384 = vrsqrt.f32 %v2034_v42 }
 0xcba   :  { %v2017_v32 = vpop.xlane.xlu0 %2016 }
 0xcbb   :  { %v2029_v25 = vmul.f32 0.015625, %v2017_v32 }
 0xcbc   :  { %v2020_v61 = vpop.xlane.xlu1 %2019 }
 0xcbd   :  { %v2035_v56 = vadd.f32 1e-05, %v2029_v25  ;;  %v2030_v41 = vmul.f32 0.015625, %v2020_v61 }
 0xcbf   :  { %v5383_v12 = vpop.eup %5382  ;;  %5386 = vrsqrt.f32 %v2035_v56  ;;  %v2036_v7 = vadd.f32 1e-05, %v2030_v41 }
 0xcc0   :  { %v2045_v2 = vmul.f32 %v5383_v12, %v6565_v51 }
 0xcc1   :  { %v5385_v31 = vpop.eup %5384  ;;  %5388 = vrsqrt.f32 %v2036_v7 }
 0xcc2   :  { %v2057_v55 = vmul.f32 %v4307_v10, %v2045_v2  ;;  %v2046_v30 = vmul.f32 %v5385_v31, %v6568_v17  ;;  %v2023_v57 = vpop.xlane.xlu0 %2022 }
 0xcc3   :  { %v2031_v20 = vmul.f32 0.015625, %v2023_v57 }
 0xcc4   :  { %v2058_v1 = vmul.f32 %v4307_v10, %v2046_v30  ;;  %v2026_v4 = vpop.xlane.xlu1 %2025  ;;  %v2069_v60 = vadd.f32 %v4308_v48, %v2057_v55 }
 0xcc5   :  { %v2037_v5 = vadd.f32 1e-05, %v2031_v20  ;;  %v2032_v37 = vmul.f32 0.015625, %v2026_v4 }
 0xcc6   :  { %v2070_v53 = vadd.f32 %v4308_v48, %v2058_v1 }
 0xcc7   :  { %5390 = vrsqrt.f32 %v2037_v5  ;;  %v2038_v40 = vadd.f32 1e-05, %v2032_v37 }
 0xcc8   :  { %v2075_v51 = vpack.c.bf16 %v2070_v53, %v2069_v60 }
 0xcc9   :  { %v5387_v54 = vpop.eup %5386  ;;  %5392 = vrsqrt.f32 %v2038_v40 }
 0xcca   :  { %4326 = vmatmul.mubr.msk.bf16.vlgmr.msra.gmra.mrb[72].mxu1 %vm130_vm0, %v2075_v51  ;;  %v2047_v17 = vmul.f32 %v5387_v54, %v6577_v36 }
 0xccb   :  { %v5389_v49 = vpop.eup %5388  ;;  %2191 = vmatprep.mubr.bf16.mxu1 %v5556_v62 }
 0xccc   :  { %v2048_v19 = vmul.f32 %v5389_v49, %v6580_v44  ;;  %v2059_v0 = vmul.f32 %v4307_v10, %v2047_v17 }
 0xcce   :  { %v2060_v39 = vmul.f32 %v4307_v10, %v2048_v19  ;;  %v2071_v45 = vadd.f32 %v4308_v48, %v2059_v0 }
 0xcd0   :  { %v2072_v43 = vadd.f32 %v4308_v48, %v2060_v39 }
 0xcd1   :  { %v5391_v28 = vpop.eup %5390 }
 0xcd2   :  { %v2076_v33 = vpack.c.bf16 %v2072_v43, %v2071_v45  ;;  %v2049_v58 = vmul.f32 %v5391_v28, %v6589_v21  ;;  %v4317_v21 = vld [vmem:[%s7586_s2 + $0x2] sm:$0x3]  ;;  %s7589_s2 = smov 64  }
 0xcd3   :  { %v5393_v13 = vpop.eup %5392  ;;  %v2093_v59 = vrot.slane %v4317_v21, %v5831_v50 }
 0xcd4   :  { %4327 = vmatmul.mubr.msk.bf16.gmra.mrb[76].mxu1 %vm130_vm0, %v2076_v33  ;;  %v2050_v22 = vmul.f32 %v5393_v13, %v6592_v34  ;;  %v2061_v29 = vmul.f32 %v4307_v10, %v2049_v58  ;;  %v2097_v34 = vrot.slane %v4317_v21, %v5836_v52 }
 0xcd5   :  { %2201 = vmatprep.mubr.bf16.mxu1 %v5556_v62 }
 0xcd6   :  { %v2062_v36 = vmul.f32 %v4307_v10, %v2050_v22  ;;  %v2073_v11 = vadd.f32 %v4308_v48, %v2061_v29 }
 0xcd8   :  { %v2074_v15 = vadd.f32 %v4308_v48, %v2062_v36 }
 0xcda   :  { %v2077_v44 = vpack.c.bf16 %v2074_v15, %v2073_v11 }
 0xcdc   :  { %4328 = vmatmul.mubr.msk.bf16.gmra.mrb[80].mxu1 %vm130_vm0, %v2077_v44 }
 0xcdd   :  { %4849 = vmatprep.mubr.msk.bf16.mxu1 %vm5560_vm2, %v5557_v47 }
 0xd9d   :  { %v2183_v14 = vpop.f32.mrb[72].mxu1 }
 0xd9e   :  { %v2184_v9 = vadd.f32 %v2183_v14, %v2093_v59  ;;  %v2185_v26 = vpop.f32.mrb[73].mxu1 }
 0xd9f   :  { %v2187_v8 = vpop.f32.mrb[74].mxu1  ;;  %v2186_v24 = vadd.f32 %v2185_v26, %v2097_v34 }
 0xda0   :  { %v2188_v46 = vadd.f32 %v2187_v8, %v2093_v59  ;;  %v2189_v3 = vpop.f32.mrb[75].mxu1  ;;  %v2212_v63 = vmul.f32 0.25, %v2184_v9 }
 0xda1   :  { %v2190_v16 = vadd.f32 %v2189_v3, %v2097_v34 }
 0xda2   :  { %v2213_v42 = vmul.f32 0.25, %v2188_v46  ;;  %v6649_v32 = vpack.c.bf16 %v2188_v46, %v2184_v9 }
 0xda3   :  { %v6651_v25 = vpack.c.bf16 %v2190_v16, %v2186_v24 }
 0xda4   :  { %v6653_v61 = vpack.c.bf16 %v2213_v42, %v2212_v63  ;;  %2227 = vrot.lane.b32.xlu0 %v6649_v32, %s7589_s2 }
 0xda5   :  { %4862 = vmatpush3.bf16.msra.mxu0 %v6651_v25 }
 0xda6   :  { %4863 = vmatprep.subr.bf16.mxu0 %v5557_v47 }
 0xda7   :  { %v2193_v56 = vpop.f32.mrb[76].mxu1 }
 0xda8   :  { %v2194_v41 = vadd.f32 %v2193_v56, %v2093_v59  ;;  %v2195_v12 = vpop.f32.mrb[77].mxu1  ;;  %2455 = vrot.lane.b32.xlu0 %v6649_v32, %s7590_s7  ;;  %v6756_v56 = vld [vmem:[%s7587_s9] sm:$0xff] }
 0xda9   :  { %v2197_v10 = vpop.f32.mrb[78].mxu1  ;;  %v2196_v31 = vadd.f32 %v2195_v12, %v2097_v34 }
 0xdaa   :  { %v2198_v7 = vadd.f32 %v2197_v10, %v2093_v59  ;;  %v2199_v2 = vpop.f32.mrb[79].mxu1  ;;  %v2214_v30 = vmul.f32 0.25, %v2194_v41 }
 0xdab   :  { %v2200_v55 = vadd.f32 %v2199_v2, %v2097_v34 }
 0xdac   :  { %v2215_v57 = vmul.f32 0.25, %v2198_v7  ;;  %v6661_v48 = vpack.c.bf16 %v2198_v7, %v2194_v41  ;;  %v6764_v7 = vld [vmem:[%s7587_s9 + $0x8] sm:$0xff] }
 0xdad   :  { %v6663_v20 = vpack.c.bf16 %v2200_v55, %v2196_v31 }
 0xdae   :  { %v6665_v1 = vpack.c.bf16 %v2215_v57, %v2214_v30  ;;  %2229 = vrot.lane.b32.xlu1 %v6661_v48, %s7589_s2 }
 0xdaf   :  { %v2203_v4 = vpop.f32.mrb[80].mxu1  ;;  %4864 = vmatpush3.bf16.msra.mxu0 %v6663_v20 }
 0xdb0   :  { %v2204_v5 = vadd.f32 %v2203_v4, %v2093_v59  ;;  %v2205_v37 = vpop.f32.mrb[81].mxu1  ;;  %4865 = vmatprep.subr.bf16.mxu0 %v5557_v47  ;;  %v6776_v4 = vld [vmem:[%s7587_s9 + $0x10] sm:$0xff] }
 0xdb1   :  { %v2207_v60 = vpop.f32.mrb[82].mxu1  ;;  %v2206_v51 = vadd.f32 %v2205_v37, %v2097_v34 }
 0xdb2   :  { %v2208_v53 = vadd.f32 %v2207_v60, %v2093_v59  ;;  %v2209_v40 = vpop.f32.mrb[83].mxu1  ;;  %v2216_v17 = vmul.f32 0.25, %v2204_v5 }
 0xdb3   :  { %v2210_v54 = vadd.f32 %v2209_v40, %v2097_v34 }
 0xdb4   :  { %v2217_v49 = vmul.f32 0.25, %v2208_v53  ;;  %v6671_v19 = vpack.c.bf16 %v2208_v53, %v2204_v5  ;;  %v6784_v53 = vld [vmem:[%s7587_s9 + $0x18] sm:$0xff] }
 0xdb5   :  { %v6673_v0 = vpack.c.bf16 %v2210_v54, %v2206_v51 }
 0xdb6   :  { %v6675_v39 = vpack.c.bf16 %v2217_v49, %v2216_v17  ;;  %2459 = vrot.lane.b32.xlu0 %v6671_v19, %s7590_s7  ;;  %2231 = vrot.lane.b32.xlu1 %v6671_v19, %s7589_s2 }
 0xdb7   :  { %4866 = vmatpush3.bf16.msra.mxu0 %v6673_v0 }
 0xdb8   :  { %4897 = vmatprep.subr.bf16.mxu0 %v5557_v47 }
 0xdba   :  { %2689 = vrot.lane.b32.xlu0 %v6649_v32, %s7591_s1  ;;  %2457 = vrot.lane.b32.xlu1 %v6661_v48, %s7590_s7 }
 0xdbe   :  { %2691 = vrot.lane.b32.xlu0 %v6661_v48, %s7591_s1  ;;  %2449 = vrot.lane.b32.xlu1 %v6653_v61, %s7592_s28 }
 0xdc2   :  { %2693 = vrot.lane.b32.xlu0 %v6671_v19, %s7591_s1  ;;  %2451 = vrot.lane.b32.xlu1 %v6665_v1, %s7592_s28 }
 0xdc6   :  { %2685 = vrot.lane.b32.xlu0 %v6665_v1, %s7593_s6  ;;  %2453 = vrot.lane.b32.xlu1 %v6675_v39, %s7592_s28 }
 0xdca   :  { %2683 = vrot.lane.b32.xlu1 %v6653_v61, %s7593_s6 }
 0xdce   :  { %2687 = vrot.lane.b32.xlu1 %v6675_v39, %s7593_s6 }
 0xdd2   :  { %2608 = vrot.lane.b32.xlu1 %v6651_v25, %s7592_s28 }
 0xe16   :  { %v2228_v45 = vpop.permute.xlu0 %2227 }
 0xe17   :  { %v2243_v43 = vsel %vm447_vm3, %v2228_v45, 0  ;;  %v6796_v45 = vld [vmem:[%s7587_s9 + $0x20] sm:$0xff] }
 0xe18   :  { %4844 = vmatpush3.bf16.xpose.msra.mxu1 %v2243_v43 }
 0xe19   :  { %4845 = vmatprep.subr.bf16.mxu1 %v5557_v47 }
 0xe1a   :  { %v2456_v22 = vpop.permute.xlu0 %2455 }
 0xe1b   :  { %v2471_v29 = vsel %vm447_vm3, %v2456_v22, 0 }
 0xe20   :  { %v2230_v28 = vpop.permute.xlu1 %2229 }
 0xe21   :  { %v2246_v33 = vsel %vm447_vm3, %v2230_v28, 0 }
 0xe22   :  { %4846 = vmatpush3.bf16.xpose.msra.mxu1 %v2246_v33 }
 0xe23   :  { %4847 = vmatprep.subr.bf16.mxu1 %v5557_v47 }
 0xe28   :  { %v2232_v58 = vpop.permute.xlu1 %2231  ;;  %v2460_v15 = vpop.permute.xlu0 %2459 }
 0xe29   :  { %v2249_v13 = vsel %vm447_vm3, %v2232_v58, 0  ;;  %v2477_v44 = vsel %vm447_vm3, %v2460_v15, 0 }
 0xe2a   :  { %4848 = vmatpush3.bf16.xpose.msra.mxu1 %v2249_v13 }
 0xe2b   :  { %4879 = vmatprep.subr.bf16.mxu1 %v5557_v47 }
 0xe2c   :  { %v2458_v36 = vpop.permute.xlu1 %2457  ;;  %v2690_v21 = vpop.permute.xlu0 %2689 }
 0xe2d   :  { %v2474_v11 = vsel %vm447_vm3, %v2458_v36, 0  ;;  %v2705_v14 = vsel %vm447_vm3, %v2690_v21, 0 }
 0xe30   :  { %v2450_v59 = vpop.permute.xlu1 %2449  ;;  %v2692_v34 = vpop.permute.xlu0 %2691 }
 0xe31   :  { %4850 = vmatmul.mubr.msk.bf16.vlgmr.msra.gmra.mrb[84].mxu1 %vm447_vm3, %v6653_v61  ;;  %v2708_v26 = vsel %vm447_vm3, %v2692_v34, 0 }
 0xe32   :  { %4880 = vmatpush3.bf16.xpose.msra.mxu1 %v2471_v29  ;;  %4853 = vmatprep.mubr.msk.bf16.mxu1 %vm5560_vm2, %v5557_v47 }
 0xe33   :  { %4881 = vmatprep.subr.bf16.mxu1 %v5557_v47 }
 0xe34   :  { %v2452_v9 = vpop.permute.xlu1 %2451  ;;  %v2694_v8 = vpop.permute.xlu0 %2693 }
 0xe35   :  { %v2711_v3 = vsel %vm447_vm3, %v2694_v8, 0 }
 0xe38   :  { %v2454_v46 = vpop.permute.xlu1 %2453  ;;  %v2686_v16 = vpop.permute.xlu0 %2685 }
 0xe39   :  { %4854 = vmatmul.mubr.msk.bf16.gmra.mrb[88].mxu1 %vm447_vm3, %v6665_v1 }
 0xe3a   :  { %4882 = vmatpush3.bf16.xpose.msra.mxu1 %v2474_v11  ;;  %4857 = vmatprep.mubr.msk.bf16.mxu1 %vm5560_vm2, %v5557_v47 }
 0xe3b   :  { %4883 = vmatprep.subr.bf16.mxu1 %v5557_v47 }
 0xe3c   :  { %v2684_v24 = vpop.permute.xlu1 %2683 }
 0xe40   :  { %v2688_v63 = vpop.permute.xlu1 %2687 }
 0xe41   :  { %4858 = vmatmul.mubr.msk.bf16.gmra.mrb[92].mxu1 %vm447_vm3, %v6675_v39 }
 0xe42   :  { %4884 = vmatpush3.bf16.xpose.msra.mxu1 %v2477_v44  ;;  %4885 = vmatprep.mubr.msk.bf16.mxu1 %vm5560_vm2, %v5557_v47 }
 0xe43   :  { %4915 = vmatprep.subr.bf16.mxu1 %v5557_v47 }
 0xe49   :  { %4886 = vmatmul.mubr.msk.bf16.vlgmr.msra.gmra.mrb[96].mxu1 %vm447_vm3, %v2450_v59 }
 0xe4a   :  { %4916 = vmatpush3.bf16.xpose.msra.mxu1 %v2705_v14  ;;  %4889 = vmatprep.mubr.msk.bf16.mxu1 %vm5560_vm2, %v5557_v47 }
 0xe4b   :  { %4917 = vmatprep.subr.bf16.mxu1 %v5557_v47 }
 0xe51   :  { %4890 = vmatmul.mubr.msk.bf16.gmra.mrb[100].mxu1 %vm447_vm3, %v2452_v9 }
 0xe52   :  { %4918 = vmatpush3.bf16.xpose.msra.mxu1 %v2708_v26  ;;  %4893 = vmatprep.mubr.msk.bf16.mxu1 %vm5560_vm2, %v5557_v47 }
 0xe53   :  { %4919 = vmatprep.subr.bf16.mxu1 %v5557_v47 }
 0xe59   :  { %4894 = vmatmul.mubr.msk.bf16.gmra.mrb[104].mxu1 %vm447_vm3, %v2454_v46 }
 0xe5a   :  { %4920 = vmatpush3.bf16.xpose.msra.mxu1 %v2711_v3  ;;  %4921 = vmatprep.mubr.msk.bf16.mxu1 %vm5560_vm2, %v5557_v47 }
 0xe5b   :  { %5055 = vmatprep.subr.bf16.mxu1 %v5557_v47 }
 0xe61   :  { %4922 = vmatmul.mubr.msk.bf16.vlgmr.msra.gmra.mrb[108].mxu1 %vm447_vm3, %v2684_v24 }
 0xe62   :  { %4925 = vmatprep.mubr.msk.bf16.mxu1 %vm5560_vm2, %v5557_v47 }
 0xe69   :  { %4926 = vmatmul.mubr.msk.bf16.gmra.mrb[112].mxu1 %vm447_vm3, %v2686_v16 }
 0xe6a   :  { %4929 = vmatprep.mubr.msk.bf16.mxu1 %vm5560_vm2, %v5557_v47 }
 0xe71   :  { %4930 = vmatmul.mubr.msk.bf16.gmra.mrb[116].mxu1 %vm447_vm3, %v2688_v63 }
 0xe72   :  { %4961 = vmatprep.mubr.msk.bf16.mxu1 %vm5560_vm2, %v5557_v47 }
 0xf04   :  { %v2285_v42 = vpop.f32.mrb[84].mxu1 }
 0xf05   :  { %v6759_v41 = vadd.f32 %v6756_v56, %v2285_v42  ;;  %v4851_v12 = vpop.f32.mrb[85].mxu1 }
 0xf06   :  { %v2288_v10 = vpop.f32.mrb[86].mxu1 }
 0xf07   :  { %v6767_v2 = vadd.f32 %v6764_v7, %v2288_v10  ;;  %v4852_v31 = vpop.f32.mrb[87].mxu1  ;;  %v2308_v55 = vsel %vm523_vm4, %v6759_v41, -inf }
 0xf08   :  { %2309 = vmax.xlane.f32.xlu0 %v2308_v55  ;;  %v6815_v55 = vld [vmem:[%s7587_s9 + $0x28] sm:$0xff]  ;;  %s7594_s9 = smov 16  }
 0xf09   :  { %v2311_v30 = vsel %vm523_vm4, %v6767_v2, -inf }
 0xf0a   :  { %2312 = vmax.xlane.f32.xlu1 %v2311_v30 }
 0xf0c   :  { %v2293_v57 = vpop.f32.mrb[88].mxu1 }
 0xf0d   :  { %v6779_v5 = vadd.f32 %v6776_v4, %v2293_v57  ;;  %v4855_v37 = vpop.f32.mrb[89].mxu1 }
 0xf0e   :  { %v2296_v60 = vpop.f32.mrb[90].mxu1 }
 0xf0f   :  { %v6787_v40 = vadd.f32 %v6784_v53, %v2296_v60  ;;  %v4856_v51 = vpop.f32.mrb[91].mxu1  ;;  %v2314_v54 = vsel %vm523_vm4, %v6779_v5, -inf }
 0xf10   :  { %2315 = vmax.xlane.f32.xlu0 %v2314_v54 }
 0xf11   :  { %v2317_v17 = vsel %vm523_vm4, %v6787_v40, -inf }
 0xf14   :  { %2318 = vmax.xlane.f32.xlu0 %v2317_v17  ;;  %v2301_v49 = vpop.f32.mrb[92].mxu1 }
 0xf15   :  { %v6799_v43 = vadd.f32 %v6796_v45, %v2301_v49  ;;  %v4859_v28 = vpop.f32.mrb[93].mxu1 }
 0xf16   :  { %v2304_v33 = vpop.f32.mrb[94].mxu1 }
 0xf17   :  { %v4860_v58 = vpop.f32.mrb[95].mxu1  ;;  %v2320_v13 = vsel %vm523_vm4, %v6799_v43, -inf  ;;  %v6818_v30 = vadd.f32 %v6815_v55, %v2304_v33 }
 0xf18   :  { %2321 = vmax.xlane.f32.xlu1 %v2320_v13 }
 0xf19   :  { %v2323_v17 = vsel %vm523_vm4, %v6818_v30, -inf }
 0xf1c   :  { %v2513_v22 = vpop.f32.mrb[96].mxu1 }
 0xf1d   :  { %v6804_v29 = vadd.f32 %v6756_v56, %v2513_v22  ;;  %v4887_v36 = vpop.f32.mrb[97].mxu1 }
 0xf1e   :  { %v2516_v11 = vpop.f32.mrb[98].mxu1 }
 0xf1f   :  { %v4888_v15 = vpop.f32.mrb[99].mxu1  ;;  %v2536_v44 = vsel %vm523_vm4, %v6804_v29, -inf  ;;  %v6821_v54 = vadd.f32 %v6764_v7, %v2516_v11 }
 0xf20   :  { %2537 = vmax.xlane.f32.xlu1 %v2536_v44 }
 0xf21   :  { %v2539_v28 = vsel %vm523_vm4, %v6821_v54, -inf }
 0xf24   :  { %v2521_v21 = vpop.f32.mrb[100].mxu1 }
 0xf25   :  { %v4891_v59 = vpop.f32.mrb[101].mxu1  ;;  %v6831_v33 = vadd.f32 %v6776_v4, %v2521_v21 }
 0xf26   :  { %v2524_v14 = vpop.f32.mrb[102].mxu1 }
 0xf27   :  { %v4892_v34 = vpop.f32.mrb[103].mxu1  ;;  %v6826_v49 = vadd.f32 %v6784_v53, %v2524_v14  ;;  %v2542_v11 = vsel %vm523_vm4, %v6831_v33, -inf }
 0xf29   :  { %v2545_v13 = vsel %vm523_vm4, %v6826_v49, -inf }
 0xf2a   :  { %2610 = vrot.lane.b32.xlu0 %v6663_v20, %s7592_s28 }
 0xf2c   :  { %v2529_v9 = vpop.f32.mrb[104].mxu1 }
 0xf2d   :  { %v4895_v26 = vpop.f32.mrb[105].mxu1  ;;  %v6839_v22 = vadd.f32 %v6796_v45, %v2529_v9 }
 0xf2e   :  { %v2532_v8 = vpop.f32.mrb[106].mxu1 }
 0xf2f   :  { %v4896_v46 = vpop.f32.mrb[107].mxu1  ;;  %v6834_v58 = vadd.f32 %v6815_v55, %v2532_v8  ;;  %v2548_v59 = vsel %vm523_vm4, %v6839_v22, -inf }
 0xf31   :  { %2612 = vrot.lane.b32.xlu1 %v6673_v0, %s7592_s28  ;;  %v2551_v15 = vsel %vm523_vm4, %v6834_v58, -inf  ;;  %s7595_s28 = smov 80  }
 0xf34   :  { %v2747_v3 = vpop.f32.mrb[108].mxu1 }
 0xf35   :  { %v4923_v24 = vpop.f32.mrb[109].mxu1  ;;  %v6849_v44 = vadd.f32 %v6756_v56, %v2747_v3 }
 0xf36   :  { %v2750_v16 = vpop.f32.mrb[110].mxu1 }
 0xf37   :  { %v4924_v63 = vpop.f32.mrb[111].mxu1  ;;  %v6842_v36 = vadd.f32 %v6764_v7, %v2750_v16  ;;  %v2770_v26 = vsel %vm523_vm4, %v6849_v44, -inf }
 0xf38   :  { %v6877_v63 = vpop.permute.xlu1 %2608 }
 0xf39   :  { %v2773_v14 = vsel %vm523_vm4, %v6842_v36, -inf }
 0xf3c   :  { %v2755_v42 = vpop.f32.mrb[112].mxu1 }
 0xf3d   :  { %v4927_v12 = vpop.f32.mrb[113].mxu1  ;;  %v6859_v34 = vadd.f32 %v6776_v4, %v2755_v42 }
 0xf3e   :  { %v2758_v10 = vpop.f32.mrb[114].mxu1 }
 0xf3f   :  { %v4928_v31 = vpop.f32.mrb[115].mxu1  ;;  %v6852_v21 = vadd.f32 %v6784_v53, %v2758_v10  ;;  %v2776_v3 = vsel %vm523_vm4, %v6859_v34, -inf }
 0xf41   :  { %v2779_v8 = vsel %vm523_vm4, %v6852_v21, -inf }
 0xf44   :  { %v2763_v57 = vpop.f32.mrb[116].mxu1 }
 0xf45   :  { %v4931_v37 = vpop.f32.mrb[117].mxu1  ;;  %v6869_v46 = vadd.f32 %v6796_v45, %v2763_v57 }
 0xf46   :  { %v2766_v60 = vpop.f32.mrb[118].mxu1 }
 0xf47   :  { %v4932_v51 = vpop.f32.mrb[119].mxu1  ;;  %v6862_v9 = vadd.f32 %v6815_v55, %v2766_v60  ;;  %v2782_v16 = vsel %vm523_vm4, %v6869_v46, -inf }
 0xf49   :  { %2324 = vmax.xlane.f32.xlu0 %v2323_v17  ;;  %v2785_v24 = vsel %vm523_vm4, %v6862_v9, -inf }
 0xf4d   :  { %2540 = vmax.xlane.f32.xlu0 %v2539_v28 }
 0xf51   :  { %2546 = vmax.xlane.f32.xlu0 %v2545_v13 }
 0xf55   :  { %2543 = vmax.xlane.f32.xlu1 %v2542_v11  ;;  %2552 = vmax.xlane.f32.xlu0 %v2551_v15 }
 0xf59   :  { %2549 = vmax.xlane.f32.xlu1 %v2548_v59  ;;  %2774 = vmax.xlane.f32.xlu0 %v2773_v14 }
 0xf5d   :  { %2771 = vmax.xlane.f32.xlu1 %v2770_v26  ;;  %2780 = vmax.xlane.f32.xlu0 %v2779_v8 }
 0xf61   :  { %2777 = vmax.xlane.f32.xlu1 %v2776_v3  ;;  %2786 = vmax.xlane.f32.xlu0 %v2785_v24 }
 0xf65   :  { %2783 = vmax.xlane.f32.xlu1 %v2782_v16 }
 0xf95   :  { %v2310_v42 = vpop.xlane.xlu0 %2309 }
 0xf96   :  { %v2326_v12 = vsub.f32 %v6759_v41, %v2310_v42 }
 0xf97   :  { %v2313_v10 = vpop.xlane.xlu1 %2312 }
 0xf98   :  { %v2332_v31 = vmul.f32 1.442695, %v2326_v12  ;;  %v2327_v57 = vsub.f32 %v6767_v2, %v2313_v10 }
 0xf9a   :  { %5394 = vpow2.f32 %v2332_v31  ;;  %v2334_v37 = vmul.f32 1.442695, %v2327_v57 }
 0xf9c   :  { %5396 = vpow2.f32 %v2334_v37 }
 0xf9d   :  { %v2316_v60 = vpop.xlane.xlu0 %2315 }
 0xf9e   :  { %v2328_v51 = vsub.f32 %v6779_v5, %v2316_v60 }
 0xfa0   :  { %v2336_v17 = vmul.f32 1.442695, %v2328_v51 }
 0xfa1   :  { %v2319_v12 = vpop.xlane.xlu0 %2318 }
 0xfa2   :  { %5398 = vpow2.f32 %v2336_v17 }
 0xfa4   :  { %v6882_v28 = vpop.eup %5394 }
 0xfa5   :  { %v2322_v13 = vpop.xlane.xlu1 %2321  ;;  %v2344_v11 = vsel %vm523_vm4, %v6882_v28, 0.0  ;;  %v6909_v31 = vpop.permute.xlu0 %2610 }
 0xfa6   :  { %v6886_v15 = vpop.eup %5396  ;;  %v2330_v41 = vsub.f32 %v6799_v43, %v2322_v13  ;;  %2345 = vadd.xlane.f32.xlu1 %v2344_v11 }
 0xfa7   :  { %v2347_v2 = vsel %vm523_vm4, %v6886_v15, 0.0 }
 0xfa8   :  { %v2340_v59 = vmul.f32 1.442695, %v2330_v41  ;;  %2348 = vadd.xlane.f32.xlu0 %v2347_v2 }
 0xfaa   :  { %5400 = vpow2.f32 %v2340_v59 }
 0xfac   :  { %v6891_v5 = vpop.eup %5398 }
 0xfad   :  { %v2538_v14 = vpop.xlane.xlu1 %2537  ;;  %v2350_v26 = vsel %vm523_vm4, %v6891_v5, 0.0 }
 0xfae   :  { %v2554_v8 = vsub.f32 %v6804_v29, %v2538_v14  ;;  %2351 = vadd.xlane.f32.xlu1 %v2350_v26  ;;  %v2329_v29 = vsub.f32 %v6787_v40, %v2319_v12 }
 0xfb0   :  { %v2560_v3 = vmul.f32 1.442695, %v2554_v8  ;;  %v2338_v10 = vmul.f32 1.442695, %v2329_v29 }
 0xfb1   :  { %v6917_v41 = vpop.permute.xlu1 %2612 }
 0xfb2   :  { %5402 = vpow2.f32 %v2560_v3 }
 0xfb3   :  { %5404 = vpow2.f32 %v2338_v10 }
 0xfb4   :  { %v6896_v24 = vpop.eup %5400 }
 0xfb5   :  { %v2356_v43 = vsel %vm523_vm4, %v6896_v24, 0.0 }
 0xfb6   :  { %2357 = vadd.xlane.f32.xlu1 %v2356_v43 }
 0xfbc   :  { %v6900_v16 = vpop.eup %5402 }
 0xfbd   :  { %v2572_v42 = vsel %vm523_vm4, %v6900_v16, 0.0  ;;  %v6912_v60 = vpop.eup %5404 }
 0xfbe   :  { %2839 = vrot.lane.b32.xlu0 %v6651_v25, %s7593_s6  ;;  %2573 = vadd.xlane.f32.xlu1 %v2572_v42  ;;  %v2353_v40 = vsel %vm523_vm4, %v6912_v60, 0.0 }
 0xfcf   :  { %2841 = vrot.lane.b32.xlu1 %v6663_v20, %s7593_s6 }
 0xfd6   :  { %v2325_v57 = vpop.xlane.xlu0 %2324 }
 0xfd7   :  { %v2331_v37 = vsub.f32 %v6818_v30, %v2325_v57 }
 0xfd9   :  { %v2342_v51 = vmul.f32 1.442695, %v2331_v37 }
 0xfda   :  { %v2541_v17 = vpop.xlane.xlu0 %2540 }
 0xfdb   :  { %5406 = vpow2.f32 %v2342_v51  ;;  %v2555_v13 = vsub.f32 %v6821_v54, %v2541_v17 }
 0xfdd   :  { %v2562_v11 = vmul.f32 1.442695, %v2555_v13  ;;  %2354 = vadd.xlane.f32.xlu0 %v2353_v40 }
 0xfde   :  { %v2547_v2 = vpop.xlane.xlu0 %2546 }
 0xfdf   :  { %5408 = vpow2.f32 %v2562_v11  ;;  %v2557_v59 = vsub.f32 %v6826_v49, %v2547_v2 }
 0xfe1   :  { %v2566_v14 = vmul.f32 1.442695, %v2557_v59 }
 0xfe2   :  { %v2553_v30 = vpop.xlane.xlu0 %2552  ;;  %v2544_v26 = vpop.xlane.xlu1 %2543 }
 0xfe3   :  { %5410 = vpow2.f32 %v2566_v14  ;;  %v2559_v8 = vsub.f32 %v6834_v58, %v2553_v30  ;;  %v2556_v3 = vsub.f32 %v6831_v33, %v2544_v26 }
 0xfe5   :  { %v6922_v54 = vpop.eup %5406  ;;  %v2570_v43 = vmul.f32 1.442695, %v2559_v8  ;;  %v2564_v42 = vmul.f32 1.442695, %v2556_v3 }
 0xfe6   :  { %v2775_v12 = vpop.xlane.xlu0 %2774  ;;  %v2550_v29 = vpop.xlane.xlu1 %2549  ;;  %v2359_v10 = vsel %vm523_vm4, %v6922_v54, 0.0 }
 0xfe7   :  { %5412 = vpow2.f32 %v2570_v43  ;;  %v2789_v49 = vsub.f32 %v6842_v36, %v2775_v12  ;;  %v2558_v57 = vsub.f32 %v6839_v22, %v2550_v29  ;;  %2360 = vadd.xlane.f32.xlu0 %v2359_v10 }
 0xfe8   :  { %5414 = vpow2.f32 %v2564_v42 }
 0xfe9   :  { %v6928_v37 = vpop.eup %5408  ;;  %v2796_v58 = vmul.f32 1.442695, %v2789_v49  ;;  %v2568_v33 = vmul.f32 1.442695, %v2558_v57 }
 0xfea   :  { %v2781_v51 = vpop.xlane.xlu0 %2780  ;;  %v2772_v17 = vpop.xlane.xlu1 %2771  ;;  %v2575_v13 = vsel %vm523_vm4, %v6928_v37, 0.0 }
 0xfeb   :  { %5416 = vpow2.f32 %v2796_v58  ;;  %v2788_v40 = vsub.f32 %v6849_v44, %v2772_v17  ;;  %2576 = vadd.xlane.f32.xlu0 %v2575_v13  ;;  %v2791_v22 = vsub.f32 %v6852_v21, %v2781_v51 }
 0xfec   :  { %5418 = vpow2.f32 %v2568_v33 }
 0xfed   :  { %v6933_v11 = vpop.eup %5410  ;;  %v2794_v36 = vmul.f32 1.442695, %v2788_v40  ;;  %v2800_v3 = vmul.f32 1.442695, %v2791_v22 }
 0xfee   :  { %v2778_v2 = vpop.xlane.xlu1 %2777  ;;  %v2581_v59 = vsel %vm523_vm4, %v6933_v11, 0.0  ;;  %v2787_v14 = vpop.xlane.xlu0 %2786 }
 0xfef   :  { %v2790_v30 = vsub.f32 %v6859_v34, %v2778_v2  ;;  %2582 = vadd.xlane.f32.xlu0 %v2581_v59  ;;  %5420 = vpow2.f32 %v2794_v36  ;;  %v2793_v43 = vsub.f32 %v6862_v9, %v2787_v14 }
 0xff1   :  { %v6939_v26 = vpop.eup %5412  ;;  %v2798_v8 = vmul.f32 1.442695, %v2790_v30  ;;  %v2804_v57 = vmul.f32 1.442695, %v2793_v43 }
 0xff2   :  { %v6941_v44 = vpop.eup %5414  ;;  %v2784_v42 = vpop.xlane.xlu1 %2783  ;;  %v2587_v21 = vsel %vm523_vm4, %v6939_v26, 0.0 }
 0xff3   :  { %v2792_v12 = vsub.f32 %v6869_v46, %v2784_v42  ;;  %2588 = vadd.xlane.f32.xlu0 %v2587_v21  ;;  %v2578_v34 = vsel %vm523_vm4, %v6941_v44, 0.0  ;;  %5422 = vpow2.f32 %v2798_v8 }
 0xff4   :  { %2579 = vadd.xlane.f32.xlu1 %v2578_v34  ;;  %5424 = vpow2.f32 %v2800_v3 }
 0xff5   :  { %v6949_v29 = vpop.eup %5416  ;;  %v2802_v10 = vmul.f32 1.442695, %v2792_v12 }
 0xff6   :  { %v6951_v49 = vpop.eup %5418  ;;  %v2809_v9 = vsel %vm523_vm4, %v6949_v29, 0.0 }
 0xff7   :  { %5426 = vpow2.f32 %v2802_v10  ;;  %2810 = vadd.xlane.f32.xlu0 %v2809_v9  ;;  %v2584_v46 = vsel %vm523_vm4, %v6951_v49, 0.0 }
 0xff8   :  { %2585 = vadd.xlane.f32.xlu1 %v2584_v46  ;;  %5428 = vpow2.f32 %v2804_v57 }
 0xff9   :  { %v6957_v58 = vpop.eup %5420 }
 0xffa   :  { %v2806_v33 = vsel %vm523_vm4, %v6957_v58, 0.0 }
 0xffc   :  { %2807 = vadd.xlane.f32.xlu1 %v2806_v33 }
 0xffd   :  { %v6961_v51 = vpop.eup %5422 }
 0xffe   :  { %v2812_v17 = vsel %vm523_vm4, %v6961_v51, 0.0  ;;  %v6965_v13 = vpop.eup %5424 }
 0xfff   :  { %2813 = vadd.xlane.f32.xlu0 %v2812_v17  ;;  %v2815_v22 = vsel %vm523_vm4, %v6965_v13, 0.0 }
0x1001   :  { %v6967_v40 = vpop.eup %5426 }
0x1002   :  { %v2818_v36 = vsel %vm523_vm4, %v6967_v40, 0.0  ;;  %v6973_v2 = vpop.eup %5428 }
0x1003   :  { %2819 = vadd.xlane.f32.xlu1 %v2818_v36  ;;  %2816 = vadd.xlane.f32.xlu0 %v2815_v22  ;;  %v2821_v59 = vsel %vm523_vm4, %v6973_v2, 0.0 }
0x1007   :  { %2822 = vadd.xlane.f32.xlu0 %v2821_v59 }
0x1014   :  { %2920 = vrot.lane.b32.xlu1 %v6649_v32, %s7594_s9 }
0x1018   :  { %2922 = vrot.lane.b32.xlu1 %v6661_v48, %s7594_s9 }
0x101c   :  { %2924 = vrot.lane.b32.xlu1 %v6671_v19, %s7594_s9 }
0x101d   :  { %2843 = vrot.lane.b32.xlu0 %v6673_v0, %s7593_s6 }
0x1020   :  { %2914 = vrot.lane.b32.xlu1 %v6653_v61, %s7595_s28 }
0x1021   :  { %2916 = vrot.lane.b32.xlu0 %v6665_v1, %s7595_s28 }
0x1024   :  { %2918 = vrot.lane.b32.xlu1 %v6675_v39, %s7595_s28 }
0x1033   :  { %v2346_v14 = vpop.xlane.xlu1 %2345 }
0x1034   :  { %5430 = vrcp.f32 %v2346_v14 }
0x1035   :  { %v2349_v32 = vpop.xlane.xlu0 %2348 }
0x1036   :  { %5432 = vrcp.f32 %v2349_v32 }
0x1039   :  { %v2840_v61 = vpop.permute.xlu0 %2839 }
0x103b   :  { %v2352_v1 = vpop.xlane.xlu1 %2351 }
0x103c   :  { %5434 = vrcp.f32 %v2352_v1 }
0x103e   :  { %v5431_v48 = vpop.eup %5430 }
0x103f   :  { %v2368_v19 = vmul.f32 %v5431_v48, %v6882_v28 }
0x1040   :  { %v5433_v30 = vpop.eup %5432 }
0x1041   :  { %v2369_v8 = vmul.f32 %v5433_v30, %v6886_v15 }
0x1043   :  { %v2374_v3 = vpack.c.bf16 %v2369_v8, %v2368_v19  ;;  %v2358_v28 = vpop.xlane.xlu1 %2357 }
0x1045   :  { %4868 = vmatmul.mubr.msk.bf16.vlgmr.msra.gmra.mrb[76].mxu0 %vm523_vm4, %v2374_v3 }
0x1046   :  { %4898 = vmatpush3.bf16.msra.mxu0 %v6877_v63  ;;  %4871 = vmatprep.mubr.msk.bf16.mxu0 %vm5560_vm2, %v5557_v47  ;;  %v5435_v63 = vpop.eup %5434 }
0x1047   :  { %4899 = vmatprep.subr.bf16.mxu0 %v5557_v47  ;;  %v2370_v42 = vmul.f32 %v5435_v63, %v6891_v5 }
0x104a   :  { %4900 = vmatpush3.bf16.msra.mxu0 %v6909_v31 }
0x104b   :  { %4901 = vmatprep.subr.bf16.mxu0 %v5557_v47  ;;  %v2574_v21 = vpop.xlane.xlu1 %2573 }
0x104e   :  { %4902 = vmatpush3.bf16.msra.mxu0 %v6917_v41 }
0x104f   :  { %4933 = vmatprep.subr.bf16.mxu0 %v5557_v47  ;;  %v2842_v10 = vpop.permute.xlu1 %2841 }
0x106a   :  { %v2355_v39 = vpop.xlane.xlu0 %2354 }
0x106b   :  { %5436 = vrcp.f32 %v2355_v39 }
0x106c   :  { %5438 = vrcp.f32 %v2358_v28 }
0x1074   :  { %v2361_v15 = vpop.xlane.xlu0 %2360 }
0x1075   :  { %v5437_v43 = vpop.eup %5436  ;;  %5440 = vrcp.f32 %v2361_v15 }
0x1076   :  { %v2371_v31 = vmul.f32 %v5437_v43, %v6912_v60  ;;  %v5439_v34 = vpop.eup %5438 }
0x1077   :  { %v2372_v46 = vmul.f32 %v5439_v34, %v6896_v24 }
0x1078   :  { %v2577_v12 = vpop.xlane.xlu0 %2576  ;;  %v2375_v41 = vpack.c.bf16 %v2371_v31, %v2370_v42 }
0x1079   :  { %5442 = vrcp.f32 %v2577_v12 }
0x107a   :  { %4872 = vmatmul.mubr.msk.bf16.gmra.mrb[80].mxu0 %vm523_vm4, %v2375_v41  ;;  %5444 = vrcp.f32 %v2574_v21 }
0x107b   :  { %4875 = vmatprep.mubr.msk.bf16.mxu0 %vm5560_vm2, %v5557_v47 }
0x107c   :  { %v2583_v57 = vpop.xlane.xlu0 %2582 }
0x107f   :  { %v5441_v9 = vpop.eup %5440 }
0x1080   :  { %v2373_v5 = vmul.f32 %v5441_v9, %v6922_v54  ;;  %v2589_v36 = vpop.xlane.xlu0 %2588 }
0x1081   :  { %v2580_v33 = vpop.xlane.xlu1 %2579 }
0x1082   :  { %5446 = vrcp.f32 %v2580_v33  ;;  %v2376_v60 = vpack.c.bf16 %v2373_v5, %v2372_v46 }
0x1083   :  { %v5443_v17 = vpop.eup %5442  ;;  %5448 = vrcp.f32 %v2583_v57 }
0x1084   :  { %4876 = vmatmul.mubr.msk.bf16.gmra.mrb[84].mxu0 %vm523_vm4, %v2376_v60  ;;  %v5445_v22 = vpop.eup %5444  ;;  %v2597_v59 = vmul.f32 %v5443_v17, %v6928_v37  ;;  %v2811_v24 = vpop.xlane.xlu0 %2810 }
0x1085   :  { %4903 = vmatprep.mubr.msk.bf16.mxu0 %vm5560_vm2, %v5557_v47  ;;  %v2586_v14 = vpop.xlane.xlu1 %2585  ;;  %v2596_v32 = vmul.f32 %v5445_v22, %v6900_v16 }
0x1086   :  { %5450 = vrcp.f32 %v2586_v14 }
0x1087   :  { %v2602_v54 = vpack.c.bf16 %v2597_v59, %v2596_v32  ;;  %5452 = vrcp.f32 %v2589_v36 }
0x1089   :  { %v2808_v30 = vpop.xlane.xlu1 %2807 }
0x108a   :  { %5454 = vrcp.f32 %v2808_v30 }
0x108b   :  { %5456 = vrcp.f32 %v2811_v24 }
0x108c   :  { %v5447_v48 = vpop.eup %5446  ;;  %4904 = vmatmul.mubr.msk.bf16.vlgmr.msra.gmra.mrb[88].mxu0 %vm523_vm4, %v2602_v54  ;;  %v2814_v8 = vpop.xlane.xlu0 %2813 }
0x108d   :  { %v5449_v19 = vpop.eup %5448  ;;  %4934 = vmatpush3.bf16.msra.mxu0 %v2840_v61  ;;  %4907 = vmatprep.mubr.msk.bf16.mxu0 %vm5560_vm2, %v5557_v47  ;;  %v2598_v37 = vmul.f32 %v5447_v48, %v6941_v44 }
0x108e   :  { %4935 = vmatprep.subr.bf16.mxu0 %v5557_v47  ;;  %v2599_v16 = vmul.f32 %v5449_v19, %v6933_v11 }
0x1090   :  { %v2820_v3 = vpop.xlane.xlu1 %2819  ;;  %v2817_v1 = vpop.xlane.xlu0 %2816  ;;  %v2603_v39 = vpack.c.bf16 %v2599_v16, %v2598_v37 }
0x1091   :  { %4936 = vmatpush3.bf16.msra.mxu0 %v2842_v10  ;;  %v5451_v28 = vpop.eup %5450  ;;  %5458 = vrcp.f32 %v2817_v1 }
0x1092   :  { %4937 = vmatprep.subr.bf16.mxu0 %v5557_v47  ;;  %v5453_v63 = vpop.eup %5452  ;;  %v2600_v11 = vmul.f32 %v5451_v28, %v6951_v49  ;;  %5460 = vrcp.f32 %v2814_v8 }
0x1093   :  { %v2601_v44 = vmul.f32 %v5453_v63, %v6939_v26 }
0x1094   :  { %4908 = vmatmul.mubr.msk.bf16.gmra.mrb[92].mxu0 %vm523_vm4, %v2603_v39  ;;  %v2921_v61 = vpop.permute.xlu1 %2920  ;;  %v2823_v15 = vpop.xlane.xlu0 %2822 }
0x1095   :  { %v2936_v43 = vsel %vm447_vm3, %v2921_v61, 0  ;;  %4911 = vmatprep.mubr.msk.bf16.mxu0 %vm5560_vm2, %v5557_v47  ;;  %v2604_v21 = vpack.c.bf16 %v2601_v44, %v2600_v11  ;;  %v5455_v12 = vpop.eup %5454  ;;  %5462 = vrcp.f32 %v2823_v15 }
0x1096   :  { %5058 = vmatpush3.bf16.xpose.msra.mxu1 %v2936_v43  ;;  %v5457_v41 = vpop.eup %5456  ;;  %v2830_v49 = vmul.f32 %v5455_v12, %v6957_v58  ;;  %5464 = vrcp.f32 %v2820_v3 }
0x1097   :  { %5056 = vmatprep.subr.bf16.mxu1 %v5557_v47  ;;  %v2831_v26 = vmul.f32 %v5457_v41, %v6949_v29 }
0x1098   :  { %v2844_v42 = vpop.permute.xlu0 %2843  ;;  %v2923_v31 = vpop.permute.xlu1 %2922 }
0x1099   :  { %4938 = vmatpush3.bf16.msra.mxu0 %v2844_v42  ;;  %v2939_v34 = vsel %vm447_vm3, %v2923_v31, 0  ;;  %v2836_v10 = vpack.c.bf16 %v2831_v26, %v2830_v49 }
0x109a   :  { %4951 = vmatprep.subr.bf16.mxu0 %v5557_v47 }
0x109b   :  { %v5459_v9 = vpop.eup %5458 }
0x109c   :  { %4912 = vmatmul.mubr.msk.bf16.gmra.mrb[96].mxu0 %vm523_vm4, %v2604_v21  ;;  %v2925_v57 = vpop.permute.xlu1 %2924  ;;  %v5461_v46 = vpop.eup %5460  ;;  %v2833_v58 = vmul.f32 %v5459_v9, %v6965_v13 }
0x109d   :  { %4939 = vmatprep.mubr.msk.bf16.mxu0 %vm5560_vm2, %v5557_v47  ;;  %v2942_v5 = vsel %vm447_vm3, %v2925_v57, 0  ;;  %v2832_v29 = vmul.f32 %v5461_v46, %v6961_v51  ;;  %v2917_v17 = vpop.permute.xlu0 %2916 }
0x109e   :  { %5059 = vmatpush3.bf16.xpose.msra.mxu1 %v2939_v34 }
0x109f   :  { %5057 = vmatprep.subr.bf16.mxu1 %v5557_v47  ;;  %v2837_v33 = vpack.c.bf16 %v2833_v58, %v2832_v29  ;;  %v5463_v60 = vpop.eup %5462 }
0x10a0   :  { %v5465_v36 = vpop.eup %5464  ;;  %v2915_v22 = vpop.permute.xlu1 %2914  ;;  %v2835_v13 = vmul.f32 %v5463_v60, %v6973_v2 }
0x10a1   :  { %v2834_v51 = vmul.f32 %v5465_v36, %v6967_v40 }
0x10a3   :  { %v2838_v59 = vpack.c.bf16 %v2835_v13, %v2834_v51 }
0x10a4   :  { %4940 = vmatmul.mubr.msk.bf16.vlgmr.msra.gmra.mrb[100].mxu0 %vm523_vm4, %v2836_v10  ;;  %v2919_v14 = vpop.permute.xlu1 %2918 }
0x10a5   :  { %4952 = vmatpush3.bf16.xpose.msra.mxu0 %v2936_v43  ;;  %4943 = vmatprep.mubr.msk.bf16.mxu0 %vm5560_vm2, %v5557_v47 }
0x10a6   :  { %5060 = vmatpush3.bf16.xpose.msra.mxu1 %v2942_v5  ;;  %4953 = vmatprep.subr.bf16.mxu0 %v5557_v47 }
0x10a7   :  { %4987 = vmatprep.subr.bf16.mxu1 %v5557_v47 }
0x10ac   :  { %4944 = vmatmul.mubr.msk.bf16.gmra.mrb[104].mxu0 %vm523_vm4, %v2837_v33 }
0x10ad   :  { %4954 = vmatpush3.bf16.xpose.msra.mxu0 %v2939_v34  ;;  %4962 = vmatmul.mubr.msk.bf16.vlgmr.msra.gmra.mrb[120].mxu1 %vm447_vm3, %v2917_v17 }
0x10ae   :  { %4947 = vmatprep.mubr.msk.bf16.mxu0 %vm5560_vm2, %v5557_v47  ;;  %4955 = vmatprep.subr.bf16.mxu0 %v5557_v47 }
0x10af   :  { %4965 = vmatprep.mubr.msk.bf16.mxu1 %vm5560_vm2, %v5557_v47 }
0x10b4   :  { %4948 = vmatmul.mubr.msk.bf16.gmra.mrb[108].mxu0 %vm523_vm4, %v2838_v59 }
0x10b5   :  { %4956 = vmatpush3.bf16.xpose.msra.mxu0 %v2942_v5  ;;  %4966 = vmatmul.mubr.msk.bf16.gmra.mrb[124].mxu1 %vm447_vm3, %v2919_v14 }
0x10b6   :  { %4957 = vmatprep.mubr.msk.bf16.mxu0 %vm5560_vm2, %v5557_v47  ;;  %4969 = vmatprep.subr.bf16.mxu0 %v5557_v47 }
0x10b7   :  { %4995 = vmatprep.mubr.msk.bf16.mxu1 %vm5560_vm2, %v5557_v47 }
0x10bc   :  { %4958 = vmatmul.mubr.msk.bf16.vlgmr.msra.gmra.mrb[112].mxu0 %vm447_vm3, %v2915_v22 }
0x10bd   :  { %4975 = vmatprep.mubr.msk.bf16.mxu0 %vm5560_vm2, %v5557_v47 }
0x1118   :  { %v7063_v40 = vpop.f32.mrb[76].mxu0 }
0x1119   :  { %v4869_v2 = vpop.f32.mrb[77].mxu0 }
0x111a   :  { %v7065_v32 = vpop.f32.mrb[78].mxu0 }
0x111b   :  { %v4870_v24 = vpop.f32.mrb[79].mxu0 }
0x114d   :  { %v7067_v54 = vpop.f32.mrb[80].mxu0 }
0x114e   :  { %v4873_v48 = vpop.f32.mrb[81].mxu0 }
0x114f   :  { %v7069_v30 = vpop.f32.mrb[82].mxu0 }
0x1150   :  { %v4874_v19 = vpop.f32.mrb[83].mxu0 }
0x1157   :  { %v7071_v8 = vpop.f32.mrb[84].mxu0 }
0x1158   :  { %v4877_v37 = vpop.f32.mrb[85].mxu0 }
0x1159   :  { %v7073_v3 = vpop.f32.mrb[86].mxu0 }
0x115a   :  { %v4878_v16 = vpop.f32.mrb[87].mxu0 }
0x115f   :  { %v7075_v1 = vpop.f32.mrb[88].mxu0 }
0x1160   :  { %v4905_v39 = vpop.f32.mrb[89].mxu0 }
0x1161   :  { %v7077_v28 = vpop.f32.mrb[90].mxu0 }
0x1162   :  { %v5117_v61 = vpack.i.bf16 %v7077_v28, %v7075_v1  ;;  %v4906_v63 = vpop.f32.mrb[91].mxu0 }
0x1167   :  { %v7081_v15 = vpop.f32.mrb[92].mxu0 }
0x1168   :  { %v4909_v43 = vpop.f32.mrb[93].mxu0 }
0x1169   :  { %v7083_v11 = vpop.f32.mrb[94].mxu0 }
0x116a   :  { %v5132_v44 = vpack.i.bf16 %v7083_v11, %v7081_v15  ;;  %v4910_v42 = vpop.f32.mrb[95].mxu0 }
0x116f   :  { %v7087_v31 = vpop.f32.mrb[96].mxu0 }
0x1170   :  { %v4913_v21 = vpop.f32.mrb[97].mxu0 }
0x1171   :  { %v7089_v12 = vpop.f32.mrb[98].mxu0 }
0x1172   :  { %v5147_v41 = vpack.i.bf16 %v7089_v12, %v7087_v31  ;;  %v4914_v34 = vpop.f32.mrb[99].mxu0 }
0x1177   :  { %v7093_v49 = vpop.f32.mrb[100].mxu0 }
0x1178   :  { %v4941_v26 = vpop.f32.mrb[101].mxu0 }
0x1179   :  { %v7095_v10 = vpop.f32.mrb[102].mxu0 }
0x117a   :  { %v5122_v57 = vpack.i.bf16 %v7095_v10, %v7093_v49  ;;  %v4942_v9 = vpop.f32.mrb[103].mxu0 }
0x117f   :  { %v7099_v46 = vpop.f32.mrb[104].mxu0 }
0x1180   :  { %v4945_v5 = vpop.f32.mrb[105].mxu0  ;;  %v2986_v58 = vpop.f32.mrb[120].mxu1 }
0x1181   :  { %v7101_v29 = vpop.f32.mrb[106].mxu0  ;;  %v4963_v33 = vpop.f32.mrb[121].mxu1  ;;  %v2987_v42 = vadd.f32 %v6776_v4, %v2986_v58 }
0x1182   :  { %v5137_v60 = vpack.i.bf16 %v7101_v29, %v7099_v46  ;;  %v4946_v17 = vpop.f32.mrb[107].mxu0  ;;  %v2989_v36 = vpop.f32.mrb[122].mxu1 }
0x1183   :  { %v4964_v22 = vpop.f32.mrb[123].mxu1  ;;  %v2990_v33 = vadd.f32 %v6784_v53, %v2989_v36  ;;  %v3007_v17 = vsel %vm523_vm4, %v2987_v42, -inf }
0x1187   :  { %v7105_v13 = vpop.f32.mrb[108].mxu0 }
0x1188   :  { %v4949_v51 = vpop.f32.mrb[109].mxu0  ;;  %v2994_v59 = vpop.f32.mrb[124].mxu1 }
0x1189   :  { %v7107_v14 = vpop.f32.mrb[110].mxu0  ;;  %v4967_v2 = vpop.f32.mrb[125].mxu1  ;;  %v2995_v9 = vadd.f32 %v6796_v45, %v2994_v59 }
0x118a   :  { %v5152_v24 = vpack.i.bf16 %v7107_v14, %v7105_v13  ;;  %v4950_v48 = vpop.f32.mrb[111].mxu0  ;;  %v2997_v19 = vpop.f32.mrb[126].mxu1 }
0x118b   :  { %v4968_v37 = vpop.f32.mrb[127].mxu1  ;;  %v2998_v4 = vadd.f32 %v6815_v55, %v2997_v19 }
0x118d   :  { %v3016_v58 = vsel %vm523_vm4, %v2998_v4, -inf }
0x118f   :  { %v2978_v16 = vpop.f32.mrb[112].mxu0 }
0x1190   :  { %v2979_v39 = vadd.f32 %v6756_v56, %v2978_v16  ;;  %v4959_v63 = vpop.f32.mrb[113].mxu0  ;;  %v3013_v56 = vsel %vm523_vm4, %v2995_v9, -inf }
0x1191   :  { %v2981_v43 = vpop.f32.mrb[114].mxu0 }
0x1192   :  { %v2982_v21 = vadd.f32 %v6764_v7, %v2981_v43  ;;  %v4960_v34 = vpop.f32.mrb[115].mxu0  ;;  %v3001_v26 = vsel %vm523_vm4, %v2979_v39, -inf  ;;  %v3010_v7 = vsel %vm523_vm4, %v2990_v33, -inf }
0x1193   :  { %3002 = vmax.xlane.f32.xlu0 %v3001_v26 }
0x1194   :  { %v3004_v5 = vsel %vm523_vm4, %v2982_v21, -inf }
0x1195   :  { %3005 = vmax.xlane.f32.xlu1 %v3004_v5 }
0x1197   :  { %3008 = vmax.xlane.f32.xlu0 %v3007_v17 }
0x1199   :  { %3014 = vmax.xlane.f32.xlu1 %v3013_v56 }
0x119b   :  { %3011 = vmax.xlane.f32.xlu0 %v3010_v7 }
0x119f   :  { %3017 = vmax.xlane.f32.xlu0 %v3016_v58 }
0x1220   :  { %v3003_v45 = vpop.xlane.xlu0 %3002 }
0x1222   :  { %v3006_v22 = vpop.xlane.xlu1 %3005 }
0x1223   :  { %v3020_v63 = vsub.f32 %v2982_v21, %v3006_v22  ;;  %v3019_v22 = vsub.f32 %v2979_v39, %v3003_v45 }
0x1224   :  { %v3009_v51 = vpop.xlane.xlu0 %3008 }
0x1225   :  { %v3021_v59 = vsub.f32 %v2987_v42, %v3009_v51  ;;  %v3027_v34 = vmul.f32 1.442695, %v3020_v63  ;;  %v3025_v51 = vmul.f32 1.442695, %v3019_v22 }
0x1226   :  { %v3015_v2 = vpop.xlane.xlu1 %3014 }
0x1227   :  { %v3029_v53 = vmul.f32 1.442695, %v3021_v59  ;;  %v3023_v36 = vsub.f32 %v2995_v9, %v3015_v2 }
0x1228   :  { %v3012_v48 = vpop.xlane.xlu0 %3011 }
0x1229   :  { %5466 = vpow2.f32 %v3029_v53  ;;  %v3033_v37 = vmul.f32 1.442695, %v3023_v36  ;;  %v3022_v16 = vsub.f32 %v2990_v33, %v3012_v48 }
0x122b   :  { %5468 = vpow2.f32 %v3033_v37  ;;  %v3031_v55 = vmul.f32 1.442695, %v3022_v16 }
0x122c   :  { %v3018_v19 = vpop.xlane.xlu0 %3017 }
0x122d   :  { %5470 = vpow2.f32 %v3031_v55  ;;  %v3024_v43 = vsub.f32 %v2998_v4, %v3018_v19 }
0x122f   :  { %v3035_v26 = vmul.f32 1.442695, %v3024_v43 }
0x1231   :  { %5472 = vpow2.f32 %v3035_v26  ;;  %v5208_v26 = vld [vmem:[%s7588_s29 + $0x20] sm:$0xff]  }
0x1232   :  { %5474 = vpow2.f32 %v3027_v34  ;;  %4988 = vmatpush3.bf16.msra.mxu1 %v5208_v26 }
0x1233   :  { %v7123_v5 = vpop.eup %5466  ;;  %5476 = vpow2.f32 %v3025_v51  ;;  %4989 = vmatprep.subr.bf16.mxu1 %v5557_v47 }
0x1234   :  { %v3043_v42 = vsel %vm523_vm4, %v7123_v5, 0.0 }
0x1235   :  { %v5469_v9 = vpop.eup %5468  ;;  %3044 = vadd.xlane.f32.xlu1 %v3043_v42  ;;  %v5210_v42 = vld [vmem:[%s7588_s29 + $0x30] sm:$0xff]  }
0x1236   :  { %v3049_v21 = vsel %vm523_vm4, %v5469_v9, 0.0 }
0x1237   :  { %v5471_v17 = vpop.eup %5470 }
0x1238   :  { %v3046_v33 = vsel %vm523_vm4, %v5471_v17, 0.0 }
0x1239   :  { %3047 = vadd.xlane.f32.xlu0 %v3046_v33  ;;  %3050 = vadd.xlane.f32.xlu1 %v3049_v21 }
0x123b   :  { %v5473_v56 = vpop.eup %5472 }
0x123c   :  { %v3052_v4 = vsel %vm523_vm4, %v5473_v56, 0.0  ;;  %v5475_v7 = vpop.eup %5474 }
0x123d   :  { %3053 = vadd.xlane.f32.xlu0 %v3052_v4  ;;  %v3040_v58 = vsel %vm523_vm4, %v5475_v7, 0.0  ;;  %v5477_v59 = vpop.eup %5476 }
0x123e   :  { %v3037_v2 = vsel %vm523_vm4, %v5477_v59, 0.0 }
0x1241   :  { %3041 = vadd.xlane.f32.xlu0 %v3040_v58 }
0x124a   :  { %3070 = vrot.lane.b32.xlu1 %v6651_v25, %s7595_s28 }
0x1257   :  { %3072 = vrot.lane.b32.xlu0 %v6663_v20, %s7595_s28 }
0x125b   :  { %5123 = vrot.lane.b32.xlu0 %v5122_v57, %s7591_s1 }
0x125f   :  { %5133 = vrot.lane.b32.xlu0 %v5132_v44, %s7594_s9 }
0x126e   :  { %3038 = vadd.xlane.f32.xlu1 %v3037_v2 }
0x127f   :  { %3074 = vrot.lane.b32.xlu1 %v6673_v0, %s7595_s28 }
0x1283   :  { %5118 = vrot.lane.b32.xlu1 %v5117_v61, %s7594_s9 }
0x12c2   :  { %v3045_v25 = vpop.xlane.xlu1 %3044 }
0x12c6   :  { %v3048_v20 = vpop.xlane.xlu0 %3047  ;;  %v3051_v49 = vpop.xlane.xlu1 %3050 }
0x12c7   :  { %5478 = vrcp.f32 %v3051_v49 }
0x12ca   :  { %v3054_v10 = vpop.xlane.xlu0 %3053  ;;  %v3071_v15 = vpop.permute.xlu1 %3070 }
0x12cb   :  { %5480 = vrcp.f32 %v3054_v10  ;;  %4970 = vmatpush3.bf16.msra.mxu0 %v3071_v15 }
0x12cc   :  { %4971 = vmatprep.subr.bf16.mxu0 %v5557_v47 }
0x12ce   :  { %v3042_v11 = vpop.xlane.xlu0 %3041 }
0x12cf   :  { %5482 = vrcp.f32 %v3042_v11 }
0x12d1   :  { %v5479_v57 = vpop.eup %5478 }
0x12d2   :  { %v3073_v44 = vpop.permute.xlu0 %3072  ;;  %v3065_v39 = vmul.f32 %v5479_v57, %v5469_v9  ;;  %v5211_v9 = vld [vmem:[%s7588_s29 + $0x38] sm:$0xff]  }
0x12d3   :  { %4972 = vmatpush3.bf16.msra.mxu0 %v3073_v44 }
0x12d4   :  { %4973 = vmatprep.subr.bf16.mxu0 %v5557_v47 }
0x12d5   :  { %v5481_v0 = vpop.eup %5480 }
0x12d6   :  { %v3066_v1 = vmul.f32 %v5481_v0, %v5473_v56  ;;  %v5124_v15 = vpop.permute.xlu0 %5123 }
0x12d7   :  { %v5125_v11 = vunpack.i.l.bf16 %v5124_v15 }
0x12d8   :  { %v3069_v28 = vpack.c.bf16 %v3066_v1, %v3065_v39 }
0x12d9   :  { %v5483_v53 = vpop.eup %5482 }
0x12da   :  { %v3062_v48 = vmul.f32 %v5483_v53, %v5475_v7  ;;  %v5134_v44 = vpop.permute.xlu0 %5133 }
0x12fb   :  { %v3039_v61 = vpop.xlane.xlu1 %3038 }
0x12fc   :  { %5484 = vrcp.f32 %v3039_v61 }
0x12fd   :  { %5486 = vrcp.f32 %v3048_v20 }
0x12fe   :  { %5488 = vrcp.f32 %v3045_v25 }
0x12ff   :  { %v3075_v45 = vpop.permute.xlu1 %3074 }
0x1300   :  { %4974 = vmatpush3.bf16.msra.mxu0 %v3075_v45  ;;  %v5135_v45 = vunpack.i.l.bf16 %v5134_v44 }
0x1301   :  { %5007 = vmatprep.subr.bf16.mxu0 %v5557_v47 }
0x1303   :  { %v5119_v20 = vpop.permute.xlu1 %5118 }
0x1304   :  { %v5121_v49 = vunpack.i.h.bf16 %v5119_v20  ;;  %v5120_v10 = vunpack.i.l.bf16 %v5119_v20 }
0x1306   :  { %v5485_v36 = vpop.eup %5484  ;;  %v3218_v31 = vsel %vm447_vm3, %v7065_v32, %v5121_v49  ;;  %v3217_v12 = vsel %vm447_vm3, %v7063_v40, %v5120_v10  ;;  %v5136_v32 = vunpack.i.h.bf16 %v5134_v44 }
0x1307   :  { %v3061_v37 = vmul.f32 %v5485_v36, %v5477_v59  ;;  %v5487_v63 = vpop.eup %5486  ;;  %v3223_v57 = vsel %vm1439_vm5, %v3217_v12, %v5125_v11 }
0x1308   :  { %v5489_v55 = vpop.eup %5488  ;;  %v3064_v19 = vmul.f32 %v5487_v63, %v5471_v17 }
0x1309   :  { %v3067_v16 = vpack.c.bf16 %v3062_v48, %v3061_v37  ;;  %v3063_v43 = vmul.f32 %v5489_v55, %v7123_v5  ;;  %v5209_v5 = vld [vmem:[%s7588_s29 + $0x28] sm:$0xff]   ;;  %v3220_v48 = vsel %vm447_vm3, %v7069_v30, %v5136_v32  ;;  %v3219_v37 = vsel %vm447_vm3, %v7067_v54, %v5135_v45 }
0x130a   :  { %4990 = vmatpush3.bf16.msra.mxu1 %v5209_v5 }
0x130b   :  { %4976 = vmatmul.mubr.msk.bf16.vlgmr.msra.gmra.mrb[116].mxu0 %vm523_vm4, %v3067_v16  ;;  %v3068_v34 = vpack.c.bf16 %v3064_v19, %v3063_v43  ;;  %4991 = vmatprep.subr.bf16.mxu1 %v5557_v47 }
0x130c   :  { %4979 = vmatprep.mubr.msk.bf16.mxu0 %vm5560_vm2, %v5557_v47 }
0x130e   :  { %4992 = vmatpush3.bf16.msra.mxu1 %v5210_v42 }
0x130f   :  { %4993 = vmatprep.subr.bf16.mxu1 %v5557_v47 }
0x1312   :  { %4994 = vmatpush3.bf16.msra.mxu1 %v5211_v9 }
0x1313   :  { %4980 = vmatmul.mubr.msk.bf16.gmra.mrb[120].mxu0 %vm523_vm4, %v3068_v34  ;;  %5027 = vmatprep.subr.bf16.mxu1 %v5557_v47 }
0x1314   :  { %4983 = vmatprep.mubr.msk.bf16.mxu0 %vm5560_vm2, %v5557_v47 }
0x131b   :  { %4984 = vmatmul.mubr.msk.bf16.gmra.mrb[124].mxu0 %vm523_vm4, %v3069_v28 }
0x131c   :  { %5015 = vmatprep.mubr.msk.bf16.mxu0 %vm5560_vm2, %v5557_v47 }
0x13de   :  { %v3122_v17 = vpop.f32.mrb[116].mxu0 }
0x13df   :  { %v4977_v33 = vpop.f32.mrb[117].mxu0 }
0x13e0   :  { %v3125_v21 = vpop.f32.mrb[118].mxu0 }
0x13e1   :  { %v5127_v56 = vpack.i.bf16 %v3125_v21, %v3122_v17  ;;  %v4978_v4 = vpop.f32.mrb[119].mxu0 }
0x13e3   :  { %5128 = vrot.lane.b32.xlu1 %v5127_v56, %s7590_s7 }
0x13e6   :  { %v3130_v7 = vpop.f32.mrb[120].mxu0 }
0x13e7   :  { %5138 = vrot.lane.b32.xlu1 %v5137_v60, %s7591_s1  ;;  %v4981_v58 = vpop.f32.mrb[121].mxu0 }
0x13e8   :  { %v3133_v22 = vpop.f32.mrb[122].mxu0 }
0x13e9   :  { %v5142_v51 = vpack.i.bf16 %v3133_v22, %v3130_v7  ;;  %v4982_v59 = vpop.f32.mrb[123].mxu0 }
0x13eb   :  { %5148 = vrot.lane.b32.xlu1 %v5147_v41, %s7594_s9  ;;  %5143 = vrot.lane.b32.xlu0 %v5142_v51, %s7590_s7  ;;  %v5126_v41 = vunpack.i.h.bf16 %v5124_v15 }
0x13ed   :  { %v3224_v0 = vsel %vm1439_vm5, %v3218_v31, %v5126_v41 }
0x13ee   :  { %v3138_v2 = vpop.f32.mrb[124].mxu0 }
0x13ef   :  { %5153 = vrot.lane.b32.xlu0 %v5152_v24, %s7591_s1  ;;  %v4985_v25 = vpop.f32.mrb[125].mxu0 }
0x13f0   :  { %v3141_v46 = vpop.f32.mrb[126].mxu0 }
0x13f1   :  { %v5157_v29 = vpack.i.bf16 %v3141_v46, %v3138_v2  ;;  %v4986_v60 = vpop.f32.mrb[127].mxu0 }
0x13f3   :  { %5158 = vrot.lane.b32.xlu1 %v5157_v29, %s7590_s7 }
0x1455   :  { %v5129_v13 = vpop.permute.xlu1 %5128 }
0x1456   :  { %v5131_v14 = vunpack.i.h.bf16 %v5129_v13  ;;  %v5130_v24 = vunpack.i.l.bf16 %v5129_v13 }
0x1458   :  { %v3230_v39 = vsel %vm523_vm4, %v3224_v0, %v5131_v14  ;;  %v3229_v1 = vsel %vm523_vm4, %v3223_v57, %v5130_v24 }
0x1459   :  { %v3235_v28 = vpack.c.bf16 %v3230_v39, %v3229_v1  ;;  %v5139_v61 = vpop.permute.xlu1 %5138 }
0x145a   :  { %v5141_v53 = vunpack.i.h.bf16 %v5139_v61  ;;  %v5140_v40 = vunpack.i.l.bf16 %v5139_v61 }
0x145b   :  { %4996 = vmatmul.mubr.msk.bf16.vlgmr.msra.gmra.mrb[128].mxu1 %vm130_vm0, %v3235_v28 }
0x145c   :  { %4999 = vmatprep.mubr.msk.bf16.mxu1 %vm5560_vm2, %v5557_v47  ;;  %v3226_v55 = vsel %vm1439_vm5, %v3220_v48, %v5141_v53  ;;  %v3225_v19 = vsel %vm1439_vm5, %v3219_v37, %v5140_v40 }
0x145d   :  { %v5144_v36 = vpop.permute.xlu0 %5143  ;;  %v5149_v43 = vpop.permute.xlu1 %5148 }
0x145e   :  { %v5146_v16 = vunpack.i.h.bf16 %v5144_v36  ;;  %v5145_v63 = vunpack.i.l.bf16 %v5144_v36  ;;  %v5151_v9 = vunpack.i.h.bf16 %v5149_v43  ;;  %v5150_v17 = vunpack.i.l.bf16 %v5149_v43 }
0x1460   :  { %v3232_v34 = vsel %vm523_vm4, %v3226_v55, %v5146_v16  ;;  %v3231_v26 = vsel %vm523_vm4, %v3225_v19, %v5145_v63  ;;  %v3222_v21 = vsel %vm447_vm3, %v7073_v3, %v5151_v9  ;;  %v3221_v56 = vsel %vm447_vm3, %v7071_v8, %v5150_v17  ;;  %v4362_v8 = vld [vmem:[%s7526_s11 + $0x1] ss:$0 sm:$0xff] }
0x1461   :  { %v3236_v5 = vpack.c.bf16 %v3232_v34, %v3231_v26  ;;  %v5154_v42 = vpop.permute.xlu0 %5153 }
0x1462   :  { %v5156_v33 = vunpack.i.h.bf16 %v5154_v42  ;;  %v5155_v30 = vunpack.i.l.bf16 %v5154_v42 }
0x1463   :  { %5000 = vmatmul.mubr.msk.bf16.gmra.mrb[132].mxu1 %vm130_vm0, %v3236_v5 }
0x1464   :  { %5003 = vmatprep.mubr.msk.bf16.mxu1 %vm5560_vm2, %v5557_v47  ;;  %v3228_v58 = vsel %vm1439_vm5, %v3222_v21, %v5156_v33  ;;  %v3227_v22 = vsel %vm1439_vm5, %v3221_v56, %v5155_v30 }
0x1465   :  { %v5159_v54 = vpop.permute.xlu1 %5158 }
0x1466   :  { %v5161_v4 = vunpack.i.h.bf16 %v5159_v54  ;;  %v5160_v7 = vunpack.i.l.bf16 %v5159_v54 }
0x1468   :  { %v3234_v51 = vsel %vm523_vm4, %v3228_v58, %v5161_v4  ;;  %v3233_v59 = vsel %vm523_vm4, %v3227_v22, %v5160_v7 }
0x1469   :  { %v3237_v2 = vpack.c.bf16 %v3234_v51, %v3233_v59 }
0x146b   :  { %5004 = vmatmul.mubr.msk.bf16.gmra.mrb[136].mxu1 %vm130_vm0, %v3237_v2 }
0x146c   :  { %5043 = vmatprep.mubr.msk.bf16.mxu1 %vm5560_vm2, %v5557_v47 }
0x152e   :  { %v3322_v3 = vpop.f32.mrb[128].mxu1 }
0x152f   :  { %v3323_v25 = vadd.f32 %v4362_v8, %v3322_v3  ;;  %v4997_v46 = vpop.f32.mrb[129].mxu1  ;;  %v5212_v3 = vld [vmem:[%s7529_s14 + $0x20] sm:$0xff]  }
0x1530   :  { %v3325_v29 = vpop.f32.mrb[130].mxu1  ;;  %5008 = vmatpush3.bf16.msra.mxu0 %v5212_v3  ;;  %v5214_v46 = vld [vmem:[%s7529_s14 + $0x30] sm:$0xff]   ;;  %v5221_v3 = vld [vmem:[%s7531_s16 + $0x68] sm:$0xff]  }
0x1531   :  { %v7231_v60 = vadd.f32 %v3323_v25, %v6535_v38  ;;  %v3326_v20 = vadd.f32 %v4362_v8, %v3325_v29  ;;  %v4998_v49 = vpop.f32.mrb[131].mxu1  ;;  %5009 = vmatprep.subr.bf16.mxu0 %v5557_v47  ;;  %v5213_v25 = vld [vmem:[%s7529_s14 + $0x28] sm:$0xff]   ;;  %v5215_v29 = vld [vmem:[%s7529_s14 + $0x38] sm:$0xff]  }
0x1533   :  { %v7234_v10 = vadd.f32 %v3326_v20, %v6538_v18  ;;  %v3355_v15 = vsel %vm130_vm0, %v7231_v60, 0.0 }
0x1534   :  { %3356 = vadd.xlane.f32.xlu0 %v3355_v15  ;;  %5010 = vmatpush3.bf16.msra.mxu0 %v5213_v25  ;;  %v5222_v25 = vld [vmem:[%s7531_s16 + $0x70] sm:$0xff]  }
0x1535   :  { %v3358_v31 = vsel %vm130_vm0, %v7234_v10, 0.0  ;;  %5011 = vmatprep.subr.bf16.mxu0 %v5557_v47 }
0x1536   :  { %v3330_v12 = vpop.f32.mrb[132].mxu1  ;;  %3359 = vadd.xlane.f32.xlu1 %v3358_v31 }
0x1537   :  { %v3331_v41 = vadd.f32 %v4362_v8, %v3330_v12  ;;  %v5001_v11 = vpop.f32.mrb[133].mxu1 }
0x1538   :  { %v3333_v13 = vpop.f32.mrb[134].mxu1  ;;  %5012 = vmatpush3.bf16.msra.mxu0 %v5214_v46  ;;  %v5223_v46 = vld [vmem:[%s7531_s16 + $0x78] sm:$0xff]  }
0x1539   :  { %v3347_v38 = vadd.f32 %v3331_v41, %v6545_v6  ;;  %v3334_v14 = vadd.f32 %v4362_v8, %v3333_v13  ;;  %v5002_v24 = vpop.f32.mrb[135].mxu1  ;;  %5013 = vmatprep.subr.bf16.mxu0 %v5557_v47 }
0x153b   :  { %v7242_v44 = vadd.f32 %v3334_v14, %v6548_v35  ;;  %v3361_v18 = vsel %vm130_vm0, %v3347_v38, 0.0 }
0x153c   :  { %3362 = vadd.xlane.f32.xlu0 %v3361_v18  ;;  %5014 = vmatpush3.bf16.msra.mxu0 %v5215_v29  ;;  %v4383_v29 = vld [vmem:[%s7530_s15 + $0x1] ss:$0 sm:$0xff] }
0x153d   :  { %v3364_v1 = vsel %vm130_vm0, %v7242_v44, 0.0 }
0x153e   :  { %v3338_v57 = vpop.f32.mrb[136].mxu1 }
0x153f   :  { %v3339_v0 = vadd.f32 %v4362_v8, %v3338_v57  ;;  %v5005_v39 = vpop.f32.mrb[137].mxu1  ;;  %v4372_v57 = vld [vmem:[%s7527_s12 + $0x1] ss:$0 sm:$0xff] }
0x1540   :  { %3365 = vadd.xlane.f32.xlu0 %v3364_v1  ;;  %v3341_v28 = vpop.f32.mrb[138].mxu1 }
0x1541   :  { %v7248_v61 = vadd.f32 %v3339_v0, %v6555_v23  ;;  %v3342_v6 = vadd.f32 %v4362_v8, %v3341_v28  ;;  %v5006_v32 = vpop.f32.mrb[139].mxu1 }
0x1543   :  { %v3350_v45 = vadd.f32 %v3342_v6, %v6558_v27  ;;  %v3367_v35 = vsel %vm130_vm0, %v7248_v61, 0.0 }
0x1544   :  { %3368 = vadd.xlane.f32.xlu1 %v3367_v35 }
0x1545   :  { %v3370_v53 = vsel %vm130_vm0, %v3350_v45, 0.0 }
0x1546   :  { %3371 = vadd.xlane.f32.xlu0 %v3370_v53  ;;  %v4373_v53 = vld [vmem:[%s7528_s13 + $0x1] ss:$0 sm:$0xff] }
0x15c1   :  { %v3357_v40 = vpop.xlane.xlu0 %3356 }
0x15c2   :  { %v3373_v36 = vmul.f32 0.015625, %v3357_v40 }
0x15c3   :  { %v3360_v48 = vpop.xlane.xlu1 %3359 }
0x15c4   :  { %v3379_v37 = vsub.f32 %v7231_v60, %v3373_v36  ;;  %v3374_v16 = vmul.f32 0.015625, %v3360_v48 }
0x15c6   :  { %v7256_v23 = vsub.f32 %v7234_v10, %v3374_v16  ;;  %v3385_v63 = vmul.f32 %v3379_v37, %v3379_v37 }
0x15c8   :  { %v3391_v55 = vsel %vm130_vm0, %v3385_v63, 0.0  ;;  %v3386_v27 = vmul.f32 %v7256_v23, %v7256_v23 }
0x15c9   :  { %v3363_v19 = vpop.xlane.xlu0 %3362  ;;  %3392 = vadd.xlane.f32.xlu1 %v3391_v55 }
0x15ca   :  { %v3375_v43 = vmul.f32 0.015625, %v3363_v19  ;;  %v3394_v34 = vsel %vm130_vm0, %v3386_v27, 0.0 }
0x15cb   :  { %3395 = vadd.xlane.f32.xlu0 %v3394_v34 }
0x15cc   :  { %v7262_v26 = vsub.f32 %v3347_v38, %v3375_v43 }
0x15cd   :  { %v3366_v5 = vpop.xlane.xlu0 %3365 }
0x15ce   :  { %v3376_v42 = vmul.f32 0.015625, %v3366_v5  ;;  %v3387_v9 = vmul.f32 %v7262_v26, %v7262_v26 }
0x15d0   :  { %v7267_v17 = vsub.f32 %v7242_v44, %v3376_v42  ;;  %v3397_v33 = vsel %vm130_vm0, %v3387_v9, 0.0 }
0x15d1   :  { %3398 = vadd.xlane.f32.xlu1 %v3397_v33  ;;  %v3369_v30 = vpop.xlane.xlu1 %3368 }
0x15d2   :  { %v3377_v54 = vmul.f32 0.015625, %v3369_v30  ;;  %v3388_v21 = vmul.f32 %v7267_v17, %v7267_v17 }
0x15d3   :  { %v3372_v56 = vpop.xlane.xlu0 %3371 }
0x15d4   :  { %v7273_v4 = vsub.f32 %v7248_v61, %v3377_v54  ;;  %v3378_v7 = vmul.f32 0.015625, %v3372_v56  ;;  %v3400_v58 = vsel %vm130_vm0, %v3388_v21, 0.0 }
0x15d5   :  { %3401 = vadd.xlane.f32.xlu0 %v3400_v58 }
0x15d6   :  { %v7276_v22 = vsub.f32 %v3350_v45, %v3378_v7  ;;  %v3389_v51 = vmul.f32 %v7273_v4, %v7273_v4 }
0x15d8   :  { %v3403_v59 = vsel %vm130_vm0, %v3389_v51, 0.0  ;;  %v3390_v2 = vmul.f32 %v7276_v22, %v7276_v22 }
0x15d9   :  { %3404 = vadd.xlane.f32.xlu1 %v3403_v59  ;;  %v5218_v59 = vld [vmem:[%s7531_s16 + $0x50] sm:$0xff]  }
0x15da   :  { %v3406_v8 = vsel %vm130_vm0, %v3390_v2, 0.0  ;;  %v5219_v2 = vld [vmem:[%s7531_s16 + $0x58] sm:$0xff]  }
0x15db   :  { %3407 = vadd.xlane.f32.xlu0 %v3406_v8  ;;  %v5220_v8 = vld [vmem:[%s7531_s16 + $0x60] sm:$0xff]  }
0x1656   :  { %v3393_v20 = vpop.xlane.xlu1 %3392 }
0x1657   :  { %v3409_v49 = vmul.f32 0.015625, %v3393_v20 }
0x1658   :  { %v3396_v15 = vpop.xlane.xlu0 %3395 }
0x1659   :  { %v3415_v31 = vadd.f32 1e-05, %v3409_v49  ;;  %v3410_v12 = vmul.f32 0.015625, %v3396_v15 }
0x165b   :  { %5490 = vrsqrt.f32 %v3415_v31  ;;  %v3416_v41 = vadd.f32 1e-05, %v3410_v12 }
0x165d   :  { %5492 = vrsqrt.f32 %v3416_v41 }
0x165e   :  { %v3399_v11 = vpop.xlane.xlu1 %3398 }
0x165f   :  { %v3411_v13 = vmul.f32 0.015625, %v3399_v11 }
0x1661   :  { %v3417_v38 = vadd.f32 1e-05, %v3411_v13 }
0x1662   :  { %v3402_v14 = vpop.xlane.xlu0 %3401 }
0x1663   :  { %5494 = vrsqrt.f32 %v3417_v38  ;;  %v3412_v24 = vmul.f32 0.015625, %v3402_v14 }
0x1665   :  { %v5491_v18 = vpop.eup %5490  ;;  %v3418_v0 = vadd.f32 1e-05, %v3412_v24 }
0x1666   :  { %v3427_v39 = vmul.f32 %v5491_v18, %v3379_v37  ;;  %v3405_v1 = vpop.xlane.xlu1 %3404 }
0x1667   :  { %v5493_v28 = vpop.eup %5492  ;;  %5496 = vrsqrt.f32 %v3418_v0  ;;  %v3413_v6 = vmul.f32 0.015625, %v3405_v1 }
0x1668   :  { %v3439_v32 = vmul.f32 %v4372_v57, %v3427_v39  ;;  %v3428_v45 = vmul.f32 %v5493_v28, %v7256_v23  ;;  %v3408_v35 = vpop.xlane.xlu0 %3407 }
0x1669   :  { %v3419_v40 = vadd.f32 1e-05, %v3413_v6  ;;  %v3414_v36 = vmul.f32 0.015625, %v3408_v35 }
0x166a   :  { %v3440_v48 = vmul.f32 %v4372_v57, %v3428_v45  ;;  %v3451_v63 = vadd.f32 %v4373_v53, %v3439_v32 }
0x166b   :  { %5498 = vrsqrt.f32 %v3419_v40  ;;  %v3420_v16 = vadd.f32 1e-05, %v3414_v36 }
0x166c   :  { %v3452_v55 = vadd.f32 %v4373_v53, %v3440_v48 }
0x166d   :  { %v5495_v37 = vpop.eup %5494  ;;  %5500 = vrsqrt.f32 %v3420_v16 }
0x166e   :  { %v3429_v27 = vmul.f32 %v5495_v37, %v7262_v26  ;;  %v3457_v19 = vpack.c.bf16 %v3452_v55, %v3451_v63 }
0x1670   :  { %5016 = vmatmul.mubr.msk.bf16.vlgmr.msra.gmra.mrb[128].mxu0 %vm130_vm0, %v3457_v19  ;;  %v3441_v34 = vmul.f32 %v4372_v57, %v3429_v27 }
0x1671   :  { %v5497_v23 = vpop.eup %5496  ;;  %5019 = vmatprep.mubr.msk.bf16.mxu0 %vm5560_vm2, %v5557_v47 }
0x1672   :  { %v3430_v43 = vmul.f32 %v5497_v23, %v7267_v17  ;;  %v3453_v33 = vadd.f32 %v4373_v53, %v3441_v34 }
0x1674   :  { %v3442_v5 = vmul.f32 %v4372_v57, %v3430_v43 }
0x1675   :  { %v5499_v42 = vpop.eup %5498 }
0x1676   :  { %v3431_v9 = vmul.f32 %v5499_v42, %v7273_v4  ;;  %v3454_v30 = vadd.f32 %v4373_v53, %v3442_v5  ;;  %v5216_v4 = vld [vmem:[%s7531_s16 + $0x40] sm:$0xff]  }
0x1677   :  { %v5501_v54 = vpop.eup %5500  ;;  %5028 = vmatpush3.bf16.msra.mxu1 %v5216_v4 }
0x1678   :  { %v3432_v21 = vmul.f32 %v5501_v54, %v7276_v22  ;;  %v3458_v26 = vpack.c.bf16 %v3454_v30, %v3453_v33  ;;  %v3443_v56 = vmul.f32 %v4372_v57, %v3431_v9  ;;  %5029 = vmatprep.subr.bf16.mxu1 %v5557_v47  ;;  %v5217_v22 = vld [vmem:[%s7531_s16 + $0x48] sm:$0xff]  }
0x167a   :  { %5020 = vmatmul.mubr.msk.bf16.gmra.mrb[132].mxu0 %vm130_vm0, %v3458_v26  ;;  %v3444_v7 = vmul.f32 %v4372_v57, %v3432_v21  ;;  %v3455_v17 = vadd.f32 %v4373_v53, %v3443_v56 }
0x167b   :  { %5023 = vmatprep.mubr.msk.bf16.mxu0 %vm5560_vm2, %v5557_v47  ;;  %5030 = vmatpush3.bf16.msra.mxu1 %v5217_v22 }
0x167c   :  { %v3456_v58 = vadd.f32 %v4373_v53, %v3444_v7  ;;  %5031 = vmatprep.subr.bf16.mxu1 %v5557_v47 }
0x167e   :  { %v3459_v51 = vpack.c.bf16 %v3456_v58, %v3455_v17 }
0x167f   :  { %5032 = vmatpush3.bf16.msra.mxu1 %v5218_v59 }
0x1680   :  { %5033 = vmatprep.subr.bf16.mxu1 %v5557_v47 }
0x1682   :  { %5024 = vmatmul.mubr.msk.bf16.gmra.mrb[136].mxu0 %vm130_vm0, %v3459_v51 }
0x1683   :  { %5034 = vmatpush3.bf16.msra.mxu1 %v5219_v2 }
0x1684   :  { %5035 = vmatprep.subr.bf16.mxu1 %v5557_v47 }
0x1687   :  { %5036 = vmatpush3.bf16.msra.mxu1 %v5220_v8 }
0x1688   :  { %5037 = vmatprep.subr.bf16.mxu1 %v5557_v47 }
0x168b   :  { %5038 = vmatpush3.bf16.msra.mxu1 %v5221_v3 }
0x168c   :  { %5039 = vmatprep.subr.bf16.mxu1 %v5557_v47 }
0x168f   :  { %5040 = vmatpush3.bf16.msra.mxu1 %v5222_v25 }
0x1690   :  { %5041 = vmatprep.subr.bf16.mxu1 %v5557_v47 }
0x1693   :  { %5042 = vmatpush3.bf16.msra.mxu1 %v5223_v46 }
0x1743   :  { %v3544_v20 = vpop.f32.mrb[128].mxu0 }
0x1744   :  { %v3545_v49 = vadd.f32 %v4383_v29, %v3544_v20  ;;  %v5017_v15 = vpop.f32.mrb[129].mxu0 }
0x1745   :  { %v3547_v31 = vpop.f32.mrb[130].mxu0 }
0x1746   :  { %v3567_v12 = vmul.f32 %v3545_v49, %v3545_v49  ;;  %v3548_v41 = vadd.f32 %v4383_v29, %v3547_v31  ;;  %v5018_v11 = vpop.f32.mrb[131].mxu0 }
0x1748   :  { %v3573_v13 = vmul.f32 %v3567_v12, %v3545_v49  ;;  %v3568_v38 = vmul.f32 %v3548_v41, %v3548_v41 }
0x174a   :  { %v3579_v14 = vmul.f32 0.044715, %v3573_v13  ;;  %v3574_v24 = vmul.f32 %v3568_v38, %v3548_v41 }
0x174c   :  { %v3585_v18 = vadd.f32 %v3579_v14, %v3545_v49  ;;  %v3580_v57 = vmul.f32 0.044715, %v3574_v24 }
0x174d   :  { %v3552_v0 = vpop.f32.mrb[132].mxu0 }
0x174e   :  { %v3591_v39 = vmul.f32 0.7978846, %v3585_v18  ;;  %v3586_v1 = vadd.f32 %v3580_v57, %v3548_v41  ;;  %v3553_v28 = vadd.f32 %v4383_v29, %v3552_v0  ;;  %v5021_v6 = vpop.f32.mrb[133].mxu0 }
0x174f   :  { %v3555_v32 = vpop.f32.mrb[134].mxu0 }
0x1750   :  { %5502 = vtanh.f32 %v3591_v39  ;;  %v3592_v45 = vmul.f32 0.7978846, %v3586_v1  ;;  %v3569_v35 = vmul.f32 %v3553_v28, %v3553_v28  ;;  %v3556_v53 = vadd.f32 %v4383_v29, %v3555_v32  ;;  %v5022_v40 = vpop.f32.mrb[135].mxu0 }
0x1752   :  { %5504 = vtanh.f32 %v3592_v45  ;;  %v3575_v36 = vmul.f32 %v3569_v35, %v3553_v28  ;;  %v3570_v48 = vmul.f32 %v3556_v53, %v3556_v53 }
0x1754   :  { %v3581_v16 = vmul.f32 0.044715, %v3575_v36  ;;  %v3576_v63 = vmul.f32 %v3570_v48, %v3556_v53 }
0x1755   :  { %v3560_v55 = vpop.f32.mrb[136].mxu0 }
0x1756   :  { %v3587_v37 = vadd.f32 %v3581_v16, %v3553_v28  ;;  %v3582_v27 = vmul.f32 0.044715, %v3576_v63  ;;  %v3561_v19 = vadd.f32 %v4383_v29, %v3560_v55  ;;  %v5025_v23 = vpop.f32.mrb[137].mxu0 }
0x1757   :  { %v3563_v43 = vpop.f32.mrb[138].mxu0 }
0x1758   :  { %v3593_v34 = vmul.f32 0.7978846, %v3587_v37  ;;  %v3588_v5 = vadd.f32 %v3582_v27, %v3556_v53  ;;  %v3571_v42 = vmul.f32 %v3561_v19, %v3561_v19  ;;  %v3564_v9 = vadd.f32 %v4383_v29, %v3563_v43  ;;  %v5026_v33 = vpop.f32.mrb[139].mxu0 }
0x175a   :  { %v5503_v30 = vpop.eup %5502  ;;  %5506 = vtanh.f32 %v3593_v34  ;;  %v3594_v54 = vmul.f32 0.7978846, %v3588_v5  ;;  %v3577_v21 = vmul.f32 %v3571_v42, %v3561_v19  ;;  %v3572_v26 = vmul.f32 %v3564_v9, %v3564_v9 }
0x175b   :  { %v3603_v56 = vadd.f32 1.0, %v5503_v30 }
0x175c   :  { %v5505_v7 = vpop.eup %5504  ;;  %5508 = vtanh.f32 %v3594_v54  ;;  %v3583_v58 = vmul.f32 0.044715, %v3577_v21  ;;  %v3578_v17 = vmul.f32 %v3572_v26, %v3564_v9 }
0x175d   :  { %v3609_v51 = vmul.f32 0.5, %v3603_v56  ;;  %v3604_v4 = vadd.f32 1.0, %v5505_v7 }
0x175e   :  { %v3589_v22 = vadd.f32 %v3583_v58, %v3561_v19  ;;  %v3584_v59 = vmul.f32 0.044715, %v3578_v17 }
0x175f   :  { %v3610_v2 = vmul.f32 0.5, %v3604_v4  ;;  %v3615_v25 = vmul.f32 %v3609_v51, %v3545_v49 }
0x1760   :  { %v3595_v8 = vmul.f32 0.7978846, %v3589_v22  ;;  %v3590_v3 = vadd.f32 %v3584_v59, %v3564_v9 }
0x1761   :  { %v3616_v46 = vmul.f32 %v3610_v2, %v3548_v41 }
0x1762   :  { %5510 = vtanh.f32 %v3595_v8  ;;  %v3596_v29 = vmul.f32 0.7978846, %v3590_v3 }
0x1763   :  { %v3621_v20 = vpack.c.bf16 %v3616_v46, %v3615_v25 }
0x1764   :  { %v5507_v15 = vpop.eup %5506  ;;  %5512 = vtanh.f32 %v3596_v29 }
0x1765   :  { %5044 = vmatmul.mubr.bf16.vlgmr.msra.gmra.mrb[140].mxu1 %v3621_v20  ;;  %v3605_v31 = vadd.f32 1.0, %v5507_v15 }
0x1766   :  { %v5509_v12 = vpop.eup %5508  ;;  %5047 = vmatprep.mubr.msk.bf16.mxu1 %vm5560_vm2, %v5557_v47 }
0x1767   :  { %v3606_v11 = vadd.f32 1.0, %v5509_v12  ;;  %v3611_v13 = vmul.f32 0.5, %v3605_v31 }
0x1769   :  { %v3612_v38 = vmul.f32 0.5, %v3606_v11  ;;  %v3617_v14 = vmul.f32 %v3611_v13, %v3553_v28  ;;  %v4408_v28 = vld [vmem:[%s7532_s17 + $0x1] ss:$0 sm:$0xff] }
0x176b   :  { %v3618_v24 = vmul.f32 %v3612_v38, %v3556_v53 }
0x176c   :  { %v5511_v18 = vpop.eup %5510 }
0x176d   :  { %v3622_v57 = vpack.c.bf16 %v3618_v24, %v3617_v14  ;;  %v3607_v49 = vadd.f32 1.0, %v5511_v18 }
0x176e   :  { %v5513_v41 = vpop.eup %5512 }
0x176f   :  { %5048 = vmatmul.mubr.bf16.gmra.mrb[144].mxu1 %v3622_v57  ;;  %v3608_v0 = vadd.f32 1.0, %v5513_v41  ;;  %v3613_v39 = vmul.f32 0.5, %v3607_v49  ;;  %v4417_v41 = vld [vmem:[%s7533_s18] ss:$0 sm:$0xff] }
0x1770   :  { %5051 = vmatprep.mubr.msk.bf16.mxu1 %vm5560_vm2, %v5557_v47 }
0x1771   :  { %v3614_v1 = vmul.f32 0.5, %v3608_v0  ;;  %v3619_v6 = vmul.f32 %v3613_v39, %v3561_v19 }
0x1773   :  { %v3620_v32 = vmul.f32 %v3614_v1, %v3564_v9  ;;  %v4418_v1 = vld [vmem:[%s7534_s19] ss:$0 sm:$0xff] }
0x1775   :  { %v3623_v45 = vpack.c.bf16 %v3620_v32, %v3619_v6 }
0x1777   :  { %5052 = vmatmul.mubr.bf16.gmra.mrb[148].mxu1 %v3623_v45 }
0x1778   :  { %4031 = vmatprep.mubr.bf16.mxu1 %v5556_v62 }
0x1838   :  { %v3731_v35 = vpop.f32.mrb[140].mxu1 }
0x1839   :  { %v3732_v53 = vadd.f32 %v4408_v28, %v3731_v35  ;;  %v5045_v40 = vpop.f32.mrb[141].mxu1 }
0x183a   :  { %v3734_v36 = vpop.f32.mrb[142].mxu1 }
0x183b   :  { %v3752_v48 = vadd.f32 %v3732_v53, %v7231_v60  ;;  %v3735_v16 = vadd.f32 %v4408_v28, %v3734_v36  ;;  %v5046_v63 = vpop.f32.mrb[143].mxu1 }
0x183d   :  { %v3753_v47 = vadd.f32 %v3735_v16, %v7234_v10  ;;  %v3758_v55 = vsel %vm130_vm0, %v3752_v48, 0.0 }
0x183e   :  { %3759 = vadd.xlane.f32.xlu1 %v3758_v55 }
0x183f   :  { %v3761_v37 = vsel %vm130_vm0, %v3753_v47, 0.0 }
0x1840   :  { %3762 = vadd.xlane.f32.xlu0 %v3761_v37 }
0x1842   :  { %v3739_v62 = vpop.f32.mrb[144].mxu1 }
0x1843   :  { %v5049_v27 = vpop.f32.mrb[145].mxu1 }
0x1844   :  { %v3741_v19 = vpop.f32.mrb[146].mxu1 }
0x1845   :  { %v3742_v23 = vadd.f32 %v4408_v28, %v3741_v19  ;;  %v5050_v43 = vpop.f32.mrb[147].mxu1 }
0x1847   :  { %v3754_v34 = vadd.f32 %v3742_v23, %v7242_v44 }
0x1849   :  { %v3800_v5 = vsel %vm130_vm0, %v3754_v34, 0.0 }
0x184a   :  { %3801 = vadd.xlane.f32.xlu1 %v3800_v5  ;;  %v3746_v60 = vpop.f32.mrb[148].mxu1  ;;  %v3878_v5 = vld [vmem:[%s7535_s20] sm:$0xff] }
0x184b   :  { %v3747_v42 = vadd.f32 %v4408_v28, %v3746_v60  ;;  %v5053_v9 = vpop.f32.mrb[149].mxu1 }
0x184c   :  { %v3749_v10 = vpop.f32.mrb[150].mxu1 }
0x184d   :  { %v3755_v33 = vadd.f32 %v3747_v42, %v7248_v61  ;;  %v5054_v30 = vpop.f32.mrb[151].mxu1 }
0x184f   :  { %v3803_v54 = vsel %vm130_vm0, %v3755_v33, 0.0 }
0x1850   :  { %3804 = vadd.xlane.f32.xlu0 %v3803_v54 }
0x18cb   :  { %v3760_v21 = vpop.xlane.xlu1 %3759 }
0x18cc   :  { %v3764_v26 = vmul.f32 0.015625, %v3760_v21 }
0x18cd   :  { %v3763_v56 = vpop.xlane.xlu0 %3762 }
0x18ce   :  { %v3766_v7 = vsub.f32 %v3752_v48, %v3764_v26  ;;  %v3765_v58 = vmul.f32 0.015625, %v3763_v56 }
0x18d0   :  { %v3767_v17 = vsub.f32 %v3753_v47, %v3765_v58  ;;  %v3768_v44 = vmul.f32 %v3766_v7, %v3766_v7 }
0x18d2   :  { %v3770_v51 = vsel %vm130_vm0, %v3768_v44, 0.0  ;;  %v3769_v4 = vmul.f32 %v3767_v17, %v3767_v17 }
0x18d3   :  { %3771 = vadd.xlane.f32.xlu1 %v3770_v51 }
0x18d4   :  { %v3773_v22 = vsel %vm130_vm0, %v3769_v4, 0.0 }
0x18d5   :  { %3774 = vadd.xlane.f32.xlu0 %v3773_v22 }
0x18d7   :  { %v3802_v59 = vpop.xlane.xlu1 %3801 }
0x18d8   :  { %v3806_v61 = vmul.f32 0.015625, %v3802_v59 }
0x18da   :  { %v3808_v2 = vsub.f32 %v3754_v34, %v3806_v61 }
0x18dc   :  { %v3810_v8 = vmul.f32 %v3808_v2, %v3808_v2 }
0x18dd   :  { %v3805_v3 = vpop.xlane.xlu0 %3804 }
0x18de   :  { %v3807_v25 = vmul.f32 0.015625, %v3805_v3  ;;  %v3812_v46 = vsel %vm130_vm0, %v3810_v8, 0.0  ;;  %v3880_v8 = vld [vmem:[%s7536_s21] sm:$0xff]  ;;  %v3881_v3 = vld [vmem:[%s7536_s21 + $0x8] sm:$0xff] }
0x18df   :  { %3813 = vadd.xlane.f32.xlu1 %v3812_v46  ;;  %v5226_v46 = vld [vmem:[%s7537_s22 + $0x4] ss:$8 sps:$4 sm:$0xff]  }
0x18e0   :  { %v3809_v29 = vsub.f32 %v3755_v33, %v3807_v25  ;;  %v3879_v25 = vld [vmem:[%s7535_s20 + $0x8] sm:$0xff]  ;;  %3999 = vmatprep.subr.bf16.mxu1 %v5226_v46 }
0x18e2   :  { %v3811_v20 = vmul.f32 %v3809_v29, %v3809_v29 }
0x18e4   :  { %v3815_v15 = vsel %vm130_vm0, %v3811_v20, 0.0  ;;  %v5229_v20 = vld [vmem:[%s7537_s22 + $0x14] ss:$8 sps:$4 sm:$0xff]  }
0x18e5   :  { %3816 = vadd.xlane.f32.xlu0 %v3815_v15  ;;  %v5227_v15 = vld [vmem:[%s7537_s22 + $0x10] ss:$8 sps:$4 sm:$0xff]  }
0x1960   :  { %v3772_v31 = vpop.xlane.xlu1 %3771 }
0x1961   :  { %v3776_v12 = vmul.f32 0.015625, %v3772_v31  ;;  %v5232_v31 = vld [vmem:[%s7537_s22 + $0x24] ss:$8 sps:$4 sm:$0xff]  }
0x1962   :  { %v3775_v11 = vpop.xlane.xlu0 %3774 }
0x1963   :  { %v3778_v13 = vadd.f32 1e-05, %v3776_v12  ;;  %v3777_v38 = vmul.f32 0.015625, %v3775_v11  ;;  %v5230_v12 = vld [vmem:[%s7537_s22 + $0x20] ss:$8 sps:$4 sm:$0xff]  }
0x1964   :  { %v5235_v11 = vld [vmem:[%s7537_s22 + $0x34] ss:$8 sps:$4 sm:$0xff]  }
0x1965   :  { %5514 = vrsqrt.f32 %v3778_v13  ;;  %v3779_v14 = vadd.f32 1e-05, %v3777_v38  ;;  %v5233_v13 = vld [vmem:[%s7537_s22 + $0x30] ss:$8 sps:$4 sm:$0xff]   ;;  %v5236_v38 = vld [vmem:[%s7539_s24 + $0x40] sm:$0xff]  }
0x1966   :  { %4597 = vmatprep.subr.bf16.mxu0 %v5236_v38  ;;  %v5248_v38 = vld [vmem:[%s7539_s24 + $0x70] sm:$0xff]  }
0x1967   :  { %5516 = vrsqrt.f32 %v3779_v14  ;;  %v5237_v14 = vld [vmem:[%s7539_s24] sm:$0xff]  }
0x1968   :  { %4598 = vmatpush3.bf16.msra.mxu0 %v5237_v14  ;;  %v5249_v14 = vld [vmem:[%s7539_s24 + $0x30] sm:$0xff]  }
0x196c   :  { %v3814_v24 = vpop.xlane.xlu1 %3813 }
0x196d   :  { %v3818_v18 = vmul.f32 0.015625, %v3814_v24  ;;  %v5238_v24 = vld [vmem:[%s7539_s24 + $0x48] sm:$0xff]  }
0x196e   :  { %4599 = vmatprep.subr.bf16.mxu0 %v5238_v24  ;;  %v5250_v24 = vld [vmem:[%s7539_s24 + $0x78] sm:$0xff]  }
0x196f   :  { %v5515_v57 = vpop.eup %5514  ;;  %v3820_v49 = vadd.f32 1e-05, %v3818_v18  ;;  %v5239_v18 = vld [vmem:[%s7539_s24 + $0x8] sm:$0xff]  }
0x1970   :  { %v3782_v0 = vmul.f32 %v5515_v57, %v3766_v7  ;;  %v5240_v57 = vld [vmem:[%s7539_s24 + $0x50] sm:$0xff]   ;;  %4600 = vmatpush3.bf16.msra.mxu0 %v5239_v18  ;;  %v5251_v18 = vld [vmem:[%s7539_s24 + $0x38] sm:$0xff]  }
0x1971   :  { %v5517_v39 = vpop.eup %5516  ;;  %5518 = vrsqrt.f32 %v3820_v49  ;;  %v5241_v49 = vld [vmem:[%s7539_s24 + $0x10] sm:$0xff]   ;;  %4601 = vmatprep.subr.bf16.mxu0 %v5240_v57  ;;  %v3944_v57 = vld [vmem:[%s7538_s23] sm:$0x3] }
0x1972   :  { %v3817_v6 = vpop.xlane.xlu0 %3816  ;;  %v3790_v32 = vmul.f32 %v4417_v41, %v3782_v0  ;;  %v3783_v45 = vmul.f32 %v5517_v39, %v3767_v17  ;;  %v5243_v0 = vld [vmem:[%s7539_s24 + $0x18] sm:$0xff]   ;;  %v5244_v39 = vld [vmem:[%s7539_s24 + $0x60] sm:$0xff]  }
0x1973   :  { %v3819_v28 = vmul.f32 0.015625, %v3817_v6  ;;  %v5246_v6 = vld [vmem:[%s7539_s24 + $0x68] sm:$0xff]  }
0x1974   :  { %v3798_v35 = vadd.f32 %v4418_v1, %v3790_v32  ;;  %v3791_v53 = vmul.f32 %v4417_v41, %v3783_v45  ;;  %4602 = vmatpush3.bf16.msra.mxu0 %v5241_v49  ;;  %v5247_v32 = vld [vmem:[%s7539_s24 + $0x28] sm:$0xff]   ;;  %v3949_v49 = vrot.slane %v3944_v57, %v5831_v50  ;;  %v4428_v50 = vld [vmem:[%s7540_s25] ss:$0 sm:$0xff] }
0x1975   :  { %v3821_v40 = vadd.f32 1e-05, %v3819_v28 }
0x1976   :  { %v3830_v36 = vsel %vm130_vm0, %v3798_v35, 0.0  ;;  %v3799_v48 = vadd.f32 %v4418_v1, %v3791_v53 }
0x1977   :  { %5520 = vrsqrt.f32 %v3821_v40  ;;  %3831 = vadd.xlane.f32.xlu1 %v3830_v36 }
0x1978   :  { %v3833_v16 = vsel %vm130_vm0, %v3799_v48, 0.0 }
0x1979   :  { %3834 = vadd.xlane.f32.xlu0 %v3833_v16 }
0x197b   :  { %v5519_v63 = vpop.eup %5518 }
0x197c   :  { %v3824_v47 = vmul.f32 %v5519_v63, %v3808_v2 }
0x197e   :  { %v3826_v55 = vmul.f32 %v4417_v41, %v3824_v47 }
0x1980   :  { %v3828_v37 = vadd.f32 %v4418_v1, %v3826_v55 }
0x1981   :  { %v5521_v62 = vpop.eup %5520 }
0x1982   :  { %v3838_v27 = vsel %vm130_vm0, %v3828_v37, 0.0  ;;  %v3825_v19 = vmul.f32 %v5521_v62, %v3809_v29  ;;  %v5224_v29 = vld [vmem:[%s7537_s22] ss:$8 sps:$4 sm:$0xff]   ;;  %s5532_s22 = scalar_lea.vmem %s4227_s27, 32 }
0x1983   :  { %3839 = vadd.xlane.f32.xlu1 %v3838_v27  ;;  %4000 = vmatpush1.bf16.msra.mxu1 %v5224_v29  ;;  %p5533_p0 = scmp.ne.s32.totalorder %s4227_s27, %s5532_s22  ;;  %p5538_p2 = scmp.lt.s32.totalorder %s5532_s22, %s5532_s22 }
0x1984   :  { %v3827_v23 = vmul.f32 %v4417_v41, %v3825_v19  ;;  %4001 = vmatprep.subr.bf16.mxu1 %v5229_v20  ;;  %v5242_v41 = vld [vmem:[%s7539_s24 + $0x58] sm:$0xff]  }
0x1985   :  { %4603 = vmatprep.subr.bf16.mxu0 %v5242_v41  ;;  %v3953_v41 = vrot.slane %v3944_v57, %v5836_v52  ;;  %p5539_p3 = por %p5538_p2, %p5537_p1 }
0x1986   :  { %v3829_v43 = vadd.f32 %v4418_v1, %v3827_v23  ;;  %4604 = vmatpush3.bf16.msra.mxu0 %v5243_v0  ;;  %v5245_v1 = vld [vmem:[%s7539_s24 + $0x20] sm:$0xff]  }
0x1987   :  { %4002 = vmatpush1.bf16.msra.mxu1 %v5227_v15  ;;  %4605 = vmatprep.subr.bf16.mxu0 %v5244_v39  ;;  %p5540_p4 = pnand %p5539_p3, %p5533_p0 }
0x1988   :  { %v3841_v34 = vsel %vm130_vm0, %v3829_v43, 0.0  ;;  %4003 = vmatprep.subr.bf16.mxu1 %v5232_v31 }
0x1989   :  { %3842 = vadd.xlane.f32.xlu0 %v3841_v34 }
0x198a   :  { %4606 = vmatpush3.bf16.msra.mxu0 %v5245_v1 }
0x198b   :  { %4004 = vmatpush1.bf16.msra.mxu1 %v5230_v12  ;;  %4607 = vmatprep.subr.bf16.mxu0 %v5246_v6 }
0x198c   :  { %4005 = vmatprep.subr.bf16.mxu1 %v5235_v11 }
0x198e   :  { %4608 = vmatpush3.bf16.msra.mxu0 %v5247_v32 }
0x198f   :  { %4006 = vmatpush1.bf16.msra.mxu1 %v5233_v13  ;;  %4609 = vmatprep.subr.bf16.mxu0 %v5248_v38 }
0x1992   :  { %4610 = vmatpush3.bf16.msra.mxu0 %v5249_v14 }
0x1993   :  { %4611 = vmatprep.subr.bf16.mxu0 %v5250_v24 }
0x1994   :  { %3886 = vperm.xlu1 %5162, %v3878_v5  }
0x1996   :  { %4612 = vmatpush3.bf16.msra.mxu0 %v5251_v18 }
0x1a04   :  { %v3832_v60 = vpop.xlane.xlu1 %3831 }
0x1a06   :  { %v3835_v10 = vpop.xlane.xlu0 %3834 }
0x1a10   :  { %v3840_v42 = vpop.xlane.xlu1 %3839 }
0x1a11   :  { %v3844_v9 = vadd.f32 %v3840_v42, %v3832_v60 }
0x1a13   :  { %v3846_v33 = vmul.f32 0.0078125, %v3844_v9 }
0x1a14   :  { %v3887_v45 = vpop.permute.xlu1 %3886 }
0x1a15   :  { %v7384_v30 = vsub.f32 %v3798_v35, %v3846_v33  ;;  %v7386_v54 = vsub.f32 %v3828_v37, %v3846_v33 }
0x1a16   :  { %v3843_v21 = vpop.xlane.xlu0 %3842 }
0x1a17   :  { %v3845_v26 = vadd.f32 %v3843_v21, %v3835_v10  ;;  %v3850_v56 = vmul.f32 %v7384_v30, %v7384_v30  ;;  %v3862_v17 = vmul.f32 %v7386_v54, %v7386_v54 }
0x1a19   :  { %v3847_v7 = vmul.f32 0.0078125, %v3845_v26  ;;  %v3852_v58 = vsel %vm130_vm0, %v3850_v56, 0.0  ;;  %v3864_v4 = vsel %vm130_vm0, %v3862_v17, 0.0 }
0x1a1a   :  { %3853 = vadd.xlane.f32.xlu1 %v3852_v58 }
0x1a1b   :  { %v7393_v44 = vsub.f32 %v3799_v48, %v3847_v7  ;;  %v7395_v51 = vsub.f32 %v3829_v43, %v3847_v7 }
0x1a1d   :  { %v3851_v22 = vmul.f32 %v7393_v44, %v7393_v44  ;;  %v3863_v61 = vmul.f32 %v7395_v51, %v7395_v51 }
0x1a1e   :  { %3865 = vadd.xlane.f32.xlu1 %v3864_v4 }
0x1a1f   :  { %v3855_v59 = vsel %vm130_vm0, %v3851_v22, 0.0  ;;  %v3867_v2 = vsel %vm130_vm0, %v3863_v61, 0.0 }
0x1a20   :  { %3856 = vadd.xlane.f32.xlu0 %v3855_v59 }
0x1a24   :  { %3868 = vadd.xlane.f32.xlu0 %v3867_v2 }
0x1a2f   :  { %3898 = vperm.xlu1 %5162, %v3880_v8  }
0x1a33   :  { %3903 = vperm.xlu1 %5162, %v3881_v3  }
0x1a3a   :  { %3891 = vperm.xlu0 %5163, %v3879_v25  }
0x1aa7   :  { %v3854_v28 = vpop.xlane.xlu1 %3853 }
0x1aab   :  { %v3866_v35 = vpop.xlane.xlu1 %3865 }
0x1aac   :  { %v3870_v53 = vadd.f32 %v3866_v35, %v3854_v28 }
0x1aad   :  { %v3857_v40 = vpop.xlane.xlu0 %3856 }
0x1aae   :  { %v3872_v36 = vmul.f32 0.0078125, %v3870_v53 }
0x1aaf   :  { %v3899_v19 = vpop.permute.xlu1 %3898 }
0x1ab0   :  { %v3874_v48 = vadd.f32 1e-05, %v3872_v36 }
0x1ab1   :  { %v3869_v16 = vpop.xlane.xlu0 %3868 }
0x1ab2   :  { %5522 = vrsqrt.f32 %v3874_v48  ;;  %v3871_v63 = vadd.f32 %v3869_v16, %v3857_v40 }
0x1ab3   :  { %v3904_v26 = vpop.permute.xlu1 %3903 }
0x1ab4   :  { %v3873_v47 = vmul.f32 0.0078125, %v3871_v63 }
0x1ab6   :  { %v3875_v55 = vadd.f32 1e-05, %v3873_v47 }
0x1ab8   :  { %5524 = vrsqrt.f32 %v3875_v55 }
0x1ab9   :  { %v3892_v5 = vpop.permute.xlu0 %3891 }
0x1abc   :  { %v5523_v37 = vpop.eup %5522 }
0x1abd   :  { %v3882_v62 = vmul.f32 %v5523_v37, %v7384_v30  ;;  %v3918_v27 = vmul.f32 %v5523_v37, %v7386_v54 }
0x1abf   :  { %v3894_v23 = vmul.f32 %v3887_v45, %v3882_v62  ;;  %v3920_v43 = vmul.f32 %v3918_v27, %v3887_v45 }
0x1ac1   :  { %v3906_v9 = vadd.f32 %v3899_v19, %v3894_v23  ;;  %v3922_v10 = vadd.f32 %v3920_v43, %v3899_v19 }
0x1ac2   :  { %v5525_v34 = vpop.eup %5524 }
0x1ac3   :  { %v3883_v60 = vmul.f32 %v5525_v34, %v7393_v44  ;;  %v3919_v42 = vmul.f32 %v5525_v34, %v7395_v51  ;;  %v3908_v30 = vsel %vm130_vm0, %v3906_v9, 0.0  ;;  %v3924_v54 = vsel %vm130_vm0, %v3922_v10, 0.0 }
0x1ac5   :  { %v3895_v33 = vmul.f32 %v3892_v5, %v3883_v60  ;;  %v3921_v21 = vmul.f32 %v3919_v42, %v3892_v5 }
0x1ac7   :  { %v3907_v56 = vadd.f32 %v3904_v26, %v3895_v33  ;;  %v3923_v7 = vadd.f32 %v3921_v21, %v3904_v26 }
0x1ac9   :  { %v3909_v58 = vsel %vm130_vm0, %v3907_v56, 0.0  ;;  %v3925_v17 = vsel %vm130_vm0, %v3923_v7, 0.0 }
0x1aca   :  { %v3910_v4 = vadd.f32 %v3909_v58, %v3908_v30  ;;  %v3926_v22 = vadd.f32 %v3925_v17, %v3924_v54 }
0x1acc   :  { %v3911_v44 = vrot.slane %v3910_v4, 4  ;;  %v3927_v59 = vrot.slane %v3926_v22, 4 }
0x1ace   :  { %v3912_v51 = vadd.f32 %v3911_v44, %v3910_v4  ;;  %v3928_v61 = vadd.f32 %v3927_v59, %v3926_v22 }
0x1ad0   :  { %v3913_v2 = vrot.slane %v3912_v51, 2  ;;  %v3929_v8 = vrot.slane %v3928_v61, 2 }
0x1ad2   :  { %v3914_v3 = vadd.f32 %v3913_v2, %v3912_v51  ;;  %v3930_v25 = vadd.f32 %v3929_v8, %v3928_v61 }
0x1ad4   :  { %v3915_v46 = vrot.slane %v3914_v3, 1  ;;  %v3931_v29 = vrot.slane %v3930_v25, 1 }
0x1ad6   :  { %v3916_v20 = vadd.f32 %v3915_v46, %v3914_v3  ;;  %v3932_v15 = vadd.f32 %v3931_v29, %v3930_v25 }
0x1ad8   :  { %v3917_v31 = vmul.f32 0.0625, %v3916_v20  ;;  %v3933_v12 = vmul.f32 0.0625, %v3932_v15 }
0x1ada   :  { %v3934_v11 = vsel %vm191_vm1, %v3917_v31, %v3933_v12 }
0x1adb   :  { %v3935_v13 = vpack.c.bf16 %v3934_v11, %v3934_v11 }
0x1add   :  { %4427 = vmatmul.mubr.msk.bf16.vlgmr.msra.gmra.mrb[152].mxu1 %vm130_vm0, %v3935_v13 }
0x1bb0   :  { %v4033_v0 = vpop.f32.mrb[152].mxu1 }
0x1bb1   :  { %v4034_v39 = vadd.f32 %v4033_v0, %v3949_v49  ;;  %v4035_v1 = vpop.f32.mrb[153].mxu1 }
0x1bb2   :  { %v4036_v6 = vadd.f32 %v4035_v1, %v3953_v41  ;;  %v4037_v32 = vpop.f32.mrb[154].mxu1 }
0x1bb3   :  { %v4040_v45 = vmax.f32 %v4034_v39, 0.0  ;;  %v4038_v28 = vpop.f32.mrb[155].mxu1 }
0x1bb4   :  { %v4041_v35 = vmax.f32 %v4036_v6, 0.0 }
0x1bb5   :  { %v4042_v40 = vpack.c.bf16 %v4040_v45, %v4040_v45 }
0x1bb6   :  { %v4043_v53 = vpack.c.bf16 %v4041_v35, %v4041_v35 }
0x1bb8   :  { %4211 = vmatprep.mubr.bf16.mxu0 %v4043_v53 }
0x1bb9   :  { %4212 = vmatmul.mubr.bf16.vlgmr.msra.gmra.mrb[140].mxu0 %v4042_v40 }
0x1c8c   :  { %v4613_v36 = vpop.f32.mrb[140].mxu0 }
0x1c8d   :  { %v4614_v48 = vpop.f32.mrb[141].mxu0 }
0x1c8e   :  { %v4615_v52 = vadd.f32 %v4614_v48, %v4613_v36  ;;  %v4616_v16 = vpop.f32.mrb[142].mxu0 }
0x1c8f   :  { %v4617_v63 = vpop.f32.mrb[143].mxu0 }
0x1c90   :  { %v4214_v47 = vadd.f32 %v4615_v52, %v4428_v50 }
0x1c92   :  { %4219 = vst [vmem:[#allocation2] sm:$0x3] %v4214_v47 }
0x1c93   :  { %5543 = shalt.err (!%p5540_p4)
}
0x1c94   :  { %s7596_s29 = sld [smem:[#allocation16_spill]] }
0x1c9a   :  { %s5544_s7 = scalar_lea.hbm %s7596_s29, 32 }
0x1c9b   :  { %p5545_p5 = scmp.ne.s32.totalorder %s7596_s29, %s5544_s7  ;;  %p5548_p6 = scmp.lt.u32.totalorder %s5544_s7, %s7596_s29 }
0x1c9d   :  { %p5550_p7 = pnand %p5548_p6, %p5545_p5 }
0x1c9f   :  { %5553 = shalt.err (!%p5550_p7)
}
0x1ca0   :  { %4229 = dma.vmem_to_hbm [thread:$0]  %s4227_s27, 32, %s7596_s29, [#allocation3]  }
0x1ca1   :  { %5554 = dma.done.wait [#allocation3], 32  }
0x1ca2   :  { %5555 = vsyncadd [#allocation3], 4294967264 }
0x1ca3   :  { %4233 = vsyncpa [#allocation3], 1 }

</bundles_post_ra>
